<compile_context>
chip_gen: v7x
topology: tpu7x:2x2x1
jax: 0.10.0
libtpu: 0.0.40
codegen_flags: <defaults>
</compile_context>

<pallas_src>
import jax
import jax.numpy as jnp
from jax.experimental import pallas as pl
from jax.experimental.pallas import tpu as pltpu


_LANE = 128      # vreg lane width
_SUBLANE = 8     # f32 sublane count


def _ceil_to(x, m):
    return ((x + m - 1) // m) * m


def _linear_sigmoid_kernel(x_ref, w_ref, b_ref, o_ref):
    # x_ref: (tile_rows, K), w_ref: (N, K) native [out, in] layout (transpose
    # folded into the contraction), b_ref: (1, N), o_ref: (tile_rows, N).
    acc = jax.lax.dot_general(
        x_ref[...], w_ref[...],
        dimension_numbers=(((1,), (1,)), ((), ())),   # x @ w.T on the MXU
        preferred_element_type=jnp.float32,
        precision=jax.lax.Precision.HIGHEST,          # exact f32 accumulate
    )
    acc = acc + b_ref[...].astype(jnp.float32)
    o_ref[...] = jax.nn.sigmoid(acc).astype(o_ref.dtype)


def _choose_tile_rows(n_rows, hbm_row_bytes, vmem_in_row_bytes, vmem_out_row_bytes):
    """VMEM-derived batch-row tile (in kernel rows)."""
    # Conservative pipelined-buffer budget: 2 x-buffers + 2 out-buffers must
    # fit comfortably alongside the resident weight/bias and compiler scratch
    # even on v7x (64 MiB physical VMEM, 32 MiB default scoped limit).
    vmem_budget = 16 << 20
    cap = max(_SUBLANE,
              (vmem_budget // (2 * (vmem_in_row_bytes + vmem_out_row_bytes)))
              // _SUBLANE * _SUBLANE)
    # Each grid step should move >= ~2 MiB of x from HBM so the ~0.35 us
    # per-step pipeline overhead is negligible.
    min_rows = _ceil_to(max(1, (2 << 20) // max(1, hbm_row_bytes)), _SUBLANE)
    if n_rows <= 4 * min_rows:
        # Small problem: one (or a few) big tiles; the demo collapses to grid=1.
        return min(n_rows, cap)
    # Large problem: >= 4 grid steps so both v7x TensorCores stay fed and DMA
    # overlaps compute; never exceed the VMEM cap.
    return min(cap, max(min_rows, _ceil_to(pl.cdiv(n_rows, 4), _SUBLANE)))


def _call_linear_sigmoid(x2d, w2d, b2d, tile_rows=None):
    """sigmoid(x2d @ w2d.T + b2d) for x2d [R, K], w2d [N, K], b2d [1, N]."""
    n_rows, in_cols = x2d.shape
    out_cols = w2d.shape[0]
    dbytes = jnp.dtype(x2d.dtype).itemsize

    hbm_row_in = in_cols * dbytes
    vmem_row_in = _ceil_to(in_cols, _LANE) * dbytes      # lane padding in VMEM
    vmem_row_out = _ceil_to(out_cols, _LANE) * dbytes

    if tile_rows is None:
        tile_rows = _choose_tile_rows(n_rows, hbm_row_in, vmem_row_in, vmem_row_out)
    else:
        tile_rows = max(1, min(int(tile_rows), n_rows))
        if tile_rows != n_rows:
            # (8,128) constraint: second-to-last block dim must be a multiple
            # of 8 or the full array extent.
            tile_rows = min(_ceil_to(tile_rows, _SUBLANE), n_rows)

    num_tiles = pl.cdiv(n_rows, tile_rows)   # ragged tail handled by Pallas
                                             # (OOB reads unused, OOB writes dropped)

    return pl.pallas_call(
        _linear_sigmoid_kernel,
        out_shape=jax.ShapeDtypeStruct((n_rows, out_cols), x2d.dtype),
        grid_spec=pl.GridSpec(
            grid=(num_tiles,),
            in_specs=[
                # x: one batch tile per grid step (double-buffered by Pallas).
                pl.BlockSpec((tile_rows, in_cols), lambda i: (i, 0)),
                # weight / bias: same block every step (resident in VMEM).
                pl.BlockSpec((out_cols, in_cols), lambda i: (0, 0)),
                pl.BlockSpec((1, out_cols), lambda i: (0, 0)),
            ],
            out_specs=pl.BlockSpec((tile_rows, out_cols), lambda i: (i, 0)),
        ),
        compiler_params=pltpu.CompilerParams(
            # Batch tiles are independent -> shard across TCs (v7x megacore).
            dimension_semantics=("parallel",),
        ),
    )(x2d, w2d, b2d)


def binary_classifier_forward(x, weight, bias, *, tile_rows=None):
    """sigmoid(x @ weight.T + bias).

    x: [..., in_size]; weight: [out_size, in_size] (nn.Linear layout);
    bias: [out_size].  tile_rows (optional) is in *kernel* rows.
    """
    in_size = x.shape[-1]
    out_size = weight.shape[0]
    lead_shape = x.shape[:-1]
    x2d = x.reshape(-1, in_size)
    n = x2d.shape[0]

    # Lane-dense packing: fold p logical rows into one kernel row so the
    # output row is exactly 128 lanes (unmasked stores) and the narrow input
    # stops wasting lanes.  Free row-major reshapes on x / out; the weight
    # becomes a one-time block-diagonal (p*out, p*in) array.
    p = 1
    if 0 < out_size < _LANE and _LANE % out_size == 0 and in_size <= _LANE:
        p_cand = _LANE // out_size
        if n >= p_cand and n % p_cand == 0:
            p = p_cand

    if p > 1:
        x_pk = x2d.reshape(n // p, p * in_size)                      # free reshape
        w_pk = jnp.kron(jnp.eye(p, dtype=weight.dtype), weight)      # (p*out, p*in)
        b_pk = jnp.tile(bias, p).reshape(1, p * out_size)            # (1, 128)
        out = _call_linear_sigmoid(x_pk, w_pk, b_pk, tile_rows)
        out = out.reshape(n, out_size)                               # free reshape
    else:
        out = _call_linear_sigmoid(x2d, weight, bias.reshape(1, out_size), tile_rows)

    return out.reshape(*lead_shape, out_size)


def _reference(x, weight, bias):
    return jax.nn.sigmoid(
        jnp.dot(x, weight.T, precision=jax.lax.Precision.HIGHEST) + bias
    )


if __name__ == "__main__":
    key = jax.random.PRNGKey(0)
    k_x, k_w, k_b = jax.random.split(key, 3)

    batch = 256
    input_size = 32
    output_size = 4

    x = jax.random.normal(k_x, (batch, input_size), dtype=jnp.float32)
    # Deterministic synthetic parameters (mimic nn.Linear init range).
    bound = 1.0 / (input_size ** 0.5)
    weight = jax.random.uniform(
        k_w, (output_size, input_size), minval=-bound, maxval=bound,
        dtype=jnp.float32)
    bias = jax.random.uniform(
        k_b, (output_size,), minval=-bound, maxval=bound, dtype=jnp.float32)

    out = binary_classifier_forward(x, weight, bias)
    out = jax.block_until_ready(out)

    ref = _reference(x, weight, bias)
    assert out.shape == (batch, output_size)
    assert jnp.allclose(out, ref, atol=1e-5, rtol=1e-5), "mismatch vs reference"

    # Also exercise the unpacked fallback path (batch not divisible by 32).
    out2 = jax.block_until_ready(
        binary_classifier_forward(x[:100], weight, bias, tile_rows=100))
    assert jnp.allclose(out2, ref[:100], atol=1e-5, rtol=1e-5), "fallback mismatch"

    print("KERNEL_OK")
</pallas_src>

<mosaic_0001>
module attributes {stable_mosaic.version = 11 : i64} {
  func.func @_linear_sigmoid_kernel(%arg0: i32, %arg1: memref<8x1024xf32, #tpu.memory_space<vmem>>, %arg2: memref<128x1024xf32, #tpu.memory_space<vmem>>, %arg3: memref<1x128xf32, #tpu.memory_space<vmem>>, %arg4: memref<8x128xf32, #tpu.memory_space<vmem>>) attributes {dimension_semantics = [#tpu.dimension_semantics<parallel>], iteration_bounds = array<i64: 1>, scalar_prefetch = 0 : i64, scratch_operands = 0 : i64, tpu.core_type = #tpu.core_type<tc>, window_params = [{transform_indices = @transform_0, window_bounds = array<i64: 8, 1024>}, {pipeline_mode = #tpu.pipeline_mode<synchronous>, transform_indices = @transform_1, window_bounds = array<i64: 128, 1024>}, {pipeline_mode = #tpu.pipeline_mode<synchronous>, transform_indices = @transform_2, window_bounds = array<i64: 1, 128>}, {transform_indices = @transform_3, window_bounds = array<i64: 8, 128>}]} {
    %c0 = arith.constant 0 : index
    %c0_0 = arith.constant 0 : index
    %0 = vector.load %arg1[%c0, %c0_0] : memref<8x1024xf32, #tpu.memory_space<vmem>>, vector<8x1024xf32>
    %c0_1 = arith.constant 0 : index
    %c0_2 = arith.constant 0 : index
    %1 = vector.load %arg2[%c0_1, %c0_2] : memref<128x1024xf32, #tpu.memory_space<vmem>>, vector<128x1024xf32>
    %cst = arith.constant dense<0.000000e+00> : vector<8x128xf32>
    %2 = tpu.matmul %0, %1, %cst {dimension_numbers = #tpu.dot_dimension_numbers<[1], [1], [0], [0], [0, 0, 1, 0], [], []>, precision = #tpu.contract_precision<fp32>} : vector<8x1024xf32>, vector<128x1024xf32>, vector<8x128xf32> -> vector<8x128xf32>
    %c0_3 = arith.constant 0 : index
    %c0_4 = arith.constant 0 : index
    %3 = vector.load %arg3[%c0_3, %c0_4] : memref<1x128xf32, #tpu.memory_space<vmem>>, vector<1x128xf32>
    %4 = vector.broadcast %3 : vector<1x128xf32> to vector<8x128xf32>
    %5 = arith.addf %2, %4 : vector<8x128xf32>
    %6 = arith.negf %5 : vector<8x128xf32>
    %7 = math.exp %6 : vector<8x128xf32>
    %cst_5 = arith.constant 1.000000e+00 : f32
    %8 = vector.broadcast %cst_5 : f32 to vector<8x128xf32>
    %9 = arith.addf %8, %7 : vector<8x128xf32>
    %10 = arith.divf %8, %9 : vector<8x128xf32>
    %c0_6 = arith.constant 0 : index
    %c0_7 = arith.constant 0 : index
    %11 = vector.load %arg4[%c0_6, %c0_7] : memref<8x128xf32, #tpu.memory_space<vmem>>, vector<8x128xf32>
    tpu.vector_store %arg4[%c0_6, %c0_7], %10 {strides = array<i32>} : memref<8x128xf32, #tpu.memory_space<vmem>>, vector<8x128xf32>,
    return
  }
  func.func @transform_0(%arg0: i32) -> (i32, i32) {
    %c0_i32 = arith.constant 0 : i32
    %c0_i32_0 = arith.constant 0 : i32
    return %arg0, %c0_i32 : i32, i32
  }
  func.func @transform_1(%arg0: i32) -> (i32, i32) {
    %c0_i32 = arith.constant 0 : i32
    %c0_i32_0 = arith.constant 0 : i32
    %c0_i32_1 = arith.constant 0 : i32
    return %c0_i32, %c0_i32_0 : i32, i32
  }
  func.func @transform_2(%arg0: i32) -> (i32, i32) {
    %c0_i32 = arith.constant 0 : i32
    %c0_i32_0 = arith.constant 0 : i32
    %c0_i32_1 = arith.constant 0 : i32
    return %c0_i32, %c0_i32_0 : i32, i32
  }
  func.func @transform_3(%arg0: i32) -> (i32, i32) {
    %c0_i32 = arith.constant 0 : i32
    %c0_i32_0 = arith.constant 0 : i32
    return %arg0, %c0_i32 : i32, i32
  }
}

</mosaic_0001>

<bundles_post_ra>
// kernel: tpu_custom_call.1
= control target key start
LH: loop header
LB: loop body
LE: loop exit
PB: predicated region body
PF: predicated region fallthrough
CT: control target
= control target key end

     0   :  { %8 = vsyncpa [#allocation3], 0  ;;  %s6796_s0 = inlined_call_operand.hbm [shape: f32[8,1024], index: 0, kind: input, shape index: {}]   ;;  %s6797_s1 = inlined_call_operand.hbm [shape: f32[128,1024], index: 1, kind: input, shape index: {}]   ;;  %s6798_s2 = inlined_call_operand.vmem [shape: f32[1,128], index: 2, kind: input, shape index: {}]   ;;  %s6799_s3 = inlined_call_operand.hbm [shape: f32[8,128], index: 3, kind: output, shape index: {}]  }
   0x1   :  { %9 = vsyncpa [#allocation6], 0 }
   0x2   :  { %10 = vsyncpa [#allocation4], 0  ;;  %s4552_s12 = smov [#allocation2]   ;;  %s4553_s14 = smov [#allocation5]  }
   0x3   :  { %s17_s13 = sshll.u32 %s4552_s12, 4  ;;  %s26_s15 = sshll.u32 %s4553_s14, 4  ;;  %s18_s13 = int_to_ptr.vmem [resolvable:$true] %s17_s13  ;;  %s4577_s15 = int_to_ptr.vmem [resolvable:$true] %s26_s15 }
   0x4   :  { %s4480_s18 = scalar_lea.hbm %s6796_s0, 1024 }
   0x5   :  { %p4481_p0 = scmp.ne.s32.totalorder %s6796_s0, %s4480_s18  ;;  %p4484_p1 = scmp.lt.u32.totalorder %s4480_s18, %s6796_s0 }
   0x7   :  { %p4486_p2 = pnand %p4484_p1, %p4481_p0 }
   0x9   :  { %4489 = shalt.err (!%p4486_p2)
}
   0xa   :  { %s4490_s23 = scalar_lea.vmem %s18_s13, 1024  ;;  %p4495_p4 = scmp.lt.s32.totalorder %s18_s13, %s18_s13 }
   0xb   :  { %p4491_p3 = scmp.ne.s32.totalorder %s18_s13, %s4490_s23  ;;  %p4496_p5 = scmp.lt.s32.totalorder %s4490_s23, %s4490_s23 }
   0xd   :  { %p4497_p6 = por %p4496_p5, %p4495_p4 }
   0xf   :  { %p4498_p7 = pnand %p4497_p6, %p4491_p3 }
  0x11   :  { %4501 = shalt.err (!%p4498_p7)
}
  0x12   :  { %20 = dma.hbm_to_vmem [thread:$0]  %s6796_s0, 1024, %s18_s13, [#allocation3]  }
  0x13   :  { %s4502_s28 = scalar_lea.hbm %s6797_s1, 16384 }
  0x14   :  { %p4503_p8 = scmp.ne.s32.totalorder %s6797_s1, %s4502_s28  ;;  %p4506_p9 = scmp.lt.u32.totalorder %s4502_s28, %s6797_s1 }
  0x16   :  { %p4508_p10 = pnand %p4506_p9, %p4503_p8 }
  0x18   :  { %4511 = shalt.err (!%p4508_p10)
}
  0x19   :  { %s4512_s6 = scalar_lea.vmem %s4577_s15, 16384  ;;  %p4517_p12 = scmp.lt.s32.totalorder %s4577_s15, %s4577_s15 }
  0x1a   :  { %p4513_p11 = scmp.ne.s32.totalorder %s4577_s15, %s4512_s6  ;;  %p4518_p13 = scmp.lt.s32.totalorder %s4512_s6, %s4512_s6 }
  0x1c   :  { %p4519_p0 = por %p4518_p13, %p4517_p12 }
  0x1e   :  { %p4520_p1 = pnand %p4519_p0, %p4513_p11 }
  0x20   :  { %4523 = shalt.err (!%p4520_p1)
}
  0x21   :  { %s4554_s0 = smov 1024   ;;  %s4555_s7 = smov 64  }
  0x22   :  { %32 = dma.hbm_to_vmem [thread:$0]  %s6797_s1, 16384, %s4577_s15, [#allocation6], %s4554_s0, %s4554_s0, %s4555_s7  }
  0x23   :  { %4546 = dma.done.wait [#allocation3], 1024  }
  0x24   :  { %4547 = vsyncadd [#allocation3], 4294966272 }
  0x25   :  { %4548 = dma.done.wait [#allocation6], 16384  }
  0x26   :  { %4549 = vsyncadd [#allocation6], 4294950912  ;;  %v4608_v0 = vld [vmem:[#allocation5 + $0x8] sm:$0xff]  ;;  %v4619_v7 = vld [vmem:[#allocation5] sm:$0xff]  ;;  %s4556_s11 = smov [#allocation7]  }
  0x27   :  { %v4610_v1 = vld [vmem:[#allocation5 + $0x48] sm:$0xff]  ;;  %v184_v3 = vand.u32 4294901760, %v4608_v0  ;;  %v4621_v8 = vld [vmem:[#allocation5 + $0x40] sm:$0xff]  ;;  %v6801_v10 = vand.u32 4294901760, %v4619_v7  ;;  %s3645_s12 = sshll.u32 %s4556_s11, 4  ;;  %s3646_s12 = int_to_ptr.vmem [resolvable:$true] %s3645_s12 }
  0x28   :  { %v4612_v2 = vld [vmem:[#allocation5 + $0x28] sm:$0xff]  ;;  %v188_v4 = vand.u32 4294901760, %v4610_v1  ;;  %v6800_v11 = vand.u32 4294901760, %v4621_v8  ;;  %v4626_v12 = vld [vmem:[#allocation5 + $0x20] sm:$0xff]  ;;  %s4524_s13 = scalar_lea.vmem %s3646_s12, 128  ;;  %p4529_p3 = scmp.lt.s32.totalorder %s3646_s12, %s3646_s12 }
  0x29   :  { %v4616_v5 = vld [vmem:[#allocation5 + $0x68] sm:$0xff]  ;;  %v1908_v6 = vand.u32 4294901760, %v4612_v2  ;;  %v4628_v13 = vld [vmem:[#allocation5 + $0x60] sm:$0xff]  ;;  %v1910_v22 = vand.u32 4294901760, %v4626_v12  ;;  %v4713_v62 = vsub.f32 %v4608_v0, %v184_v3  ;;  %p4525_p2 = scmp.ne.s32.totalorder %s3646_s12, %s4524_s13  ;;  %p4530_p4 = scmp.lt.s32.totalorder %s4524_s13, %s4524_s13 }
  0x2a   :  { %v1912_v9 = vand.u32 4294901760, %v4616_v5  ;;  %v4630_v14 = vld [vmem:[#allocation5 + $0x88] sm:$0xff]  ;;  %v4636_v15 = vpack.c.bf16 %v188_v4, %v184_v3  ;;  %v4654_v20 = vpack.c.bf16 %v6800_v11, %v6801_v10  ;;  %v4656_v21 = vld [vmem:[#allocation5 + $0x80] sm:$0xff]  ;;  %v1914_v23 = vand.u32 4294901760, %v4628_v13 }
  0x2b   :  { %v4638_v16 = vld [vmem:[#allocation5 + $0xc8] sm:$0xff]  ;;  %v192_v24 = vand.u32 4294901760, %v4630_v14  ;;  %v73_v28 = vld [vmem:[#allocation5 + $0xc0] sm:$0xff]  ;;  %v194_v32 = vand.u32 4294901760, %v4656_v21  ;;  %7222 = vst [vmem:[#allocation21_spill] sm:$0xff] %v4713_v62  ;;  %v4718_v63 = vsub.f32 %v4610_v1, %v188_v4  ;;  %v4723_v11 = vsub.f32 %v4612_v2, %v1908_v6  ;;  %p4531_p5 = por %p4530_p4, %p4529_p3 }
  0x2c   :  { %7212 = vst [vmem:[#allocation11_spill] sm:$0xff] %v4636_v15  ;;  %v4640_v17 = vld [vmem:[#allocation5 + $0xa8] sm:$0xff]  ;;  %v4648_v19 = vpack.c.bf16 %v1912_v9, %v1908_v6  ;;  %7214 = vst [vmem:[#allocation13_spill] sm:$0xff] %v4654_v20  ;;  %3658 = vmatprep.subr.bf16.mxu1 %v4636_v15  ;;  %v196_v25 = vand.u32 4294901760, %v4638_v16  ;;  %v4667_v29 = vld [vmem:[#allocation5 + $0xa0] sm:$0xff]  ;;  %v4671_v31 = vpack.c.bf16 %v1914_v23, %v1910_v22  ;;  %v198_v39 = vand.u32 4294901760, %v73_v28 }
  0x2d   :  { %v4642_v18 = vld [vmem:[#allocation5 + $0xe8] sm:$0xff]  ;;  %3660 = vmatpush1.bf16.xpose.msra.mxu1 %v4654_v20  ;;  %v1916_v26 = vand.u32 4294901760, %v4640_v17  ;;  %v4669_v30 = vld [vmem:[#allocation5 + $0xe0] sm:$0xff]  ;;  %v1918_v40 = vand.u32 4294901760, %v4667_v29  ;;  %v4728_v10 = vsub.f32 %v4616_v5, %v1912_v9  ;;  %v7224_v3 = vand.u32 4294901760, %v4621_v8  ;;  %p4532_p6 = pnand %p4531_p5, %p4525_p2 }
  0x2e   :  { %7213 = vst [vmem:[#allocation12_spill] sm:$0xff] %v4648_v19  ;;  %4042 = vmatprep.subr.bf16.mxu0 %v4648_v19  ;;  %v1920_v27 = vand.u32 4294901760, %v4642_v18  ;;  %7215 = vst [vmem:[#allocation14_spill] sm:$0xff] %v4671_v31  ;;  %v82_v33 = vld [vmem:[#allocation5 + $0x108] sm:$0xff]  ;;  %v4678_v36 = vpack.c.bf16 %v196_v25, %v192_v24  ;;  %v1922_v41 = vand.u32 4294901760, %v4669_v30  ;;  %v4691_v45 = vpack.c.bf16 %v198_v39, %v194_v32  ;;  %v81_v47 = vld [vmem:[#allocation5 + $0x100] sm:$0xff] }
  0x2f   :  { %v4674_v34 = vld [vmem:[#allocation5 + $0x148] sm:$0xff]  ;;  %4044 = vmatpush1.bf16.xpose.msra.mxu0 %v4671_v31  ;;  %v200_v42 = vand.u32 4294901760, %v82_v33  ;;  %v89_v48 = vld [vmem:[#allocation5 + $0x140] sm:$0xff]  ;;  %v202_v54 = vand.u32 4294901760, %v81_v47  ;;  %v4738_v1 = vsub.f32 %v4621_v8, %v7224_v3  ;;  %v4742_v6 = vsub.f32 %v4626_v12, %v1910_v22 }
  0x30   :  { %v4676_v35 = vld [vmem:[#allocation5 + $0x128] sm:$0xff]  ;;  %7216 = vst [vmem:[#allocation15_spill] sm:$0xff] %v4678_v36  ;;  %v4680_v37 = vpack.c.bf16 %v1920_v27, %v1916_v26  ;;  %3662 = vmatprep.subr.bf16.mxu1 %v4678_v36  ;;  %v204_v43 = vand.u32 4294901760, %v4674_v34  ;;  %7218 = vst [vmem:[#allocation17_spill] sm:$0xff] %v4691_v45  ;;  %v4700_v52 = vpack.c.bf16 %v1922_v41, %v1918_v40  ;;  %v206_v55 = vand.u32 4294901760, %v89_v48  ;;  %v85_v56 = vld [vmem:[#allocation5 + $0x120] sm:$0xff] }
  0x31   :  { %v4682_v38 = vld [vmem:[#allocation5 + $0x168] sm:$0xff]  ;;  %v1924_v44 = vand.u32 4294901760, %v4676_v35  ;;  %v93_v57 = vld [vmem:[#allocation5 + $0x160] sm:$0xff]  ;;  %v1926_v4 = vand.u32 4294901760, %v85_v56  ;;  %v4752_v8 = vsub.f32 %v4630_v14, %v192_v24  ;;  %v4755_v3 = vsub.f32 %v4638_v16, %v196_v25 }
  0x32   :  { %7217 = vst [vmem:[#allocation16_spill] sm:$0xff] %v4680_v37  ;;  %4046 = vmatprep.subr.bf16.mxu0 %v4680_v37  ;;  %v1928_v46 = vand.u32 4294901760, %v4682_v38  ;;  %v4694_v49 = vpack.c.bf16 %v204_v43, %v200_v42  ;;  %v4696_v50 = vld [vmem:[#allocation5 + $0x188] sm:$0xff]  ;;  %7220 = vst [vmem:[#allocation19_spill] sm:$0xff] %v4700_v52  ;;  %v1930_v2 = vand.u32 4294901760, %v93_v57  ;;  %v4745_v5 = vpack.c.bf16 %v206_v55, %v202_v54  ;;  %v97_v12 = vld [vmem:[#allocation5 + $0x180] sm:$0xff] }
  0x33   :  { %v4698_v51 = vld [vmem:[#allocation5 + $0x1c8] sm:$0xff]  ;;  %v208_v58 = vand.u32 4294901760, %v4696_v50  ;;  %7226 = vst [vmem:[#allocation23_spill] sm:$0xff] %v4755_v3  ;;  %v105_v22 = vld [vmem:[#allocation5 + $0x1c0] sm:$0xff]  ;;  %v4766_v37 = vsub.f32 %v4656_v21, %v194_v32  ;;  %v4771_v16 = vsub.f32 %v4667_v29, %v1918_v40  ;;  %v4774_v24 = vsub.f32 %v4669_v30, %v1922_v41 }
  0x34   :  { %7219 = vst [vmem:[#allocation18_spill] sm:$0xff] %v4694_v49  ;;  %v4703_v53 = vpack.c.bf16 %v1928_v46, %v1924_v44  ;;  %v212_v59 = vand.u32 4294901760, %v4698_v51  ;;  %v102_v60 = vld [vmem:[#allocation5 + $0x1a8] sm:$0xff]  ;;  %7225 = vst [vmem:[#allocation22_spill] sm:$0xff] %v4745_v5  ;;  %v4776_v25 = vsub.f32 %v82_v33, %v200_v42  ;;  %v109_v32 = vld [vmem:[#allocation5 + $0x1e0] sm:$0xff]  ;;  %v4787_v29 = vsub.f32 %v4676_v35, %v1924_v44 }
  0x35   :  { %3664 = vmatpush1.bf16.xpose.msra.mxu1 %v4691_v45  ;;  %v4708_v61 = vld [vmem:[#allocation5 + $0x1e8] sm:$0xff]  ;;  %v1932_v9 = vand.u32 4294901760, %v102_v60  ;;  %v4763_v45 = vsub.f32 %v4642_v18, %v1920_v27  ;;  %7230 = vst [vmem:[#allocation27_spill] sm:$0xff] %v4766_v37  ;;  %7232 = vst [vmem:[#allocation29_spill] sm:$0xff] %v4771_v16  ;;  %v4781_v18 = vsub.f32 %v4674_v34, %v204_v43  ;;  %v214_v27 = vand.u32 4294901760, %v105_v22  ;;  %v113_v31 = vld [vmem:[#allocation5 + $0x200] sm:$0xff] }
  0x36   :  { %7221 = vst [vmem:[#allocation20_spill] sm:$0xff] %v4703_v53  ;;  %3666 = vmatprep.subr.bf16.mxu1 %v4694_v49  ;;  %v7223_v49 = vand.u32 4294901760, %v4619_v7  ;;  %v114_v14 = vld [vmem:[#allocation5 + $0x208] sm:$0xff]  ;;  %7233 = vst [vmem:[#allocation30_spill] sm:$0xff] %v4774_v24  ;;  %v4790_v30 = vsub.f32 %v4682_v38, %v1928_v46  ;;  %v4793_v41 = vsub.f32 %v81_v47, %v202_v54  ;;  %v1938_v46 = vand.u32 4294901760, %v109_v32  ;;  %v117_v47 = vld [vmem:[#allocation5 + $0x220] sm:$0xff] }
  0x37   :  { %4048 = vmatpush1.bf16.xpose.msra.mxu0 %v4700_v52  ;;  %v4757_v52 = vpack.c.bf16 %v212_v59, %v208_v58  ;;  %7229 = vst [vmem:[#allocation26_spill] sm:$0xff] %v4763_v45  ;;  %7234 = vst [vmem:[#allocation31_spill] sm:$0xff] %v4776_v25  ;;  %v216_v33 = vand.u32 4294901760, %v114_v14  ;;  %v118_v34 = vld [vmem:[#allocation5 + $0x228] sm:$0xff]  ;;  %v4795_v42 = vsub.f32 %v89_v48, %v206_v55  ;;  %v125_v54 = vld [vmem:[#allocation5 + $0x260] sm:$0xff] }
  0x38   :  { %v4733_v0 = vsub.f32 %v4619_v7, %v7223_v49  ;;  %4050 = vmatprep.subr.bf16.mxu0 %v4703_v53  ;;  %v1936_v7 = vand.u32 4294901760, %v4708_v61  ;;  %v4749_v49 = vsub.f32 %v4628_v13, %v1914_v23  ;;  %v4760_v53 = vsub.f32 %v4640_v17, %v1916_v26  ;;  %v122_v23 = vld [vmem:[#allocation5 + $0x248] sm:$0xff]  ;;  %7236 = vst [vmem:[#allocation33_spill] sm:$0xff] %v4781_v18 }
  0x39   :  { %7227 = vst [vmem:[#allocation24_spill] sm:$0xff] %v4757_v52  ;;  %v4768_v13 = vsub.f32 %v73_v28, %v198_v39  ;;  %v4778_v17 = vpack.c.bf16 %v1930_v2, %v1926_v4  ;;  %v210_v26 = vand.u32 4294901760, %v97_v12  ;;  %v101_v28 = vld [vmem:[#allocation5 + $0x1a0] sm:$0xff]  ;;  %7238 = vst [vmem:[#allocation35_spill] sm:$0xff] %v4787_v29  ;;  %v220_v39 = vand.u32 4294901760, %v122_v23  ;;  %v126_v40 = vld [vmem:[#allocation5 + $0x268] sm:$0xff] }
  0x3a   :  { %7228 = vst [vmem:[#allocation25_spill] sm:$0xff] %v4760_v53  ;;  %v4784_v21 = vpack.c.bf16 %v1936_v7, %v1932_v9  ;;  %7239 = vst [vmem:[#allocation36_spill] sm:$0xff] %v4790_v30  ;;  %v4797_v43 = vsub.f32 %v85_v56, %v1926_v4  ;;  %v4803_v35 = vsub.f32 %v4696_v50, %v208_v58  ;;  %v1934_v44 = vand.u32 4294901760, %v101_v28  ;;  %v142_v20 = vld [vmem:[#allocation5 + $0x2e8] sm:$0xff] }
  0x3b   :  { %7231 = vst [vmem:[#allocation28_spill] sm:$0xff] %v4768_v13  ;;  %7235 = vst [vmem:[#allocation32_spill] sm:$0xff] %v4778_v17  ;;  %v4806_v38 = vsub.f32 %v4698_v51, %v212_v59  ;;  %v4809_v48 = vsub.f32 %v102_v60, %v1932_v9  ;;  %v4811_v55 = vpack.c.bf16 %v214_v27, %v210_v26  ;;  %v1940_v56 = vand.u32 4294901760, %v118_v34  ;;  %v130_v59 = vld [vmem:[#allocation5 + $0x288] sm:$0xff] }
  0x3c   :  { %7237 = vst [vmem:[#allocation34_spill] sm:$0xff] %v4784_v21  ;;  %7240 = vst [vmem:[#allocation37_spill] sm:$0xff] %v4793_v41  ;;  %v4814_v4 = vsub.f32 %v4708_v61, %v1936_v7  ;;  %v4816_v50 = vsub.f32 %v97_v12, %v210_v26  ;;  %v4818_v51 = vsub.f32 %v105_v22, %v214_v27  ;;  %v1946_v60 = vand.u32 4294901760, %v125_v54  ;;  %v134_v9 = vld [vmem:[#allocation5 + $0x2a8] sm:$0xff]  ;;  %v129_v12 = vld [vmem:[#allocation5 + $0x280] sm:$0xff] }
  0x3d   :  { %3668 = vmatpush1.bf16.xpose.msra.mxu1 %v4745_v5  ;;  %7241 = vst [vmem:[#allocation38_spill] sm:$0xff] %v4795_v42  ;;  %v4799_v5 = vsub.f32 %v93_v57, %v1930_v2  ;;  %7242 = vst [vmem:[#allocation39_spill] sm:$0xff] %v4803_v35  ;;  %v1944_v57 = vand.u32 4294901760, %v126_v40  ;;  %v4820_v58 = vpack.c.bf16 %v220_v39, %v216_v33  ;;  %v138_v2 = vld [vmem:[#allocation5 + $0x2c8] sm:$0xff]  ;;  %v224_v27 = vand.u32 4294901760, %v130_v59 }
  0x3e   :  { %3670 = vmatprep.subr.bf16.mxu1 %v4757_v52  ;;  %7243 = vst [vmem:[#allocation40_spill] sm:$0xff] %v4806_v38  ;;  %v121_v52 = vld [vmem:[#allocation5 + $0x240] sm:$0xff]  ;;  %7244 = vst [vmem:[#allocation41_spill] sm:$0xff] %v4809_v48  ;;  %v4822_v19 = vpack.c.bf16 %v1938_v46, %v1934_v44  ;;  %v4824_v15 = vsub.f32 %v101_v28, %v1934_v44  ;;  %v4826_v61 = vsub.f32 %v109_v32, %v1938_v46  ;;  %v146_v44 = vld [vmem:[#allocation5 + $0x308] sm:$0xff] }
  0x3f   :  { %4052 = vmatpush1.bf16.xpose.msra.mxu0 %v4778_v17  ;;  %7245 = vst [vmem:[#allocation42_spill] sm:$0xff] %v4811_v55  ;;  %7246 = vst [vmem:[#allocation43_spill] sm:$0xff] %v4814_v4  ;;  %v218_v17 = vand.u32 4294901760, %v113_v31  ;;  %v222_v36 = vand.u32 4294901760, %v121_v52  ;;  %v4828_v7 = vsub.f32 %v114_v14, %v216_v33  ;;  %v4831_v22 = vsub.f32 %v122_v23, %v220_v39  ;;  %v133_v4 = vld [vmem:[#allocation5 + $0x2a0] sm:$0xff] }
  0x40   :  { %4054 = vmatprep.subr.bf16.mxu0 %v4784_v21  ;;  %7247 = vst [vmem:[#allocation44_spill] sm:$0xff] %v4816_v50  ;;  %7248 = vst [vmem:[#allocation45_spill] sm:$0xff] %v4818_v51  ;;  %v1942_v21 = vand.u32 4294901760, %v117_v47  ;;  %v4833_v26 = vpack.c.bf16 %v1944_v57, %v1940_v56  ;;  %v228_v51 = vand.u32 4294901760, %v138_v2  ;;  %v137_v50 = vld [vmem:[#allocation5 + $0x2c0] sm:$0xff]  ;;  %v4836_v28 = vsub.f32 %v118_v34, %v1940_v56 }
  0x41   :  { %7249 = vst [vmem:[#allocation46_spill] sm:$0xff] %v4820_v58  ;;  %7250 = vst [vmem:[#allocation47_spill] sm:$0xff] %v4822_v19  ;;  %v141_v48 = vld [vmem:[#allocation5 + $0x2e0] sm:$0xff]  ;;  %v4838_v32 = vsub.f32 %v126_v40, %v1944_v57  ;;  %v1948_v14 = vand.u32 4294901760, %v134_v9  ;;  %v1952_v33 = vand.u32 4294901760, %v142_v20  ;;  %v4840_v46 = vpack.c.bf16 %v222_v36, %v218_v17 }
  0x42   :  { %7251 = vst [vmem:[#allocation48_spill] sm:$0xff] %v4824_v15  ;;  %7252 = vst [vmem:[#allocation49_spill] sm:$0xff] %v4826_v61  ;;  %v4842_v23 = vsub.f32 %v113_v31, %v218_v17  ;;  %v4844_v39 = vsub.f32 %v121_v52, %v222_v36  ;;  %v158_v61 = vld [vmem:[#allocation5 + $0x368] sm:$0xff]  ;;  %v226_v34 = vand.u32 4294901760, %v129_v12  ;;  %v230_v56 = vand.u32 4294901760, %v137_v50 }
  0x43   :  { %7253 = vst [vmem:[#allocation50_spill] sm:$0xff] %v4828_v7  ;;  %7254 = vst [vmem:[#allocation51_spill] sm:$0xff] %v4831_v22  ;;  %v154_v22 = vld [vmem:[#allocation5 + $0x348] sm:$0xff]  ;;  %v1950_v40 = vand.u32 4294901760, %v133_v4  ;;  %v1954_v57 = vand.u32 4294901760, %v141_v48  ;;  %v4854_v31 = vpack.c.bf16 %v228_v51, %v224_v27  ;;  %v4856_v36 = vsub.f32 %v130_v59, %v224_v27  ;;  %v149_v27 = vld [vmem:[#allocation5 + $0x320] sm:$0xff] }
  0x44   :  { %7255 = vst [vmem:[#allocation52_spill] sm:$0xff] %v4833_v26  ;;  %7256 = vst [vmem:[#allocation53_spill] sm:$0xff] %v4836_v28  ;;  %v150_v7 = vld [vmem:[#allocation5 + $0x328] sm:$0xff]  ;;  %v232_v52 = vand.u32 4294901760, %v146_v44  ;;  %v236_v17 = vand.u32 4294901760, %v154_v22  ;;  %v145_v28 = vld [vmem:[#allocation5 + $0x300] sm:$0xff]  ;;  %v4858_v15 = vsub.f32 %v138_v2, %v228_v51  ;;  %v4860_v38 = vpack.c.bf16 %v1952_v33, %v1948_v14 }
  0x45   :  { %3672 = vmatpush1.bf16.xpose.msra.mxu1 %v4811_v55  ;;  %7257 = vst [vmem:[#allocation54_spill] sm:$0xff] %v4838_v32  ;;  %7258 = vst [vmem:[#allocation55_spill] sm:$0xff] %v4840_v46  ;;  %v4846_v55 = vpack.c.bf16 %v1946_v60, %v1942_v21  ;;  %v4852_v32 = vsub.f32 %v125_v54, %v1946_v60  ;;  %v4862_v35 = vsub.f32 %v134_v9, %v1948_v14  ;;  %v157_v14 = vld [vmem:[#allocation5 + $0x360] sm:$0xff] }
  0x46   :  { %3674 = vmatprep.subr.bf16.mxu1 %v4820_v58  ;;  %7259 = vst [vmem:[#allocation56_spill] sm:$0xff] %v4842_v23  ;;  %7260 = vst [vmem:[#allocation57_spill] sm:$0xff] %v4844_v39  ;;  %v4850_v58 = vsub.f32 %v117_v47, %v1942_v21  ;;  %v1956_v39 = vand.u32 4294901760, %v150_v7  ;;  %v1960_v23 = vand.u32 4294901760, %v158_v61  ;;  %v4864_v21 = vsub.f32 %v142_v20, %v1952_v33  ;;  %v162_v33 = vld [vmem:[#allocation5 + $0x388] sm:$0xff] }
  0x47   :  { %7261 = vst [vmem:[#allocation58_spill] sm:$0xff] %v4846_v55  ;;  %4056 = vmatpush1.bf16.xpose.msra.mxu0 %v4822_v19  ;;  %7262 = vst [vmem:[#allocation59_spill] sm:$0xff] %v4854_v31  ;;  %v153_v19 = vld [vmem:[#allocation5 + $0x340] sm:$0xff]  ;;  %v4866_v47 = vpack.c.bf16 %v230_v56, %v226_v34  ;;  %v4868_v54 = vsub.f32 %v129_v12, %v226_v34  ;;  %v4870_v59 = vsub.f32 %v137_v50, %v230_v56 }
  0x48   :  { %4058 = vmatprep.subr.bf16.mxu0 %v4833_v26  ;;  %7263 = vst [vmem:[#allocation60_spill] sm:$0xff] %v4856_v36  ;;  %7264 = vst [vmem:[#allocation61_spill] sm:$0xff] %v4858_v15  ;;  %v4872_v60 = vpack.c.bf16 %v1954_v57, %v1950_v40  ;;  %v42_v26 = vld [vmem:[#allocation2 + $0x8] sm:$0xff]  ;;  %v4875_v51 = vsub.f32 %v133_v4, %v1950_v40  ;;  %v4877_v2 = vsub.f32 %v141_v48, %v1954_v57 }
  0x49   :  { %7265 = vst [vmem:[#allocation62_spill] sm:$0xff] %v4860_v38  ;;  %7266 = vst [vmem:[#allocation63_spill] sm:$0xff] %v4862_v35  ;;  %v46_v36 = vld [vmem:[#allocation2 + $0x28] sm:$0xff]  ;;  %v234_v9 = vand.u32 4294901760, %v145_v28  ;;  %v238_v20 = vand.u32 4294901760, %v153_v19  ;;  %v4880_v50 = vpack.c.bf16 %v236_v17, %v232_v52  ;;  %v4882_v12 = vsub.f32 %v146_v44, %v232_v52 }
  0x4a   :  { %7267 = vst [vmem:[#allocation64_spill] sm:$0xff] %v4864_v21  ;;  %7268 = vst [vmem:[#allocation65_spill] sm:$0xff] %v4866_v47  ;;  %v170_v21 = vld [vmem:[#allocation5 + $0x3c8] sm:$0xff]  ;;  %v4884_v34 = vsub.f32 %v154_v22, %v236_v17  ;;  %v4886_v56 = vpack.c.bf16 %v1960_v23, %v1956_v39  ;;  %v4892_v48 = vsub.f32 %v150_v7, %v1956_v39  ;;  %v4896_v57 = vand.u32 4294901760, %v42_v26  ;;  %v4938_v7 = vld [vmem:[#allocation5 + $0x3a0] sm:$0xff] }
  0x4b   :  { %7269 = vst [vmem:[#allocation66_spill] sm:$0xff] %v4868_v54  ;;  %7270 = vst [vmem:[#allocation67_spill] sm:$0xff] %v4870_v59  ;;  %v4890_v4 = vld [vmem:[#allocation5 + $0x3e8] sm:$0xff]  ;;  %v4894_v40 = vsub.f32 %v158_v61, %v1960_v23  ;;  %v1958_v44 = vand.u32 4294901760, %v149_v27  ;;  %v1962_v52 = vand.u32 4294901760, %v157_v14  ;;  %v240_v22 = vand.u32 4294901760, %v162_v33 }
  0x4c   :  { %7271 = vst [vmem:[#allocation68_spill] sm:$0xff] %v4872_v60  ;;  %7272 = vst [vmem:[#allocation69_spill] sm:$0xff] %v4875_v51  ;;  %v244_v17 = vand.u32 4294901760, %v170_v21  ;;  %v4907_v23 = vsub.f32 %v42_v26, %v4896_v57  ;;  %v4909_v39 = vsub.f32 %v145_v28, %v234_v9  ;;  %v4923_v26 = vsub.f32 %v153_v19, %v238_v20  ;;  %v4940_v19 = vld [vmem:[#allocation5 + $0x3e0] sm:$0xff] }
  0x4d   :  { %3676 = vmatpush1.bf16.xpose.msra.mxu1 %v4840_v46  ;;  %7273 = vst [vmem:[#allocation70_spill] sm:$0xff] %v4877_v2  ;;  %7274 = vst [vmem:[#allocation71_spill] sm:$0xff] %v4880_v50  ;;  %v4888_v46 = vld [vmem:[#allocation5 + $0x3a8] sm:$0xff]  ;;  %v4898_v2 = vand.u32 4294901760, %v46_v36  ;;  %v4925_v28 = vpack.c.bf16 %v1962_v52, %v1958_v44 }
  0x4e   :  { %3678 = vmatprep.subr.bf16.mxu1 %v4854_v31  ;;  %7275 = vst [vmem:[#allocation72_spill] sm:$0xff] %v4882_v12  ;;  %7276 = vst [vmem:[#allocation73_spill] sm:$0xff] %v4884_v34  ;;  %v41_v31 = vld [vmem:[#allocation2] sm:$0xff]  ;;  %v4902_v34 = vpack.c.bf16 %v238_v20, %v234_v9  ;;  %v4927_v9 = vsub.f32 %v149_v27, %v1958_v44  ;;  %v7292_v20 = vand.u32 4294901760, %v4907_v23  ;;  %v7293_v44 = vand.u32 4294901760, %v4713_v62 }
  0x4f   :  { %7277 = vst [vmem:[#allocation74_spill] sm:$0xff] %v4886_v56  ;;  %7278 = vst [vmem:[#allocation75_spill] sm:$0xff] %v4892_v48  ;;  %4060 = vmatpush1.bf16.xpose.msra.mxu0 %v4846_v55  ;;  %v4916_v12 = vsub.f32 %v46_v36, %v4898_v2  ;;  %v4921_v51 = vand.u32 4294901760, %v41_v31  ;;  %v4931_v36 = vsub.f32 %v157_v14, %v1962_v52  ;;  %v7294_v52 = vand.u32 4294901760, %v4718_v63 }
  0x50   :  { %7279 = vst [vmem:[#allocation76_spill] sm:$0xff] %v4894_v40  ;;  %7280 = vst [vmem:[#allocation77_spill] sm:$0xff] %v4896_v57  ;;  %4062 = vmatprep.subr.bf16.mxu0 %v4860_v38  ;;  %v4911_v40 = vld [vmem:[#allocation5 + $0x380] sm:$0xff]  ;;  %v4933_v48 = vpack.c.bf16 %v244_v17, %v240_v22  ;;  %v283_v27 = vsub.f32 %v4907_v23, %v7292_v20  ;;  %v299_v14 = vsub.f32 %v4713_v62, %v7293_v44 }
  0x51   :  { %7281 = vst [vmem:[#allocation78_spill] sm:$0xff] %v4898_v2  ;;  %7282 = vst [vmem:[#allocation79_spill] sm:$0xff] %v4902_v34  ;;  %v4935_v38 = vld [vmem:[#allocation5 + $0x3c0] sm:$0xff]  ;;  %v311_v55 = vsub.f32 %v4718_v63, %v7294_v52  ;;  %v7295_v61 = vand.u32 4294901760, %v4916_v12  ;;  %v7296_v20 = vand.u32 4294901760, %v4723_v11  ;;  %v4963_v62 = vsub.f32 %v41_v31, %v4921_v51 }
  0x52   :  { %7283 = vst [vmem:[#allocation80_spill] sm:$0xff] %v4907_v23  ;;  %7284 = vst [vmem:[#allocation81_spill] sm:$0xff] %v4909_v39  ;;  %v7297_v23 = vand.u32 4294901760, %v4728_v10  ;;  %v7301_v31 = vand.u32 4294901760, %v4890_v4  ;;  %v300_v52 = vand.u32 4294901760, %v299_v14 }
  0x53   :  { %7285 = vst [vmem:[#allocation82_spill] sm:$0xff] %v4916_v12  ;;  %7286 = vst [vmem:[#allocation83_spill] sm:$0xff] %v4921_v51 }
  0x54   :  { %7287 = vst [vmem:[#allocation84_spill] sm:$0xff] %v4923_v26  ;;  %7288 = vst [vmem:[#allocation85_spill] sm:$0xff] %v4925_v28  ;;  %v284_v26 = vand.u32 4294901760, %v283_v27  ;;  %v2035_v44 = vsub.f32 %v4728_v10, %v7297_v23  ;;  %v7300_v23 = vand.u32 4294901760, %v4888_v46 }
  0x55   :  { %7289 = vst [vmem:[#allocation86_spill] sm:$0xff] %v4927_v9  ;;  %3680 = vmatpush1.bf16.xpose.msra.mxu1 %v4866_v47  ;;  %7290 = vst [vmem:[#allocation87_spill] sm:$0xff] %v4931_v36  ;;  %v2007_v47 = vsub.f32 %v4916_v12, %v7295_v61  ;;  %v45_v9 = vld [vmem:[#allocation2 + $0x20] sm:$0xff]  ;;  %v4970_v12 = vsub.f32 %v162_v33, %v240_v22  ;;  %v312_v61 = vand.u32 4294901760, %v311_v55  ;;  %v7308_v55 = vand.u32 4294901760, %v4938_v7 }
  0x56   :  { %7291 = vst [vmem:[#allocation88_spill] sm:$0xff] %v4933_v48  ;;  %3682 = vmatprep.subr.bf16.mxu1 %v4880_v50  ;;  %v2023_v50 = vsub.f32 %v4723_v11, %v7296_v20  ;;  %7298 = vst [vmem:[#allocation89_spill] sm:$0xff] %v4963_v62  ;;  %v4972_v20 = vsub.f32 %v170_v21, %v244_v17  ;;  %v4978_v51 = vpack.c.bf16 %v7301_v31, %v7300_v23 }
  0x57   :  { %4064 = vmatpush1.bf16.xpose.msra.mxu0 %v4872_v60  ;;  %v2008_v27 = vand.u32 4294901760, %v2007_v47  ;;  %285 = vmatprep.mubr.f32.mxu1 %v284_v26  ;;  %v4980_v60 = vand.u32 4294901760, %v45_v9  ;;  %v7304_v47 = vand.u32 4294901760, %v4733_v0  ;;  %v2036_v22 = vand.u32 4294901760, %v2035_v44 }
  0x58   :  { %4066 = vmatprep.subr.bf16.mxu0 %v4886_v56  ;;  %7299 = vst [vmem:[#allocation90_spill] sm:$0xff] %v4972_v20  ;;  %7302 = vst [vmem:[#allocation91_spill] sm:$0xff] %v4978_v51  ;;  %v2024_v33 = vand.u32 4294901760, %v2023_v50  ;;  %v7305_v26 = vand.u32 4294901760, %v4911_v40  ;;  %v7306_v31 = vand.u32 4294901760, %v4935_v38  ;;  %v3689_v17 = vpack.c.bf16 %v312_v61, %v300_v52 }
  0x59   :  { %7303 = vst [vmem:[#allocation92_spill] sm:$0xff] %v4980_v60  ;;  %2009 = vmatprep.mubr.f32.mxu0 %v2008_v27  ;;  %v4985_v36 = vsub.f32 %v4733_v0, %v7304_v47  ;;  %v7309_v27 = vand.u32 4294901760, %v4940_v19  ;;  %v5006_v44 = vsub.f32 %v45_v9, %v4980_v60  ;;  %v7313_v9 = vand.u32 4294901760, %v4963_v62 }
  0x5a   :  { %v4994_v14 = vpack.c.bf16 %v7306_v31, %v7305_v26  ;;  %v7314_v31 = vand.u32 4294901760, %v4742_v6  ;;  %v7315_v52 = vand.u32 4294901760, %v4749_v49  ;;  %v7318_v50 = vand.u32 4294901760, %v4760_v53 }
  0x5b   :  { %v5000_v47 = vpack.c.bf16 %v7309_v27, %v7308_v55  ;;  %7311 = vst [vmem:[#allocation95_spill] sm:$0xff] %v5006_v44  ;;  %v7312_v55 = vand.u32 4294901760, %v4738_v1  ;;  %v289_v23 = vsub.f32 %v4963_v62, %v7313_v9  ;;  %v306_v26 = vand.u32 4294901760, %v4985_v36 }
  0x5c   :  { %7307 = vst [vmem:[#allocation93_spill] sm:$0xff] %v4994_v14  ;;  %v2041_v61 = vsub.f32 %v4749_v49, %v7315_v52  ;;  %v2047_v52 = vsub.f32 %v4760_v53, %v7318_v50 }
  0x5d   :  { %7310 = vst [vmem:[#allocation94_spill] sm:$0xff] %v5000_v47  ;;  %3684 = vmatpush1.bf16.xpose.msra.mxu1 %v4902_v34  ;;  %v317_v27 = vsub.f32 %v4738_v1, %v7312_v55  ;;  %v4073_v34 = vpack.c.bf16 %v2036_v22, %v2024_v33  ;;  %v7316_v55 = vand.u32 4294901760, %v4752_v8  ;;  %v7320_v22 = vand.u32 4294901760, %v4766_v37 }
  0x5e   :  { %3686 = vmatprep.subr.bf16.mxu1 %v4933_v48  ;;  %v2029_v48 = vsub.f32 %v4742_v6, %v7314_v31  ;;  %v7317_v31 = vand.u32 4294901760, %v4755_v3  ;;  %v2048_v50 = vand.u32 4294901760, %v2047_v52 }
  0x5f   :  { %4068 = vmatpush1.bf16.xpose.msra.mxu0 %v4925_v28  ;;  %v323_v33 = vsub.f32 %v4752_v8, %v7316_v55  ;;  %v7319_v28 = vand.u32 4294901760, %v4763_v45  ;;  %v318_v56 = vand.u32 4294901760, %v317_v27  ;;  %v329_v9 = vsub.f32 %v4766_v37, %v7320_v22 }
  0x60   :  { %4070 = vmatprep.subr.bf16.mxu0 %v4978_v51  ;;  %v335_v21 = vsub.f32 %v4755_v3, %v7317_v31  ;;  %v7321_v51 = vand.u32 4294901760, %v4768_v13  ;;  %v2030_v31 = vand.u32 4294901760, %v2029_v48  ;;  %v2042_v3 = vand.u32 4294901760, %v2041_v61 }
  0x61   :  { %v2059_v55 = vsub.f32 %v4763_v45, %v7319_v28  ;;  %v324_v28 = vand.u32 4294901760, %v323_v33  ;;  %v7322_v27 = vand.u32 4294901760, %v4771_v16  ;;  %v7323_v22 = vand.u32 4294901760, %v4774_v24 }
  0x62   :  { %v341_v36 = vsub.f32 %v4768_v13, %v7321_v51  ;;  %v7324_v51 = vand.u32 4294901760, %v5006_v44  ;;  %v336_v60 = vand.u32 4294901760, %v335_v21  ;;  %v7325_v61 = vand.u32 4294901760, %v4888_v46 }
  0x63   :  { %v2053_v45 = vsub.f32 %v4771_v16, %v7322_v27  ;;  %v2065_v37 = vsub.f32 %v4774_v24, %v7323_v22  ;;  %v2060_v62 = vand.u32 4294901760, %v2059_v55  ;;  %v330_v27 = vand.u32 4294901760, %v329_v9 }
  0x64   :  { %v2013_v48 = vsub.f32 %v5006_v44, %v7324_v51  ;;  %v5067_v33 = vsub.f32 %v4888_v46, %v7325_v61  ;;  %v342_v53 = vand.u32 4294901760, %v341_v36  ;;  %v7327_v16 = vand.u32 4294901760, %v4776_v25 }
  0x65   :  { %3688 = vmatpush1.bf16.xpose.msra.mxu1 %v4994_v14  ;;  %v7328_v14 = vand.u32 4294901760, %v4890_v4  ;;  %v7330_v21 = vand.u32 4294901760, %v4781_v18  ;;  %v7331_v55 = vand.u32 4294901760, %v4787_v29  ;;  %v3691_v36 = vpack.c.bf16 %v318_v56, %v306_v26 }
  0x66   :  { %7326 = vst [vmem:[#allocation96_spill] sm:$0xff] %v5067_v33  ;;  %3690 = vmatprep.subr.bf16.mxu1 %v3689_v17  ;;  %v347_v22 = vsub.f32 %v4776_v25, %v7327_v16  ;;  %v7332_v17 = vand.u32 4294901760, %v4790_v30  ;;  %v290_v16 = vand.u32 4294901760, %v289_v23  ;;  %v2054_v51 = vand.u32 4294901760, %v2053_v45  ;;  %v7333_v45 = vld [vmem:[#allocation39_spill] sm:$0xff] }
  0x67   :  { %v5075_v24 = vsub.f32 %v4890_v4, %v7328_v14  ;;  %v359_v52 = vsub.f32 %v4781_v18, %v7330_v21  ;;  %v2071_v46 = vsub.f32 %v4787_v29, %v7331_v55  ;;  %4072 = vmatpush1.bf16.xpose.msra.mxu0 %v5000_v47  ;;  %v2066_v61 = vand.u32 4294901760, %v2065_v37  ;;  %v7336_v23 = vld [vmem:[#allocation43_spill] sm:$0xff] }
  0x68   :  { %v2083_v9 = vsub.f32 %v4790_v30, %v7332_v17  ;;  %4074 = vmatprep.subr.bf16.mxu0 %v4073_v34  ;;  %v2014_v4 = vand.u32 4294901760, %v2013_v48  ;;  %v4075_v14 = vpack.c.bf16 %v2042_v3, %v2030_v31  ;;  %v3693_v44 = vpack.c.bf16 %v336_v60, %v324_v28  ;;  %v7334_v3 = vld [vmem:[#allocation40_spill] sm:$0xff]  ;;  %v7338_v28 = vld [vmem:[#allocation45_spill] sm:$0xff]  ;;  %v7410_v30 = vld [vmem:[#allocation75_spill] sm:$0xff] }
  0x69   :  { %7329 = vst [vmem:[#allocation97_spill] sm:$0xff] %v5075_v24  ;;  %v4077_v25 = vpack.c.bf16 %v2060_v62, %v2048_v50  ;;  %v3695_v21 = vpack.c.bf16 %v342_v53, %v330_v27  ;;  %v348_v18 = vand.u32 4294901760, %v347_v22  ;;  %v6926_v13 = vand.u32 4294901760, %v4793_v41  ;;  %v7335_v53 = vld [vmem:[#allocation41_spill] sm:$0xff]  ;;  %v7337_v31 = vld [vmem:[#allocation44_spill] sm:$0xff] }
  0x6a   :  { %v6927_v55 = vand.u32 4294901760, %v4795_v42  ;;  %v360_v29 = vand.u32 4294901760, %v359_v52  ;;  %v2072_v24 = vand.u32 4294901760, %v2071_v46  ;;  %v2084_v17 = vand.u32 4294901760, %v2083_v9  ;;  %v7339_v52 = vld [vmem:[#allocation48_spill] sm:$0xff]  ;;  %v7340_v9 = vld [vmem:[#allocation49_spill] sm:$0xff] }
  0x6b   :  { %v6929_v47 = vand.u32 4294901760, %v4797_v43  ;;  %v4079_v56 = vpack.c.bf16 %v2066_v61, %v2054_v51  ;;  %v6928_v37 = vand.u32 4294901760, %v4799_v5  ;;  %v6932_v34 = vand.u32 4294901760, %v7333_v45 }
  0x6c   :  { %291 = vmatmul.mubr.f32.vlgmr.msra.gmra.mrb[0].mxu1 %v290_v16  ;;  %v6931_v60 = vand.u32 4294901760, %v7334_v3  ;;  %v6930_v62 = vand.u32 4294901760, %v7335_v53  ;;  %v6933_v26 = vand.u32 4294901760, %v7336_v23  ;;  %v6936_v50 = vand.u32 4294901760, %v7337_v31 }
  0x6d   :  { %3692 = vmatpush1.bf16.xpose.msra.mxu1 %v3691_v36  ;;  %521 = vmatprep.mubr.f32.mxu1 %v4896_v57  ;;  %v353_v27 = vsub.f32 %v4793_v41, %v6926_v13  ;;  %v365_v22 = vsub.f32 %v4795_v42, %v6927_v55  ;;  %v6941_v46 = vand.u32 4294901760, %v7339_v52  ;;  %v6944_v16 = vand.u32 4294901760, %v7340_v9 }
  0x6e   :  { %3694 = vmatprep.subr.bf16.mxu1 %v3693_v44  ;;  %2015 = vmatmul.mubr.f32.vlgmr.msra.gmra.mrb[0].mxu0 %v2014_v4  ;;  %v3697_v36 = vpack.c.bf16 %v360_v29, %v348_v18  ;;  %v4081_v51 = vpack.c.bf16 %v2084_v17, %v2072_v24  ;;  %v2077_v61 = vsub.f32 %v4797_v43, %v6929_v47  ;;  %v7341_v44 = vld [vmem:[#allocation50_spill] sm:$0xff]  ;;  %v7342_v24 = vld [vmem:[#allocation51_spill] sm:$0xff] }
  0x6f   :  { %4076 = vmatpush1.bf16.xpose.msra.mxu0 %v4075_v14  ;;  %v2089_v13 = vsub.f32 %v4799_v5, %v6928_v37  ;;  %v371_v55 = vsub.f32 %v7333_v45, %v6932_v34  ;;  %v383_v18 = vsub.f32 %v7334_v3, %v6931_v60  ;;  %2245 = vmatprep.mubr.f32.mxu0 %v4898_v2  ;;  %v7343_v37 = vand.u32 4294901760, %v7338_v28  ;;  %v7344_v60 = vld [vmem:[#allocation53_spill] sm:$0xff]  ;;  %v7345_v29 = vld [vmem:[#allocation54_spill] sm:$0xff] }
  0x70   :  { %4078 = vmatprep.subr.bf16.mxu0 %v4077_v25  ;;  %v2095_v4 = vsub.f32 %v7335_v53, %v6930_v62  ;;  %v2107_v14 = vsub.f32 %v7336_v23, %v6933_v26  ;;  %v377_v17 = vsub.f32 %v7337_v31, %v6936_v50  ;;  %v2101_v25 = vsub.f32 %v7339_v52, %v6941_v46 }
  0x71   :  { %v389_v47 = vsub.f32 %v7338_v28, %v7343_v37  ;;  %v2113_v62 = vsub.f32 %v7340_v9, %v6944_v16  ;;  %v354_v48 = vand.u32 4294901760, %v353_v27  ;;  %v366_v2 = vand.u32 4294901760, %v365_v22 }
  0x72   :  { %v7346_v50 = vand.u32 4294901760, %v7341_v44  ;;  %v7347_v37 = vand.u32 4294901760, %v7342_v24  ;;  %v2078_v31 = vand.u32 4294901760, %v2077_v61  ;;  %v2090_v46 = vand.u32 4294901760, %v2089_v13 }
  0x73   :  { %v372_v52 = vand.u32 4294901760, %v371_v55  ;;  %v384_v23 = vand.u32 4294901760, %v383_v18  ;;  %v2096_v16 = vand.u32 4294901760, %v2095_v4  ;;  %v2108_v9 = vand.u32 4294901760, %v2107_v14  ;;  %v7350_v55 = vld [vmem:[#allocation56_spill] sm:$0xff] }
  0x74   :  { %v395_v57 = vsub.f32 %v7341_v44, %v7346_v50  ;;  %v407_v28 = vsub.f32 %v7342_v24, %v7347_v37  ;;  %v378_v34 = vand.u32 4294901760, %v377_v17  ;;  %v390_v53 = vand.u32 4294901760, %v389_v47  ;;  %v7408_v24 = vld [vmem:[#allocation72_spill] sm:$0xff] }
  0x75   :  { %3696 = vmatpush1.bf16.xpose.msra.mxu1 %v3695_v21  ;;  %v2102_v27 = vand.u32 4294901760, %v2101_v25  ;;  %v2114_v22 = vand.u32 4294901760, %v2113_v62  ;;  %v7348_v26 = vand.u32 4294901760, %v7344_v60  ;;  %v7349_v44 = vand.u32 4294901760, %v7345_v29  ;;  %v7351_v21 = vld [vmem:[#allocation57_spill] sm:$0xff] }
  0x76   :  { %3698 = vmatprep.subr.bf16.mxu1 %v3697_v36  ;;  %v396_v61 = vand.u32 4294901760, %v395_v57  ;;  %v408_v13 = vand.u32 4294901760, %v407_v28  ;;  %v7352_v14 = vand.u32 4294901760, %v4911_v40  ;;  %v7353_v62 = vand.u32 4294901760, %v4935_v38 }
  0x77   :  { %v2119_v50 = vsub.f32 %v7344_v60, %v7348_v26  ;;  %v2131_v37 = vsub.f32 %v7345_v29, %v7349_v44  ;;  %v7355_v26 = vand.u32 4294901760, %v4938_v7  ;;  %4080 = vmatpush1.bf16.xpose.msra.mxu0 %v4079_v56  ;;  %v6950_v57 = vand.u32 4294901760, %v4850_v58 }
  0x78   :  { %v5158_v47 = vsub.f32 %v4911_v40, %v7352_v14  ;;  %v5163_v36 = vsub.f32 %v4935_v38, %v7353_v62  ;;  %4082 = vmatprep.subr.bf16.mxu0 %v4081_v51  ;;  %v3699_v28 = vpack.c.bf16 %v366_v2, %v354_v48  ;;  %v4083_v17 = vpack.c.bf16 %v2090_v46, %v2078_v31  ;;  %v7360_v48 = vld [vmem:[#allocation64_spill] sm:$0xff]  ;;  %v7365_v31 = vld [vmem:[#allocation75_spill] sm:$0xff] }
  0x79   :  { %v5168_v44 = vsub.f32 %v4938_v7, %v7355_v26  ;;  %v3701_v25 = vpack.c.bf16 %v384_v23, %v372_v52  ;;  %v4085_v4 = vpack.c.bf16 %v2108_v9, %v2096_v16  ;;  %v3703_v40 = vpack.c.bf16 %v390_v53, %v378_v34  ;;  %v7359_v23 = vld [vmem:[#allocation60_spill] sm:$0xff]  ;;  %v7361_v16 = vld [vmem:[#allocation69_spill] sm:$0xff] }
  0x7a   :  { %7354 = vst [vmem:[#allocation39_spill] sm:$0xff] %v5163_v36  ;;  %v4087_v14 = vpack.c.bf16 %v2114_v22, %v2102_v27  ;;  %v2120_v18 = vand.u32 4294901760, %v2119_v50  ;;  %v2132_v29 = vand.u32 4294901760, %v2131_v37  ;;  %v3705_v60 = vpack.c.bf16 %v408_v13, %v396_v61  ;;  %v7362_v22 = vld [vmem:[#allocation70_spill] sm:$0xff]  ;;  %v7363_v37 = vld [vmem:[#allocation72_spill] sm:$0xff]  ;;  %v7364_v13 = vld [vmem:[#allocation73_spill] sm:$0xff] }
  0x7b   :  { %7356 = vst [vmem:[#allocation40_spill] sm:$0xff] %v5168_v44  ;;  %v7357_v38 = vand.u32 4294901760, %v7350_v55  ;;  %v7358_v7 = vand.u32 4294901760, %v7351_v21  ;;  %v6951_v26 = vand.u32 4294901760, %v4852_v32  ;;  %v2125_v2 = vsub.f32 %v4850_v58, %v6950_v57  ;;  %v7366_v53 = vld [vmem:[#allocation76_spill] sm:$0xff] }
  0x7c   :  { %v6952_v34 = vand.u32 4294901760, %v7359_v23  ;;  %v6953_v46 = vand.u32 4294901760, %v4868_v54  ;;  %v6956_v51 = vand.u32 4294901760, %v7361_v16  ;;  %v4089_v27 = vpack.c.bf16 %v2132_v29, %v2120_v18 }
  0x7d   :  { %v401_v62 = vsub.f32 %v7350_v55, %v7357_v38  ;;  %v413_v56 = vsub.f32 %v7351_v21, %v7358_v7  ;;  %3700 = vmatpush1.bf16.xpose.msra.mxu1 %v3699_v28  ;;  %v6958_v50 = vand.u32 4294901760, %v7362_v22  ;;  %v6964_v61 = vand.u32 4294901760, %v7363_v37 }
  0x7e   :  { %3702 = vmatprep.subr.bf16.mxu1 %v3701_v25  ;;  %v2137_v9 = vsub.f32 %v4852_v32, %v6951_v26  ;;  %v419_v29 = vsub.f32 %v7359_v23, %v6952_v34  ;;  %v7367_v18 = vand.u32 4294901760, %v4858_v15  ;;  %v7369_v52 = vand.u32 4294901760, %v7360_v48 }
  0x7f   :  { %v402_v7 = vand.u32 4294901760, %v401_v62  ;;  %v414_v57 = vand.u32 4294901760, %v413_v56  ;;  %4084 = vmatpush1.bf16.xpose.msra.mxu0 %v4083_v17  ;;  %v7368_v62 = vand.u32 4294901760, %v4862_v35  ;;  %v425_v26 = vsub.f32 %v4868_v54, %v6953_v46 }
  0x80   :  { %v431_v25 = vsub.f32 %v4858_v15, %v7367_v18  ;;  %4086 = vmatprep.subr.bf16.mxu0 %v4085_v4  ;;  %v2155_v17 = vsub.f32 %v7360_v48, %v7369_v52  ;;  %v7370_v28 = vand.u32 4294901760, %v4870_v59  ;;  %v2149_v18 = vsub.f32 %v7361_v16, %v6956_v51  ;;  %v7374_v16 = vld [vmem:[#allocation84_spill] sm:$0xff]  ;;  %v7375_v15 = vld [vmem:[#allocation86_spill] sm:$0xff] }
  0x81   :  { %v2143_v56 = vsub.f32 %v4862_v35, %v7368_v62  ;;  %v2126_v38 = vand.u32 4294901760, %v2125_v2  ;;  %v2161_v4 = vsub.f32 %v7362_v22, %v6958_v50  ;;  %v443_v52 = vsub.f32 %v7363_v37, %v6964_v61 }
  0x82   :  { %v437_v34 = vsub.f32 %v4870_v59, %v7370_v28  ;;  %v7371_v62 = vand.u32 4294901760, %v7364_v13  ;;  %v7372_v44 = vand.u32 4294901760, %v7365_v31  ;;  %v7373_v36 = vand.u32 4294901760, %v7366_v53 }
  0x83   :  { %v6980_v51 = vand.u32 4294901760, %v4909_v39  ;;  %v6979_v50 = vand.u32 4294901760, %v7374_v16  ;;  %v2138_v22 = vand.u32 4294901760, %v2137_v9  ;;  %v420_v59 = vand.u32 4294901760, %v419_v29  ;;  %v7378_v29 = vld [vmem:[#allocation87_spill] sm:$0xff] }
  0x84   :  { %v455_v46 = vsub.f32 %v7364_v13, %v7371_v62  ;;  %v2167_v28 = vsub.f32 %v7365_v31, %v7372_v44  ;;  %v2179_v2 = vsub.f32 %v7366_v53, %v7373_v36  ;;  %v432_v54 = vand.u32 4294901760, %v431_v25 }
  0x85   :  { %v2144_v61 = vand.u32 4294901760, %v2143_v56  ;;  %3704 = vmatpush1.bf16.xpose.msra.mxu1 %v3703_v40  ;;  %v2156_v37 = vand.u32 4294901760, %v2155_v17  ;;  %v426_v48 = vand.u32 4294901760, %v425_v26  ;;  %v438_v62 = vand.u32 4294901760, %v437_v34 }
  0x86   :  { %v2150_v13 = vand.u32 4294901760, %v2149_v18  ;;  %3706 = vmatprep.subr.bf16.mxu1 %v3705_v60  ;;  %v2162_v35 = vand.u32 4294901760, %v2161_v4  ;;  %v444_v44 = vand.u32 4294901760, %v443_v52  ;;  %v456_v31 = vand.u32 4294901760, %v455_v46 }
  0x87   :  { %v6976_v23 = vand.u32 4294901760, %v7375_v15  ;;  %v2168_v36 = vand.u32 4294901760, %v2167_v28  ;;  %v2180_v53 = vand.u32 4294901760, %v2179_v2  ;;  %v5238_v9 = vsub.f32 %v4909_v39, %v6980_v51  ;;  %4088 = vmatpush1.bf16.xpose.msra.mxu0 %v4087_v14  ;;  %v7389_v51 = vld [vmem:[#allocation33_spill] sm:$0xff] }
  0x88   :  { %v5243_v40 = vsub.f32 %v7374_v16, %v6979_v50  ;;  %v7376_v26 = vand.u32 4294901760, %v4940_v19  ;;  %v3707_v34 = vpack.c.bf16 %v414_v57, %v402_v7  ;;  %v4091_v46 = vpack.c.bf16 %v2138_v22, %v2126_v38  ;;  %4090 = vmatprep.subr.bf16.mxu0 %v4089_v27  ;;  %v7379_v27 = vld [vmem:[#allocation21_spill] sm:$0xff]  ;;  %v7388_v50 = vld [vmem:[#allocation31_spill] sm:$0xff]  ;;  %v7404_v38 = vld [vmem:[#allocation66_spill] sm:$0xff] }
  0x89   :  { %v6975_v25 = vand.u32 4294901760, %v7378_v29  ;;  %v3709_v56 = vpack.c.bf16 %v432_v54, %v420_v59  ;;  %v4093_v17 = vpack.c.bf16 %v2156_v37, %v2144_v61  ;;  %v6977_v18 = vand.u32 4294901760, %v4970_v12  ;;  %v7381_v7 = vld [vmem:[#allocation97_spill] sm:$0xff]  ;;  %v7400_v61 = vld [vmem:[#allocation60_spill] sm:$0xff]  ;;  %v7402_v54 = vld [vmem:[#allocation63_spill] sm:$0xff] }
  0x8a   :  { %v5248_v60 = vsub.f32 %v4940_v19, %v7376_v26  ;;  %v6978_v4 = vand.u32 4294901760, %v4972_v20  ;;  %v3711_v52 = vpack.c.bf16 %v438_v62, %v426_v48  ;;  %v4095_v28 = vpack.c.bf16 %v2162_v35, %v2150_v13  ;;  %v7380_v13 = vld [vmem:[#allocation23_spill] sm:$0xff]  ;;  %v7403_v62 = vld [vmem:[#allocation64_spill] sm:$0xff] }
  0x8b   :  { %v3713_v2 = vpack.c.bf16 %v456_v31, %v444_v44  ;;  %v5256_v19 = vsub.f32 %v7375_v15, %v6976_v23  ;;  %v4097_v14 = vpack.c.bf16 %v2180_v53, %v2168_v36  ;;  %v450_v57 = vand.u32 4294901760, %v5238_v9  ;;  %v7382_v36 = vld [vmem:[#allocation25_spill] sm:$0xff]  ;;  %v7383_v9 = vld [vmem:[#allocation26_spill] sm:$0xff]  ;;  %v7384_v26 = vld [vmem:[#allocation27_spill] sm:$0xff] }
  0x8c   :  { %7377 = vst [vmem:[#allocation84_spill] sm:$0xff] %v5248_v60  ;;  %v462_v22 = vand.u32 4294901760, %v5243_v40  ;;  %v2185_v59 = vsub.f32 %v7378_v29, %v6975_v25  ;;  %v6985_v35 = vand.u32 4294901760, %v5067_v33  ;;  %v467_v53 = vsub.f32 %v4970_v12, %v6977_v18  ;;  %v7387_v18 = vld [vmem:[#allocation30_spill] sm:$0xff]  ;;  %v7409_v23 = vld [vmem:[#allocation73_spill] sm:$0xff]  ;;  %v7411_v25 = vld [vmem:[#allocation76_spill] sm:$0xff] }
  0x8d   :  { %3708 = vmatpush1.bf16.xpose.msra.mxu1 %v3707_v34  ;;  %v479_v37 = vsub.f32 %v4972_v20, %v6978_v4  ;;  %v7385_v34 = vld [vmem:[#allocation28_spill] sm:$0xff]  ;;  %v7412_v41 = vand.u32 4294901760, %v7381_v7  ;;  %v2174_v44 = vand.u32 4294901760, %v5256_v19  ;;  %v7415_v55 = vand.u32 4294901760, %v5158_v47 }
  0x8e   :  { %3710 = vmatprep.subr.bf16.mxu1 %v3709_v56  ;;  %v2191_v40 = vsub.f32 %v5067_v33, %v6985_v35  ;;  %v7413_v56 = vld [vmem:[#allocation39_spill] sm:$0xff]  ;;  %v7414_v4 = vld [vmem:[#allocation40_spill] sm:$0xff]  ;;  %v468_v31 = vand.u32 4294901760, %v467_v53  ;;  %v3715_v48 = vpack.c.bf16 %v462_v22, %v450_v57 }
  0x8f   :  { %4092 = vmatpush1.bf16.xpose.msra.mxu0 %v4091_v46  ;;  %v7405_v46 = vld [vmem:[#allocation67_spill] sm:$0xff]  ;;  %v2203_v35 = vsub.f32 %v7381_v7, %v7412_v41  ;;  %v480_v15 = vand.u32 4294901760, %v479_v37  ;;  %v6998_v33 = vand.u32 4294901760, %v7414_v4  ;;  %v6997_v41 = vand.u32 4294901760, %v5248_v60 }
  0x90   :  { %4094 = vmatprep.subr.bf16.mxu0 %v4093_v17  ;;  %v7401_v17 = vld [vmem:[#allocation61_spill] sm:$0xff]  ;;  %v2192_v42 = vand.u32 4294901760, %v2191_v40  ;;  %v473_v29 = vsub.f32 %v5158_v47, %v7415_v55 }
  0x91   :  { %v2204_v7 = vand.u32 4294901760, %v2203_v35  ;;  %v3717_v37 = vpack.c.bf16 %v480_v15, %v468_v31  ;;  %v7417_v31 = vpack.c.bf16 %v4718_v63, %v7379_v27 }
  0x92   :  { %v474_v22 = vand.u32 4294901760, %v473_v29  ;;  %v7420_v29 = vpack.c.bf16 %v4738_v1, %v4733_v0 }
  0x93   :  { %v4101_v57 = vpack.c.bf16 %v2204_v7, %v2192_v42  ;;  %v7419_v42 = vld [vmem:[#allocation83_spill] sm:$0xff]  ;;  %v7422_v7 = vpack.c.bf16 %v7380_v13, %v4752_v8 }
  0x95   :  { %3712 = vmatpush1.bf16.xpose.msra.mxu1 %v3711_v52  ;;  %v2186_v52 = vand.u32 4294901760, %v2185_v59 }
  0x96   :  { %3714 = vmatprep.subr.bf16.mxu1 %v3713_v2  ;;  %v7416_v2 = vand.u32 4294901760, %v7413_v56 }
  0x97   :  { %4096 = vmatpush1.bf16.xpose.msra.mxu0 %v4095_v28  ;;  %v4099_v19 = vpack.c.bf16 %v2186_v52, %v2174_v44  ;;  %v2197_v28 = vsub.f32 %v7414_v4, %v6998_v33  ;;  %v7418_v44 = vpack.c.bf16 %v4728_v10, %v4723_v11  ;;  %v7423_v52 = vld [vmem:[#allocation92_spill] sm:$0xff] }
  0x98   :  { %4098 = vmatprep.subr.bf16.mxu0 %v4097_v14  ;;  %v485_v53 = vsub.f32 %v7413_v56, %v7416_v2  ;;  %v2209_v14 = vsub.f32 %v5248_v60, %v6997_v41  ;;  %v7424_v2 = vpack.c.bf16 %v4749_v49, %v4742_v6  ;;  %v7449_v33 = vld [vmem:[#allocation48_spill] sm:$0xff] }
  0x99   :  { %v2198_v55 = vand.u32 4294901760, %v2197_v28  ;;  %v7428_v28 = vpack.c.bf16 %v7389_v51, %v7388_v50 }
  0x9a   :  { %v486_v59 = vand.u32 4294901760, %v485_v53  ;;  %v2210_v35 = vand.u32 4294901760, %v2209_v14  ;;  %v7425_v53 = vld [vmem:[#allocation82_spill] sm:$0xff]  ;;  %v7429_v14 = vld [vmem:[#allocation29_spill] sm:$0xff] }
  0x9c   :  { %v3719_v40 = vpack.c.bf16 %v486_v59, %v474_v22  ;;  %v4103_v15 = vpack.c.bf16 %v2210_v35, %v2198_v55  ;;  %v7431_v22 = vld [vmem:[#allocation36_spill] sm:$0xff]  ;;  %v7432_v59 = vld [vmem:[#allocation35_spill] sm:$0xff]  ;;  %v7434_v35 = vld [vmem:[#allocation38_spill] sm:$0xff] }
  0x9d   :  { %3716 = vmatpush1.bf16.xpose.msra.mxu1 %v3715_v48  ;;  %v7421_v48 = vld [vmem:[#allocation80_spill] sm:$0xff]  ;;  %v7433_v55 = vpack.c.bf16 %v7431_v22, %v7432_v59 }
  0x9e   :  { %3718 = vmatprep.subr.bf16.mxu1 %v3717_v37  ;;  %v7426_v37 = vpack.c.bf16 %v7383_v9, %v7382_v36 }
  0x9f   :  { %4100 = vmatpush1.bf16.xpose.msra.mxu0 %v4099_v19  ;;  %v7427_v19 = vpack.c.bf16 %v7385_v34, %v7384_v26 }
  0xa0   :  { %4102 = vmatprep.subr.bf16.mxu0 %v4101_v57  ;;  %v7430_v57 = vpack.c.bf16 %v7387_v18, %v7429_v14 }
  0xa5   :  { %3720 = vmatpush1.bf16.xpose.msra.mxu1 %v3719_v40  ;;  %v7435_v40 = vld [vmem:[#allocation37_spill] sm:$0xff] }
  0xa6   :  { %3722 = vmatprep.subr.bf16.mxu1 %v7417_v31  ;;  %v7437_v31 = vpack.c.bf16 %v7334_v3, %v7333_v45 }
  0xa7   :  { %4104 = vmatpush1.bf16.xpose.msra.mxu0 %v4103_v15  ;;  %v7436_v15 = vpack.c.bf16 %v7434_v35, %v7435_v40 }
  0xa8   :  { %4106 = vmatprep.subr.bf16.mxu0 %v7418_v44  ;;  %v7438_v44 = vpack.c.bf16 %v4799_v5, %v4797_v43 }
  0xac   :  { %523 = vmatmul.mubr.f32.vlgmr.msra.gmra.mrb[0].mxu1 %v7419_v42 }
  0xad   :  { %3724 = vmatpush1.bf16.xpose.msra.mxu1 %v7420_v29  ;;  %658 = vmatprep.mubr.f32.mxu1 %v7421_v48  ;;  %v7439_v29 = vld [vmem:[#allocation43_spill] sm:$0xff] }
  0xae   :  { %3726 = vmatprep.subr.bf16.mxu1 %v7422_v7  ;;  %2247 = vmatmul.mubr.f32.vlgmr.msra.gmra.mrb[0].mxu0 %v7423_v52  ;;  %v7440_v7 = vld [vmem:[#allocation41_spill] sm:$0xff] }
  0xaf   :  { %4108 = vmatpush1.bf16.xpose.msra.mxu0 %v7424_v2  ;;  %2382 = vmatprep.mubr.f32.mxu0 %v7425_v53  ;;  %v7441_v2 = vpack.c.bf16 %v7439_v29, %v7440_v7  ;;  %v7452_v52 = vld [vmem:[#allocation53_spill] sm:$0xff] }
  0xb0   :  { %4110 = vmatprep.subr.bf16.mxu0 %v7426_v37  ;;  %v7442_v37 = vld [vmem:[#allocation45_spill] sm:$0xff] }
  0xb5   :  { %3728 = vmatpush1.bf16.xpose.msra.mxu1 %v7427_v19  ;;  %v7443_v19 = vld [vmem:[#allocation44_spill] sm:$0xff] }
  0xb6   :  { %3730 = vmatprep.subr.bf16.mxu1 %v7428_v28  ;;  %v7444_v28 = vpack.c.bf16 %v7442_v37, %v7443_v19 }
  0xb7   :  { %4112 = vmatpush1.bf16.xpose.msra.mxu0 %v7430_v57  ;;  %v7445_v57 = vld [vmem:[#allocation51_spill] sm:$0xff] }
  0xb8   :  { %4114 = vmatprep.subr.bf16.mxu0 %v7433_v55  ;;  %v7446_v55 = vld [vmem:[#allocation50_spill] sm:$0xff] }
  0xb9   :  { %v7447_v41 = vpack.c.bf16 %v7445_v57, %v7446_v55 }
  0xbd   :  { %3732 = vmatpush1.bf16.xpose.msra.mxu1 %v7436_v15  ;;  %v7448_v15 = vld [vmem:[#allocation49_spill] sm:$0xff] }
  0xbe   :  { %3734 = vmatprep.subr.bf16.mxu1 %v7437_v31  ;;  %v7450_v39 = vpack.c.bf16 %v7448_v15, %v7449_v33  ;;  %v7451_v31 = vld [vmem:[#allocation54_spill] sm:$0xff] }
  0xbf   :  { %4116 = vmatpush1.bf16.xpose.msra.mxu0 %v7438_v44  ;;  %v7453_v42 = vpack.c.bf16 %v7451_v31, %v7452_v52  ;;  %v7454_v44 = vld [vmem:[#allocation56_spill] sm:$0xff] }
  0xc0   :  { %4118 = vmatprep.subr.bf16.mxu0 %v7441_v2  ;;  %v7455_v29 = vpack.c.bf16 %v7351_v21, %v7454_v44  ;;  %v7456_v2 = vpack.c.bf16 %v7401_v17, %v7400_v61  ;;  %v7462_v21 = vld [vmem:[#allocation69_spill] sm:$0xff] }
  0xc5   :  { %3736 = vmatpush1.bf16.xpose.msra.mxu1 %v7444_v28  ;;  %v7457_v28 = vpack.c.bf16 %v4852_v32, %v4850_v58 }
  0xc6   :  { %3738 = vmatprep.subr.bf16.mxu1 %v7447_v41  ;;  %v7458_v41 = vpack.c.bf16 %v7403_v62, %v7402_v54 }
  0xc7   :  { %4120 = vmatpush1.bf16.xpose.msra.mxu0 %v7450_v39  ;;  %v7459_v39 = vpack.c.bf16 %v7405_v46, %v7404_v38  ;;  %v7469_v46 = vld [vmem:[#allocation86_spill] sm:$0xff] }
  0xc8   :  { %4122 = vmatprep.subr.bf16.mxu0 %v7453_v42  ;;  %v7460_v42 = vpack.c.bf16 %v7409_v23, %v7408_v24  ;;  %v7472_v24 = vld [vmem:[#allocation96_spill] sm:$0xff] }
  0xcd   :  { %3740 = vmatpush1.bf16.xpose.msra.mxu1 %v7455_v29  ;;  %v7461_v29 = vld [vmem:[#allocation70_spill] sm:$0xff] }
  0xce   :  { %3742 = vmatprep.subr.bf16.mxu1 %v7456_v2  ;;  %v7463_v17 = vpack.c.bf16 %v7461_v29, %v7462_v21  ;;  %v7464_v2 = vpack.c.bf16 %v7411_v25, %v7410_v30 }
  0xcf   :  { %4124 = vmatpush1.bf16.xpose.msra.mxu0 %v7457_v28  ;;  %v7465_v28 = vld [vmem:[#allocation81_spill] sm:$0xff] }
  0xd0   :  { %4126 = vmatprep.subr.bf16.mxu0 %v7458_v41  ;;  %v7466_v62 = vpack.c.bf16 %v7374_v16, %v7465_v28  ;;  %v7467_v41 = vpack.c.bf16 %v4972_v20, %v4970_v12  ;;  %v7477_v20 = vld [vmem:[#allocation12_spill] sm:$0xff] }
  0xd5   :  { %3744 = vmatpush1.bf16.xpose.msra.mxu1 %v7459_v39  ;;  %v7468_v39 = vld [vmem:[#allocation87_spill] sm:$0xff] }
  0xd6   :  { %3746 = vmatprep.subr.bf16.mxu1 %v7460_v42  ;;  %v7470_v23 = vpack.c.bf16 %v7468_v39, %v7469_v46  ;;  %v7471_v42 = vld [vmem:[#allocation97_spill] sm:$0xff] }
  0xd7   :  { %4128 = vmatpush1.bf16.xpose.msra.mxu0 %v7463_v17  ;;  %v7473_v29 = vpack.c.bf16 %v7471_v42, %v7472_v24  ;;  %v7474_v17 = vpack.c.bf16 %v7413_v56, %v5158_v47  ;;  %v7479_v39 = vld [vmem:[#allocation13_spill] sm:$0xff]  ;;  %v7482_v42 = vld [vmem:[#allocation95_spill] sm:$0xff] }
  0xd8   :  { %4130 = vmatprep.subr.bf16.mxu0 %v7464_v2  ;;  %v7475_v2 = vld [vmem:[#allocation11_spill] sm:$0xff] }
  0xdd   :  { %3748 = vmatpush1.bf16.xpose.msra.mxu1 %v7466_v62  ;;  %v7476_v62 = vpack.c.bf16 %v5248_v60, %v7414_v4  ;;  %v7485_v60 = vld [vmem:[#allocation16_spill] sm:$0xff]  ;;  %v7488_v4 = vld [vmem:[#allocation19_spill] sm:$0xff] }
  0xde   :  { %3750 = vmatprep.subr.bf16.mxu1 %v7467_v41  ;;  %v7478_v41 = vld [vmem:[#allocation89_spill] sm:$0xff] }
  0xdf   :  { %4132 = vmatpush1.bf16.xpose.msra.mxu0 %v7470_v23  ;;  %v7480_v23 = vand.u32 4294901760, %v7421_v48  ;;  %v7490_v48 = vld [vmem:[#allocation22_spill] sm:$0xff] }
  0xe0   :  { %4134 = vmatprep.subr.bf16.mxu0 %v7473_v29  ;;  %v7481_v29 = vld [vmem:[#allocation15_spill] sm:$0xff] }
  0xe5   :  { %3752 = vmatpush1.bf16.xpose.msra.mxu1 %v7474_v17  ;;  %v7483_v17 = vld [vmem:[#allocation14_spill] sm:$0xff] }
  0xe6   :  { %3754 = vmatprep.subr.bf16.mxu1 %v7475_v2  ;;  %v7484_v2 = vand.u32 4294901760, %v7425_v53  ;;  %v7494_v53 = vld [vmem:[#allocation42_spill] sm:$0xff] }
  0xe7   :  { %4136 = vmatpush1.bf16.xpose.msra.mxu0 %v7476_v62  ;;  %v7486_v62 = vld [vmem:[#allocation17_spill] sm:$0xff] }
  0xe8   :  { %4138 = vmatprep.subr.bf16.mxu0 %v7477_v20  ;;  %v7487_v20 = vld [vmem:[#allocation18_spill] sm:$0xff] }
  0xec   :  { %661 = vmatmul.mubr.f32.vlgmr.msra.gmra.mrb[0].mxu1 %v7478_v41 }
  0xed   :  { %3756 = vmatpush1.bf16.xpose.msra.mxu1 %v7479_v39  ;;  %765 = vmatprep.mubr.f32.mxu1 %v7480_v23  ;;  %v7489_v39 = vld [vmem:[#allocation20_spill] sm:$0xff] }
  0xee   :  { %3758 = vmatprep.subr.bf16.mxu1 %v7481_v29  ;;  %2385 = vmatmul.mubr.f32.vlgmr.msra.gmra.mrb[0].mxu0 %v7482_v42  ;;  %v7491_v23 = vld [vmem:[#allocation24_spill] sm:$0xff] }
  0xef   :  { %4140 = vmatpush1.bf16.xpose.msra.mxu0 %v7483_v17  ;;  %2489 = vmatprep.mubr.f32.mxu0 %v7484_v2  ;;  %v7492_v29 = vld [vmem:[#allocation32_spill] sm:$0xff]  ;;  %v7493_v17 = vld [vmem:[#allocation34_spill] sm:$0xff] }
  0xf0   :  { %4142 = vmatprep.subr.bf16.mxu0 %v7485_v60  ;;  %v7495_v2 = vld [vmem:[#allocation46_spill] sm:$0xff]  ;;  %v7496_v60 = vld [vmem:[#allocation47_spill] sm:$0xff] }
  0xf5   :  { %3760 = vmatpush1.bf16.xpose.msra.mxu1 %v7486_v62  ;;  %v7497_v62 = vld [vmem:[#allocation52_spill] sm:$0xff] }
  0xf6   :  { %3762 = vmatprep.subr.bf16.mxu1 %v7487_v20  ;;  %v7498_v20 = vld [vmem:[#allocation55_spill] sm:$0xff] }
  0xf7   :  { %4144 = vmatpush1.bf16.xpose.msra.mxu0 %v7488_v4  ;;  %v7499_v4 = vld [vmem:[#allocation59_spill] sm:$0xff] }
  0xf8   :  { %4146 = vmatprep.subr.bf16.mxu0 %v7489_v39  ;;  %v7500_v39 = vld [vmem:[#allocation58_spill] sm:$0xff] }
  0xfd   :  { %3764 = vmatpush1.bf16.xpose.msra.mxu1 %v7490_v48  ;;  %v7501_v48 = vld [vmem:[#allocation62_spill] sm:$0xff] }
  0xfe   :  { %3766 = vmatprep.subr.bf16.mxu1 %v7491_v23  ;;  %v7502_v23 = vld [vmem:[#allocation65_spill] sm:$0xff] }
  0xff   :  { %4148 = vmatpush1.bf16.xpose.msra.mxu0 %v7492_v29  ;;  %v7503_v29 = vld [vmem:[#allocation71_spill] sm:$0xff] }
 0x100   :  { %4150 = vmatprep.subr.bf16.mxu0 %v7493_v17  ;;  %v7504_v17 = vld [vmem:[#allocation68_spill] sm:$0xff] }
 0x105   :  { %3768 = vmatpush1.bf16.xpose.msra.mxu1 %v7494_v53  ;;  %v7505_v53 = vld [vmem:[#allocation74_spill] sm:$0xff] }
 0x106   :  { %3770 = vmatprep.subr.bf16.mxu1 %v7495_v2  ;;  %v7506_v2 = vld [vmem:[#allocation79_spill] sm:$0xff] }
 0x107   :  { %4152 = vmatpush1.bf16.xpose.msra.mxu0 %v7496_v60  ;;  %v7507_v60 = vld [vmem:[#allocation88_spill] sm:$0xff] }
 0x108   :  { %4154 = vmatprep.subr.bf16.mxu0 %v7497_v62  ;;  %v7508_v62 = vld [vmem:[#allocation85_spill] sm:$0xff] }
 0x10d   :  { %3772 = vmatpush1.bf16.xpose.msra.mxu1 %v7498_v20  ;;  %v7509_v20 = vld [vmem:[#allocation91_spill] sm:$0xff] }
 0x10e   :  { %3774 = vmatprep.subr.bf16.mxu1 %v7499_v4 }
 0x10f   :  { %4156 = vmatpush1.bf16.xpose.msra.mxu0 %v7500_v39  ;;  %v7510_v39 = vand.u32 4294901760, %v7379_v27  ;;  %v7518_v27 = vand.u32 4294901760, %v4752_v8  ;;  %v7526_v8 = vand.u32 4294901760, %v7482_v42 }
 0x110   :  { %4158 = vmatprep.subr.bf16.mxu0 %v7501_v48  ;;  %v7511_v48 = vand.u32 4294901760, %v4718_v63  ;;  %v7519_v63 = vand.u32 4294901760, %v7380_v13  ;;  %v7527_v13 = vld [vmem:[#allocation78_spill] sm:$0xff] }
 0x112   :  { %v3785_v4 = vpack.c.bf16 %v7511_v48, %v7510_v39  ;;  %v3789_v39 = vpack.c.bf16 %v7519_v63, %v7518_v27  ;;  %v7520_v48 = vand.u32 4294901760, %v7478_v41  ;;  %v7535_v27 = vand.u32 4294901760, %v7431_v22 }
 0x113   :  { %v7542_v22 = vand.u32 4294901760, %v7440_v7  ;;  %v7550_v7 = vand.u32 4294901760, %v7448_v15 }
 0x115   :  { %3776 = vmatpush1.bf16.xpose.msra.mxu1 %v7502_v23  ;;  %v7512_v23 = vld [vmem:[#allocation93_spill] sm:$0xff] }
 0x116   :  { %3778 = vmatprep.subr.bf16.mxu1 %v7503_v29  ;;  %v7513_v29 = vand.u32 4294901760, %v4723_v11  ;;  %v7522_v11 = vand.u32 4294901760, %v4749_v49  ;;  %v7529_v49 = vand.u32 4294901760, %v7385_v34  ;;  %v7538_v34 = vand.u32 4294901760, %v7333_v45 }
 0x117   :  { %4160 = vmatpush1.bf16.xpose.msra.mxu0 %v7504_v17  ;;  %v7514_v17 = vand.u32 4294901760, %v4728_v10  ;;  %v7521_v10 = vand.u32 4294901760, %v4742_v6  ;;  %v7528_v6 = vand.u32 4294901760, %v7384_v26  ;;  %v7536_v26 = vand.u32 4294901760, %v7435_v40 }
 0x118   :  { %4162 = vmatprep.subr.bf16.mxu0 %v7505_v53  ;;  %v7546_v45 = vand.u32 4294901760, %v7442_v37  ;;  %v7547_v40 = vand.u32 4294901760, %v7446_v55  ;;  %v7553_v37 = vand.u32 4294901760, %v7454_v44  ;;  %v7564_v44 = vand.u32 4294901760, %v7404_v38 }
 0x119   :  { %v4169_v53 = vpack.c.bf16 %v7514_v17, %v7513_v29  ;;  %v7523_v29 = vand.u32 4294901760, %v7382_v36  ;;  %v7530_v36 = vand.u32 4294901760, %v7388_v50  ;;  %v7532_v17 = vand.u32 4294901760, %v7429_v14 }
 0x11a   :  { %v7537_v50 = vand.u32 4294901760, %v7434_v35  ;;  %v7539_v14 = vand.u32 4294901760, %v7334_v3  ;;  %v7545_v35 = vand.u32 4294901760, %v7443_v19  ;;  %v7554_v19 = vld [vmem:[#allocation57_spill] sm:$0xff]  ;;  %v7576_v38 = vand.u32 4294901760, %v7465_v28 }
 0x11b   :  { %v7555_v55 = vand.u32 4294901760, %v7554_v19  ;;  %v7600_v19 = vld [vmem:[#allocation16_spill] sm:$0xff] }
 0x11c   :  { %v3799_v3 = vpack.c.bf16 %v7546_v45, %v7545_v35  ;;  %v7582_v35 = vld [vmem:[#allocation87_spill] sm:$0xff] }
 0x11d   :  { %3780 = vmatpush1.bf16.xpose.msra.mxu1 %v7506_v2  ;;  %v7515_v2 = vld [vmem:[#allocation94_spill] sm:$0xff] }
 0x11e   :  { %3782 = vmatprep.subr.bf16.mxu1 %v7507_v60 }
 0x11f   :  { %4164 = vmatpush1.bf16.xpose.msra.mxu0 %v7508_v62  ;;  %v7516_v62 = vand.u32 4294901760, %v4733_v0  ;;  %v7524_v0 = vand.u32 4294901760, %v7383_v9  ;;  %v7531_v9 = vand.u32 4294901760, %v7389_v51  ;;  %v3795_v51 = vpack.c.bf16 %v7537_v50, %v7536_v26 }
 0x120   :  { %4166 = vmatprep.subr.bf16.mxu0 %v7509_v20  ;;  %v7517_v20 = vand.u32 4294901760, %v4738_v1  ;;  %v7571_v50 = vand.u32 4294901760, %v7462_v21  ;;  %v7579_v21 = vld [vmem:[#allocation90_spill] sm:$0xff] }
 0x121   :  { %v4173_v1 = vpack.c.bf16 %v7524_v0, %v7523_v29  ;;  %v3793_v41 = vpack.c.bf16 %v7531_v9, %v7530_v36  ;;  %v7549_v29 = vand.u32 4294901760, %v7449_v33  ;;  %v7557_v33 = vld [vmem:[#allocation61_spill] sm:$0xff]  ;;  %v7559_v36 = vand.u32 4294901760, %v4850_v58 }
 0x122   :  { %v3787_v60 = vpack.c.bf16 %v7517_v20, %v7516_v62  ;;  %v7525_v20 = vld [vmem:[#allocation77_spill] sm:$0xff]  ;;  %v7533_v62 = vand.u32 4294901760, %v7387_v18  ;;  %v3797_v18 = vpack.c.bf16 %v7539_v14, %v7538_v34  ;;  %v7574_v14 = vand.u32 4294901760, %v7410_v30 }
 0x123   :  { %v4183_v0 = vpack.c.bf16 %v7550_v7, %v7549_v29  ;;  %v7569_v58 = vld [vmem:[#allocation73_spill] sm:$0xff]  ;;  %v7583_v30 = vand.u32 4294901760, %v7582_v35 }
 0x124   :  { %v4175_v42 = vpack.c.bf16 %v7533_v62, %v7532_v17  ;;  %v7570_v26 = vand.u32 4294901760, %v7569_v58 }
 0x125   :  { %3784 = vmatpush1.bf16.xpose.msra.mxu1 %v7512_v23 }
 0x126   :  { %3786 = vmatprep.subr.bf16.mxu1 %v3785_v4  ;;  %v4171_v4 = vpack.c.bf16 %v7522_v11, %v7521_v10  ;;  %v7543_v10 = vld [vmem:[#allocation43_spill] sm:$0xff] }
 0x127   :  { %4168 = vmatpush1.bf16.xpose.msra.mxu0 %v7515_v2  ;;  %v7544_v11 = vand.u32 4294901760, %v7543_v10  ;;  %v7580_v10 = vand.u32 4294901760, %v7579_v21  ;;  %v7628_v21 = vld [vmem:[#allocation91_spill] sm:$0xff] }
 0x128   :  { %4170 = vmatprep.subr.bf16.mxu0 %v4169_v53  ;;  %v7534_v53 = vand.u32 4294901760, %v7432_v59  ;;  %v7541_v59 = vand.u32 4294901760, %v4799_v5 }
 0x12a   :  { %v4177_v63 = vpack.c.bf16 %v7535_v27, %v7534_v53  ;;  %v7567_v27 = vld [vmem:[#allocation72_spill] sm:$0xff] }
 0x12c   :  { %769 = vmatmul.mubr.f32.vlgmr.msra.gmra.mrb[0].mxu1 %v7520_v48 }
 0x12d   :  { %3788 = vmatpush1.bf16.xpose.msra.mxu1 %v3787_v60  ;;  %935 = vmatprep.mubr.f32.mxu1 %v7525_v20  ;;  %v3791_v60 = vpack.c.bf16 %v7529_v49, %v7528_v6  ;;  %v7556_v49 = vand.u32 4294901760, %v7400_v61  ;;  %v7565_v61 = vld [vmem:[#allocation67_spill] sm:$0xff] }
 0x12e   :  { %3790 = vmatprep.subr.bf16.mxu1 %v3789_v39  ;;  %2493 = vmatmul.mubr.f32.vlgmr.msra.gmra.mrb[0].mxu0 %v7526_v8  ;;  %v7540_v39 = vand.u32 4294901760, %v4797_v43  ;;  %v7548_v43 = vand.u32 4294901760, %v7445_v57  ;;  %v7552_v8 = vand.u32 4294901760, %v7451_v31  ;;  %v3803_v57 = vpack.c.bf16 %v7555_v55, %v7553_v37  ;;  %v7599_v37 = vld [vmem:[#allocation14_spill] sm:$0xff]  ;;  %v7601_v55 = vld [vmem:[#allocation17_spill] sm:$0xff] }
 0x12f   :  { %4172 = vmatpush1.bf16.xpose.msra.mxu0 %v4171_v4  ;;  %2659 = vmatprep.mubr.f32.mxu0 %v7527_v13  ;;  %v4181_v4 = vpack.c.bf16 %v7544_v11, %v7542_v22  ;;  %v7561_v31 = vand.u32 4294901760, %v7402_v54  ;;  %v7578_v22 = vand.u32 4294901760, %v4970_v12  ;;  %v7588_v12 = vand.u32 4294901760, %v7413_v56  ;;  %v7598_v56 = vld [vmem:[#allocation92_spill] sm:$0xff] }
 0x130   :  { %4174 = vmatprep.subr.bf16.mxu0 %v4173_v1  ;;  %v4179_v48 = vpack.c.bf16 %v7541_v59, %v7540_v39  ;;  %v3801_v5 = vpack.c.bf16 %v7548_v43, %v7547_v40  ;;  %v7551_v1 = vand.u32 4294901760, %v7452_v52  ;;  %v7560_v52 = vand.u32 4294901760, %v4852_v32 }
 0x131   :  { %v7577_v59 = vand.u32 4294901760, %v7374_v16  ;;  %v3813_v11 = vpack.c.bf16 %v7580_v10, %v7578_v22  ;;  %v7587_v16 = vand.u32 4294901760, %v5158_v47  ;;  %v7597_v47 = vld [vmem:[#allocation15_spill] sm:$0xff] }
 0x132   :  { %v4185_v6 = vpack.c.bf16 %v7552_v8, %v7551_v1  ;;  %v4187_v9 = vpack.c.bf16 %v7560_v52, %v7559_v36  ;;  %v7593_v1 = vld [vmem:[#allocation11_spill] sm:$0xff]  ;;  %v7608_v36 = vld [vmem:[#allocation34_spill] sm:$0xff] }
 0x133   :  { %v3815_v28 = vpack.c.bf16 %v7588_v12, %v7587_v16  ;;  %v7595_v8 = vld [vmem:[#allocation83_spill] sm:$0xff]  ;;  %v7609_v52 = vld [vmem:[#allocation42_spill] sm:$0xff] }
 0x135   :  { %3792 = vmatpush1.bf16.xpose.msra.mxu1 %v3791_v60  ;;  %v7558_v60 = vand.u32 4294901760, %v7557_v33  ;;  %v7604_v33 = vld [vmem:[#allocation20_spill] sm:$0xff] }
 0x136   :  { %3794 = vmatprep.subr.bf16.mxu1 %v3793_v41  ;;  %v7562_v41 = vld [vmem:[#allocation64_spill] sm:$0xff] }
 0x137   :  { %4176 = vmatpush1.bf16.xpose.msra.mxu0 %v4175_v42  ;;  %v3805_v15 = vpack.c.bf16 %v7558_v60, %v7556_v49  ;;  %v7563_v17 = vand.u32 4294901760, %v7562_v41  ;;  %v7566_v42 = vand.u32 4294901760, %v7565_v61  ;;  %v7603_v49 = vld [vmem:[#allocation19_spill] sm:$0xff]  ;;  %v7605_v60 = vld [vmem:[#allocation22_spill] sm:$0xff]  ;;  %v7617_v61 = vld [vmem:[#allocation65_spill] sm:$0xff] }
 0x138   :  { %4178 = vmatprep.subr.bf16.mxu0 %v4177_v63  ;;  %v7568_v63 = vand.u32 4294901760, %v7567_v27  ;;  %v7613_v41 = vld [vmem:[#allocation55_spill] sm:$0xff]  ;;  %v7619_v27 = vld [vmem:[#allocation68_spill] sm:$0xff] }
 0x139   :  { %v4189_v62 = vpack.c.bf16 %v7563_v17, %v7561_v31  ;;  %v3807_v53 = vpack.c.bf16 %v7566_v42, %v7564_v44  ;;  %v7612_v31 = vld [vmem:[#allocation52_spill] sm:$0xff]  ;;  %v7614_v17 = vld [vmem:[#allocation59_spill] sm:$0xff]  ;;  %v7616_v44 = vld [vmem:[#allocation62_spill] sm:$0xff] }
 0x13a   :  { %v3809_v32 = vpack.c.bf16 %v7570_v26, %v7568_v63  ;;  %v7618_v42 = vld [vmem:[#allocation71_spill] sm:$0xff]  ;;  %v7620_v63 = vld [vmem:[#allocation74_spill] sm:$0xff]  ;;  %v48_v26 = vld [vmem:[#allocation2 + $0x38] sm:$0xff] }
 0x13d   :  { %3796 = vmatpush1.bf16.xpose.msra.mxu1 %v3795_v51  ;;  %v7572_v51 = vld [vmem:[#allocation70_spill] sm:$0xff] }
 0x13e   :  { %3798 = vmatprep.subr.bf16.mxu1 %v3797_v18  ;;  %v7573_v54 = vand.u32 4294901760, %v7572_v51  ;;  %v7575_v18 = vand.u32 4294901760, %v7411_v25  ;;  %v7584_v25 = vand.u32 4294901760, %v7472_v24  ;;  %v7594_v24 = vld [vmem:[#allocation12_spill] sm:$0xff]  ;;  %v5666_v51 = vand.u32 4294901760, %v48_v26 }
 0x13f   :  { %4180 = vmatpush1.bf16.xpose.msra.mxu0 %v4179_v48  ;;  %v3811_v48 = vpack.c.bf16 %v7577_v59, %v7576_v38  ;;  %v56_v38 = vld [vmem:[#allocation5 + $0x38] sm:$0xff] }
 0x140   :  { %4182 = vmatprep.subr.bf16.mxu0 %v4181_v4  ;;  %v4191_v34 = vpack.c.bf16 %v7573_v54, %v7571_v50  ;;  %v4193_v39 = vpack.c.bf16 %v7575_v18, %v7574_v14  ;;  %v7581_v4 = vand.u32 4294901760, %v7469_v46  ;;  %v7591_v46 = vld [vmem:[#allocation84_spill] sm:$0xff]  ;;  %v5664_v50 = vld [vmem:[#allocation5 + $0x58] sm:$0xff]  ;;  %7622 = vst [vmem:[#allocation23_spill] sm:$0xff] %v5666_v51  ;;  %v7623_v54 = vld [vmem:[#allocation79_spill] sm:$0xff]  ;;  %v5677_v22 = vsub.f32 %v48_v26, %v5666_v51 }
 0x141   :  { %v7592_v7 = vand.u32 4294901760, %v7591_v46  ;;  %v7625_v14 = vld [vmem:[#allocation88_spill] sm:$0xff]  ;;  %v64_v59 = vld [vmem:[#allocation5 + $0x78] sm:$0xff]  ;;  %v2770_v10 = vand.u32 4294901760, %v56_v38 }
 0x142   :  { %v4195_v45 = vpack.c.bf16 %v7583_v30, %v7581_v4  ;;  %7627 = vst [vmem:[#allocation26_spill] sm:$0xff] %v5677_v22  ;;  %v5687_v30 = vld [vmem:[#allocation5 + $0x10] sm:$0xff]  ;;  %v7008_v16 = vand.u32 4294901760, %v5677_v22 }
 0x143   :  { %v5701_v46 = vsub.f32 %v56_v38, %v2770_v10  ;;  %v107_v38 = vld [vmem:[#allocation5 + $0x1d0] sm:$0xff] }
 0x145   :  { %3800 = vmatpush1.bf16.xpose.msra.mxu1 %v3799_v3  ;;  %v7585_v3 = vld [vmem:[#allocation97_spill] sm:$0xff]  ;;  %7631 = vst [vmem:[#allocation30_spill] sm:$0xff] %v5701_v46 }
 0x146   :  { %3802 = vmatprep.subr.bf16.mxu1 %v3801_v5  ;;  %v7586_v40 = vand.u32 4294901760, %v7585_v3  ;;  %v7589_v5 = vld [vmem:[#allocation40_spill] sm:$0xff]  ;;  %v76_v3 = vld [vmem:[#allocation5 + $0xd8] sm:$0xff] }
 0x147   :  { %4184 = vmatpush1.bf16.xpose.msra.mxu0 %v4183_v0  ;;  %v7590_v29 = vand.u32 4294901760, %v7589_v5 }
 0x148   :  { %4186 = vmatprep.subr.bf16.mxu0 %v4185_v6  ;;  %v4197_v43 = vpack.c.bf16 %v7586_v40, %v7584_v25  ;;  %v7596_v6 = vld [vmem:[#allocation13_spill] sm:$0xff]  ;;  %v55_v40 = vld [vmem:[#allocation5 + $0x30] sm:$0xff] }
 0x149   :  { %v4199_v0 = vpack.c.bf16 %v7592_v7, %v7590_v29  ;;  %v68_v25 = vld [vmem:[#allocation5 + $0x98] sm:$0xff] }
 0x14d   :  { %3804 = vmatpush1.bf16.xpose.msra.mxu1 %v3803_v57  ;;  %v7602_v57 = vld [vmem:[#allocation18_spill] sm:$0xff] }
 0x14e   :  { %3806 = vmatprep.subr.bf16.mxu1 %v3805_v15  ;;  %v7607_v15 = vld [vmem:[#allocation32_spill] sm:$0xff] }
 0x14f   :  { %4188 = vmatpush1.bf16.xpose.msra.mxu0 %v4187_v9  ;;  %v7611_v9 = vld [vmem:[#allocation47_spill] sm:$0xff] }
 0x150   :  { %4190 = vmatprep.subr.bf16.mxu0 %v4189_v62  ;;  %v7615_v62 = vld [vmem:[#allocation58_spill] sm:$0xff] }
 0x155   :  { %3808 = vmatpush1.bf16.xpose.msra.mxu1 %v3807_v53  ;;  %v44_v53 = vld [vmem:[#allocation2 + $0x18] sm:$0xff] }
 0x156   :  { %3810 = vmatprep.subr.bf16.mxu1 %v3809_v32  ;;  %v5660_v58 = vand.u32 4294901760, %v44_v53  ;;  %v5662_v32 = vld [vmem:[#allocation5 + $0x18] sm:$0xff] }
 0x157   :  { %4192 = vmatpush1.bf16.xpose.msra.mxu0 %v4191_v34  ;;  %v7017_v18 = vand.u32 4294901760, %v5662_v32 }
 0x158   :  { %4194 = vmatprep.subr.bf16.mxu0 %v4193_v39  ;;  %7621 = vst [vmem:[#allocation21_spill] sm:$0xff] %v5660_v58  ;;  %v5670_v34 = vsub.f32 %v44_v53, %v5660_v58  ;;  %v7016_v39 = vand.u32 4294901760, %v5664_v50  ;;  %v71_v53 = vld [vmem:[#allocation5 + $0xb0] sm:$0xff] }
 0x15a   :  { %7624 = vst [vmem:[#allocation25_spill] sm:$0xff] %v5670_v34  ;;  %v7009_v4 = vand.u32 4294901760, %v5670_v34  ;;  %v5685_v35 = vpack.c.bf16 %v7016_v39, %v7017_v18  ;;  %v128_v39 = vld [vmem:[#allocation5 + $0x278] sm:$0xff] }
 0x15c   :  { %7629 = vst [vmem:[#allocation27_spill] sm:$0xff] %v5685_v35  ;;  %v1145_v29 = vsub.f32 %v5670_v34, %v7009_v4 }
 0x15d   :  { %3812 = vmatpush1.bf16.xpose.msra.mxu1 %v3811_v48  ;;  %v7626_v48 = vld [vmem:[#allocation85_spill] sm:$0xff] }
 0x15e   :  { %3814 = vmatprep.subr.bf16.mxu1 %v3813_v11  ;;  %v2774_v11 = vand.u32 4294901760, %v64_v59 }
 0x15f   :  { %4196 = vmatpush1.bf16.xpose.msra.mxu0 %v4195_v45  ;;  %v5689_v45 = vld [vmem:[#allocation5 + $0x50] sm:$0xff] }
 0x160   :  { %4198 = vmatprep.subr.bf16.mxu0 %v4197_v43  ;;  %v63_v43 = vld [vmem:[#allocation5 + $0x70] sm:$0xff]  ;;  %v5693_v12 = vpack.c.bf16 %v2774_v11, %v2770_v10  ;;  %v7014_v5 = vand.u32 4294901760, %v5689_v45  ;;  %v5703_v7 = vsub.f32 %v64_v59, %v2774_v11 }
 0x162   :  { %7630 = vst [vmem:[#allocation28_spill] sm:$0xff] %v5693_v12  ;;  %7632 = vst [vmem:[#allocation31_spill] sm:$0xff] %v5703_v7 }
 0x165   :  { %3816 = vmatpush1.bf16.xpose.msra.mxu1 %v3815_v28  ;;  %v7015_v28 = vand.u32 4294901760, %v5687_v30 }
 0x166   :  { %3818 = vmatprep.subr.bf16.mxu1 %v7593_v1  ;;  %v1058_v1 = vand.u32 4294901760, %v76_v3 }
 0x167   :  { %4200 = vmatpush1.bf16.xpose.msra.mxu0 %v4199_v0  ;;  %v1054_v0 = vand.u32 4294901760, %v68_v25 }
 0x168   :  { %4202 = vmatprep.subr.bf16.mxu0 %v7594_v24  ;;  %v72_v24 = vld [vmem:[#allocation5 + $0xb8] sm:$0xff] }
 0x16c   :  { %937 = vmatmul.mubr.f32.vlgmr.msra.gmra.mrb[0].mxu1 %v7595_v8 }
 0x16d   :  { %3820 = vmatpush1.bf16.xpose.msra.mxu1 %v7596_v6  ;;  %1039 = vmatprep.mubr.f32.mxu1 %v7525_v20  ;;  %v7606_v20 = vld [vmem:[#allocation24_spill] sm:$0xff]  ;;  %v2772_v6 = vand.u32 4294901760, %v55_v40 }
 0x16e   :  { %3822 = vmatprep.subr.bf16.mxu1 %v7597_v47  ;;  %2661 = vmatmul.mubr.f32.vlgmr.msra.gmra.mrb[0].mxu0 %v7598_v56  ;;  %v2776_v47 = vand.u32 4294901760, %v63_v43 }
 0x16f   :  { %4204 = vmatpush1.bf16.xpose.msra.mxu0 %v7599_v37  ;;  %2763 = vmatprep.mubr.f32.mxu0 %v7527_v13  ;;  %v7610_v13 = vld [vmem:[#allocation46_spill] sm:$0xff]  ;;  %v2869_v37 = vsub.f32 %v5677_v22, %v7008_v16 }
 0x170   :  { %4206 = vmatprep.subr.bf16.mxu0 %v7600_v19  ;;  %v5812_v19 = vld [vmem:[#allocation5 + $0x218] sm:$0xff] }
 0x175   :  { %3824 = vmatpush1.bf16.xpose.msra.mxu1 %v7601_v55  ;;  %v5716_v55 = vpack.c.bf16 %v7014_v5, %v7015_v28  ;;  %v120_v28 = vld [vmem:[#allocation5 + $0x238] sm:$0xff] }
 0x176   :  { %3826 = vmatprep.subr.bf16.mxu1 %v7602_v57  ;;  %v2778_v57 = vand.u32 4294901760, %v72_v24 }
 0x177   :  { %4208 = vmatpush1.bf16.xpose.msra.mxu0 %v7603_v49  ;;  %7633 = vst [vmem:[#allocation33_spill] sm:$0xff] %v5716_v55 }
 0x178   :  { %4210 = vmatprep.subr.bf16.mxu0 %v7604_v33  ;;  %v67_v33 = vld [vmem:[#allocation5 + $0x90] sm:$0xff] }
 0x17d   :  { %3828 = vmatpush1.bf16.xpose.msra.mxu1 %v7605_v60  ;;  %v1146_v60 = vand.u32 4294901760, %v1145_v29 }
 0x17e   :  { %3830 = vmatprep.subr.bf16.mxu1 %v7606_v20  ;;  %v75_v20 = vld [vmem:[#allocation5 + $0xd0] sm:$0xff] }
 0x17f   :  { %4212 = vmatpush1.bf16.xpose.msra.mxu0 %v7607_v15  ;;  %v5720_v15 = vpack.c.bf16 %v2776_v47, %v2772_v6 }
 0x180   :  { %4214 = vmatprep.subr.bf16.mxu0 %v7608_v36  ;;  %v5722_v36 = vsub.f32 %v55_v40, %v2772_v6  ;;  %v5772_v6 = vld [vmem:[#allocation5 + $0x198] sm:$0xff] }
 0x181   :  { %7635 = vst [vmem:[#allocation63_spill] sm:$0xff] %v5720_v15 }
 0x185   :  { %3832 = vmatpush1.bf16.xpose.msra.mxu1 %v7609_v52  ;;  %v5724_v52 = vld [vmem:[#allocation5 + $0x118] sm:$0xff] }
 0x186   :  { %3834 = vmatprep.subr.bf16.mxu1 %v7610_v13  ;;  %v5726_v13 = vld [vmem:[#allocation5 + $0x158] sm:$0xff] }
 0x187   :  { %4216 = vmatpush1.bf16.xpose.msra.mxu0 %v7611_v9  ;;  %v5729_v9 = vsub.f32 %v63_v43, %v2776_v47  ;;  %v7010_v26 = vand.u32 4294901760, %v5726_v13  ;;  %v5774_v47 = vld [vmem:[#allocation5 + $0x1d8] sm:$0xff] }
 0x188   :  { %4218 = vmatprep.subr.bf16.mxu0 %v7612_v31  ;;  %v5731_v31 = vsub.f32 %v68_v25, %v1054_v0 }
 0x18a   :  { %7636 = vst [vmem:[#allocation66_spill] sm:$0xff] %v5731_v31 }
 0x18d   :  { %3836 = vmatpush1.bf16.xpose.msra.mxu1 %v7613_v41  ;;  %v1056_v41 = vand.u32 4294901760, %v67_v33 }
 0x18e   :  { %3838 = vmatprep.subr.bf16.mxu1 %v7614_v17  ;;  %v2870_v17 = vand.u32 4294901760, %v2869_v37 }
 0x18f   :  { %4220 = vmatpush1.bf16.xpose.msra.mxu0 %v7615_v62  ;;  %v5734_v62 = vsub.f32 %v76_v3, %v1058_v1  ;;  %v5748_v59 = vsub.f32 %v67_v33, %v1056_v41 }
 0x190   :  { %4222 = vmatprep.subr.bf16.mxu0 %v7616_v44 }
 0x195   :  { %3840 = vmatpush1.bf16.xpose.msra.mxu1 %v7617_v61  ;;  %v5738_v61 = vsub.f32 %v72_v24, %v2778_v57 }
 0x196   :  { %3842 = vmatprep.subr.bf16.mxu1 %v7618_v42  ;;  %v1060_v42 = vand.u32 4294901760, %v75_v20 }
 0x197   :  { %4224 = vmatpush1.bf16.xpose.msra.mxu0 %v7619_v27  ;;  %7638 = vst [vmem:[#allocation76_spill] sm:$0xff] %v5738_v61  ;;  %v79_v27 = vld [vmem:[#allocation5 + $0xf0] sm:$0xff] }
 0x198   :  { %4226 = vmatprep.subr.bf16.mxu0 %v7620_v63  ;;  %v7011_v63 = vand.u32 4294901760, %v5724_v52  ;;  %v2784_v10 = vand.u32 4294901760, %v79_v27  ;;  %v5758_v3 = vpack.c.bf16 %v1060_v42, %v1056_v41 }
 0x19a   :  { %7639 = vst [vmem:[#allocation39_spill] sm:$0xff] %v5758_v3  ;;  %v5766_v29 = vpack.c.bf16 %v7010_v26, %v7011_v63  ;;  %v1076_v63 = vand.u32 4294901760, %v107_v38 }
 0x19c   :  { %7640 = vst [vmem:[#allocation80_spill] sm:$0xff] %v5766_v29 }
 0x19d   :  { %3844 = vmatpush1.bf16.xpose.msra.mxu1 %v7623_v54  ;;  %v88_v54 = vld [vmem:[#allocation5 + $0x138] sm:$0xff] }
 0x19e   :  { %3846 = vmatprep.subr.bf16.mxu1 %v7625_v14  ;;  %v96_v14 = vld [vmem:[#allocation5 + $0x178] sm:$0xff] }
 0x19f   :  { %4228 = vmatpush1.bf16.xpose.msra.mxu0 %v7626_v48  ;;  %v5750_v48 = vsub.f32 %v75_v20, %v1060_v42  ;;  %v2790_v40 = vand.u32 4294901760, %v96_v14  ;;  %v95_v20 = vld [vmem:[#allocation5 + $0x170] sm:$0xff] }
 0x1a0   :  { %4230 = vmatprep.subr.bf16.mxu0 %v7628_v21  ;;  %v2780_v21 = vand.u32 4294901760, %v71_v53  ;;  %v2792_v41 = vand.u32 4294901760, %v95_v20 }
 0x1a1   :  { %v5786_v42 = vsub.f32 %v96_v14, %v2790_v40 }
 0x1a2   :  { %v5768_v24 = vsub.f32 %v71_v53, %v2780_v21  ;;  %v5776_v37 = vpack.c.bf16 %v2784_v10, %v2780_v21  ;;  %v7013_v53 = vand.u32 4294901760, %v5772_v6  ;;  %v104_v21 = vld [vmem:[#allocation5 + $0x1b8] sm:$0xff] }
 0x1a4   :  { %7641 = vst [vmem:[#allocation82_spill] sm:$0xff] %v5768_v24  ;;  %7643 = vst [vmem:[#allocation36_spill] sm:$0xff] %v5776_v37 }
 0x1a5   :  { %3848 = vmatpush1.bf16.xpose.msra.mxu1 %v7512_v23  ;;  %v80_v23 = vld [vmem:[#allocation5 + $0xf8] sm:$0xff] }
 0x1a6   :  { %3850 = vmatprep.subr.bf16.mxu1 %v5685_v35  ;;  %v2782_v49 = vand.u32 4294901760, %v80_v23  ;;  %v5919_v35 = vld [vmem:[#allocation5 + $0x2f0] sm:$0xff] }
 0x1a7   :  { %4232 = vmatpush1.bf16.xpose.msra.mxu0 %v7515_v2  ;;  %v5718_v2 = vpack.c.bf16 %v1058_v1, %v1054_v0  ;;  %v83_v0 = vld [vmem:[#allocation5 + $0x110] sm:$0xff]  ;;  %7669 = vst [vmem:[#allocation77_spill] sm:$0xff] %v5919_v35 }
 0x1a8   :  { %4234 = vmatprep.subr.bf16.mxu0 %v5693_v12  ;;  %v5736_v44 = vpack.c.bf16 %v2782_v49, %v2778_v57  ;;  %v91_v1 = vld [vmem:[#allocation5 + $0x150] sm:$0xff] }
 0x1a9   :  { %7634 = vst [vmem:[#allocation60_spill] sm:$0xff] %v5718_v2  ;;  %v1068_v33 = vand.u32 4294901760, %v91_v1  ;;  %v5917_v12 = vld [vmem:[#allocation5 + $0x2b0] sm:$0xff] }
 0x1aa   :  { %7637 = vst [vmem:[#allocation75_spill] sm:$0xff] %v5736_v44 }
 0x1ab   :  { %v5792_v4 = vsub.f32 %v91_v1, %v1068_v33  ;;  %v99_v1 = vld [vmem:[#allocation5 + $0x190] sm:$0xff] }
 0x1ac   :  { %1041 = vmatmul.mubr.f32.vlgmr.msra.gmra.mrb[0].mxu1 %v7595_v8  ;;  %v5741_v8 = vsub.f32 %v80_v23, %v2782_v49  ;;  %v5770_v23 = vsub.f32 %v79_v27, %v2784_v10  ;;  %v1064_v49 = vand.u32 4294901760, %v83_v0  ;;  %v7012_v27 = vand.u32 4294901760, %v5774_v47  ;;  %v112_v10 = vld [vmem:[#allocation5 + $0x1f8] sm:$0xff] }
 0x1ad   :  { %3852 = vmatpush1.bf16.xpose.msra.mxu1 %v5716_v55  ;;  %1147 = vmatprep.mubr.f32.mxu1 %v1146_v60  ;;  %v87_v60 = vld [vmem:[#allocation5 + $0x130] sm:$0xff]  ;;  %v1072_v26 = vand.u32 4294901760, %v99_v1 }
 0x1ae   :  { %3854 = vmatprep.subr.bf16.mxu1 %v5718_v2  ;;  %2765 = vmatmul.mubr.f32.vlgmr.msra.gmra.mrb[0].mxu0 %v7598_v56  ;;  %v2786_v56 = vand.u32 4294901760, %v88_v54  ;;  %7642 = vst [vmem:[#allocation29_spill] sm:$0xff] %v5770_v23  ;;  %v5790_v16 = vsub.f32 %v83_v0, %v1064_v49  ;;  %v2788_v43 = vand.u32 4294901760, %v87_v60  ;;  %v5798_v14 = vpack.c.bf16 %v1068_v33, %v1064_v49  ;;  %v5814_v49 = vld [vmem:[#allocation5 + $0x258] sm:$0xff]  ;;  %v5898_v55 = vld [vmem:[#allocation5 + $0x290] sm:$0xff] }
 0x1af   :  { %4236 = vmatpush1.bf16.xpose.msra.mxu0 %v5720_v15  ;;  %2871 = vmatprep.mubr.f32.mxu0 %v2870_v17  ;;  %v5806_v0 = vpack.c.bf16 %v7012_v27, %v7013_v53  ;;  %v5821_v27 = vld [vmem:[#allocation5 + $0x1b0] sm:$0xff]  ;;  %v5834_v18 = vsub.f32 %v99_v1, %v1072_v26 }
 0x1b0   :  { %4238 = vmatprep.subr.bf16.mxu0 %v5736_v44  ;;  %v5779_v57 = vpack.c.bf16 %v2790_v40, %v2786_v56  ;;  %v5784_v17 = vsub.f32 %v88_v54, %v2786_v56  ;;  %7645 = vst [vmem:[#allocation38_spill] sm:$0xff] %v5798_v14  ;;  %v2794_v56 = vand.u32 4294901760, %v104_v21  ;;  %v2798_v40 = vand.u32 4294901760, %v112_v10  ;;  %v5823_v53 = vld [vmem:[#allocation5 + $0x1f0] sm:$0xff] }
 0x1b1   :  { %7646 = vst [vmem:[#allocation37_spill] sm:$0xff] %v5806_v0  ;;  %v5808_v11 = vsub.f32 %v87_v60, %v2788_v43  ;;  %v5810_v54 = vsub.f32 %v95_v20, %v2792_v41  ;;  %v5816_v33 = vpack.c.bf16 %v2792_v41, %v2788_v43  ;;  %v7031_v43 = vand.u32 4294901760, %v5812_v19  ;;  %7649 = vst [vmem:[#allocation44_spill] sm:$0xff] %v5834_v18  ;;  %v115_v60 = vld [vmem:[#allocation5 + $0x210] sm:$0xff] }
 0x1b2   :  { %7644 = vst [vmem:[#allocation35_spill] sm:$0xff] %v5779_v57  ;;  %v5819_v25 = vpack.c.bf16 %v2798_v40, %v2794_v56  ;;  %v5828_v20 = vsub.f32 %v104_v21, %v2794_v56  ;;  %v5830_v5 = vsub.f32 %v112_v10, %v2798_v40  ;;  %v7030_v41 = vand.u32 4294901760, %v5814_v49  ;;  %v5856_v21 = vld [vmem:[#allocation5 + $0x2d8] sm:$0xff]  ;;  %v6008_v18 = vld [vmem:[#allocation5 + $0x370] sm:$0xff] }
 0x1b3   :  { %7647 = vst [vmem:[#allocation41_spill] sm:$0xff] %v5816_v33  ;;  %v5844_v10 = vpack.c.bf16 %v1076_v63, %v1072_v26  ;;  %v2802_v56 = vand.u32 4294901760, %v120_v28  ;;  %v2806_v40 = vand.u32 4294901760, %v128_v39  ;;  %v7654_v26 = vand.u32 4294901760, %v5823_v53  ;;  %7698 = vst [vmem:[#allocation12_spill] sm:$0xff] %v6008_v18 }
 0x1b4   :  { %7648 = vst [vmem:[#allocation45_spill] sm:$0xff] %v5819_v25 }
 0x1b5   :  { %3856 = vmatpush1.bf16.xpose.msra.mxu1 %v5758_v3  ;;  %7651 = vst [vmem:[#allocation50_spill] sm:$0xff] %v5844_v10  ;;  %v5865_v1 = vpack.c.bf16 %v2806_v40, %v2802_v56  ;;  %v5874_v3 = vsub.f32 %v128_v39, %v2806_v40  ;;  %v5902_v39 = vld [vmem:[#allocation5 + $0x318] sm:$0xff] }
 0x1b6   :  { %3858 = vmatprep.subr.bf16.mxu1 %v5766_v29  ;;  %v5872_v29 = vsub.f32 %v120_v28, %v2802_v56  ;;  %7663 = vst [vmem:[#allocation89_spill] sm:$0xff] %v5902_v39 }
 0x1b7   :  { %4240 = vmatpush1.bf16.xpose.msra.mxu0 %v5776_v37  ;;  %7656 = vst [vmem:[#allocation54_spill] sm:$0xff] %v5865_v1  ;;  %7658 = vst [vmem:[#allocation56_spill] sm:$0xff] %v5874_v3 }
 0x1b8   :  { %4242 = vmatprep.subr.bf16.mxu0 %v5779_v57  ;;  %v1080_v57 = vand.u32 4294901760, %v115_v60  ;;  %7657 = vst [vmem:[#allocation53_spill] sm:$0xff] %v5872_v29 }
 0x1ba   :  { %v5878_v15 = vsub.f32 %v115_v60, %v1080_v57 }
 0x1bc   :  { %7659 = vst [vmem:[#allocation69_spill] sm:$0xff] %v5878_v15  ;;  %v7678_v15 = vand.u32 4294901760, %v5664_v50 }
 0x1bd   :  { %3860 = vmatpush1.bf16.xpose.msra.mxu1 %v5798_v14  ;;  %v5836_v14 = vsub.f32 %v107_v38, %v1076_v63  ;;  %v5852_v38 = vpack.c.bf16 %v7030_v41, %v7031_v43  ;;  %v7653_v63 = vand.u32 4294901760, %v5821_v27  ;;  %v5867_v41 = vld [vmem:[#allocation5 + $0x230] sm:$0xff] }
 0x1be   :  { %3862 = vmatprep.subr.bf16.mxu1 %v5806_v0  ;;  %v123_v0 = vld [vmem:[#allocation5 + $0x250] sm:$0xff] }
 0x1bf   :  { %7650 = vst [vmem:[#allocation51_spill] sm:$0xff] %v5836_v14  ;;  %4244 = vmatpush1.bf16.xpose.msra.mxu0 %v5816_v33  ;;  %7652 = vst [vmem:[#allocation49_spill] sm:$0xff] %v5852_v38  ;;  %v5854_v33 = vld [vmem:[#allocation5 + $0x298] sm:$0xff]  ;;  %v1084_v37 = vand.u32 4294901760, %v123_v0  ;;  %v5869_v43 = vld [vmem:[#allocation5 + $0x270] sm:$0xff] }
 0x1c0   :  { %4246 = vmatprep.subr.bf16.mxu0 %v5819_v25  ;;  %v5862_v25 = vpack.c.bf16 %v7654_v26, %v7653_v63  ;;  %v7053_v44 = vand.u32 4294901760, %v5854_v33  ;;  %v7052_v63 = vand.u32 4294901760, %v5856_v21  ;;  %v136_v26 = vld [vmem:[#allocation5 + $0x2b8] sm:$0xff] }
 0x1c1   :  { %v5880_v2 = vsub.f32 %v123_v0, %v1084_v37  ;;  %v5888_v28 = vpack.c.bf16 %v1084_v37, %v1080_v57  ;;  %v2810_v56 = vand.u32 4294901760, %v136_v26  ;;  %v7665_v37 = vand.u32 4294901760, %v5867_v41 }
 0x1c2   :  { %7655 = vst [vmem:[#allocation48_spill] sm:$0xff] %v5862_v25  ;;  %v5896_v0 = vpack.c.bf16 %v7052_v63, %v7053_v44  ;;  %v7666_v57 = vand.u32 4294901760, %v5869_v43  ;;  %v7676_v44 = vand.u32 4294901760, %v5662_v32 }
 0x1c3   :  { %7660 = vst [vmem:[#allocation81_spill] sm:$0xff] %v5880_v2  ;;  %7661 = vst [vmem:[#allocation86_spill] sm:$0xff] %v5888_v28  ;;  %v5922_v22 = vsub.f32 %v136_v26, %v2810_v56  ;;  %v160_v2 = vld [vmem:[#allocation5 + $0x378] sm:$0xff] }
 0x1c4   :  { %7662 = vst [vmem:[#allocation96_spill] sm:$0xff] %v5896_v0  ;;  %v5945_v63 = vsub.f32 %v5662_v32, %v7676_v44  ;;  %v7685_v32 = vand.u32 4294901760, %v5689_v45 }
 0x1c5   :  { %3864 = vmatpush1.bf16.xpose.msra.mxu1 %v5844_v10  ;;  %v144_v10 = vld [vmem:[#allocation5 + $0x2f8] sm:$0xff]  ;;  %7670 = vst [vmem:[#allocation78_spill] sm:$0xff] %v5922_v22  ;;  %v7684_v22 = vand.u32 4294901760, %v5687_v30 }
 0x1c6   :  { %3866 = vmatprep.subr.bf16.mxu1 %v5852_v38  ;;  %v2814_v40 = vand.u32 4294901760, %v144_v10  ;;  %v5900_v38 = vld [vmem:[#allocation5 + $0x2d0] sm:$0xff]  ;;  %7677 = vst [vmem:[#allocation64_spill] sm:$0xff] %v5945_v63  ;;  %v5968_v44 = vsub.f32 %v5689_v45, %v7685_v32  ;;  %v7691_v45 = vand.u32 4294901760, %v5917_v12  ;;  %v7692_v32 = vand.u32 4294901760, %v5919_v35 }
 0x1c7   :  { %4248 = vmatpush1.bf16.xpose.msra.mxu0 %v5862_v25  ;;  %v5910_v25 = vpack.c.bf16 %v7666_v57, %v7665_v37  ;;  %v7673_v26 = vand.u32 4294901760, %v5900_v38  ;;  %v2822_v57 = vand.u32 4294901760, %v160_v2  ;;  %v5940_v37 = vld [vmem:[#allocation5 + $0x310] sm:$0xff]  ;;  %v5963_v3 = vsub.f32 %v5687_v30, %v7684_v22 }
 0x1c8   :  { %4250 = vmatprep.subr.bf16.mxu0 %v5865_v1  ;;  %v5904_v1 = vld [vmem:[#allocation5 + $0x358] sm:$0xff]  ;;  %v5913_v60 = vpack.c.bf16 %v2814_v40, %v2810_v56  ;;  %v5924_v34 = vsub.f32 %v144_v10, %v2814_v40  ;;  %v7672_v10 = vand.u32 4294901760, %v5898_v55  ;;  %7675 = vst [vmem:[#allocation61_spill] sm:$0xff] %v5940_v37  ;;  %v7690_v22 = vand.u32 4294901760, %v5772_v6 }
 0x1c9   :  { %7664 = vst [vmem:[#allocation95_spill] sm:$0xff] %v5904_v1  ;;  %7667 = vst [vmem:[#allocation93_spill] sm:$0xff] %v5910_v25  ;;  %v6003_v14 = vsub.f32 %v160_v2, %v2822_v57  ;;  %v7715_v2 = vand.u32 4294901760, %v5945_v63 }
 0x1ca   :  { %7668 = vst [vmem:[#allocation94_spill] sm:$0xff] %v5913_v60  ;;  %7671 = vst [vmem:[#allocation43_spill] sm:$0xff] %v5924_v34  ;;  %v5938_v56 = vpack.c.bf16 %v7673_v26, %v7672_v10  ;;  %v7681_v10 = vand.u32 4294901760, %v5904_v1  ;;  %v5958_v34 = vld [vmem:[#allocation5 + $0x350] sm:$0xff]  ;;  %v5980_v1 = vld [vmem:[#allocation5 + $0x398] sm:$0xff]  ;;  %v5987_v30 = vsub.f32 %v5772_v6, %v7690_v22  ;;  %v7702_v6 = vand.u32 4294901760, %v5821_v27 }
 0x1cb   :  { %7683 = vst [vmem:[#allocation73_spill] sm:$0xff] %v5958_v34  ;;  %7688 = vst [vmem:[#allocation70_spill] sm:$0xff] %v5980_v1  ;;  %v6006_v22 = vld [vmem:[#allocation5 + $0x330] sm:$0xff] }
 0x1cc   :  { %7674 = vst [vmem:[#allocation57_spill] sm:$0xff] %v5938_v56  ;;  %7697 = vst [vmem:[#allocation11_spill] sm:$0xff] %v6003_v14  ;;  %v6066_v14 = vld [vmem:[#allocation5 + $0x3d0] sm:$0xff] }
 0x1cd   :  { %3868 = vmatpush1.bf16.xpose.msra.mxu1 %v5888_v28  ;;  %v152_v28 = vld [vmem:[#allocation5 + $0x338] sm:$0xff] }
 0x1ce   :  { %3870 = vmatprep.subr.bf16.mxu1 %v5896_v0  ;;  %v2818_v40 = vand.u32 4294901760, %v152_v28  ;;  %v7680_v0 = vand.u32 4294901760, %v5902_v39  ;;  %v5982_v39 = vld [vmem:[#allocation5 + $0x3d8] sm:$0xff] }
 0x1cf   :  { %4252 = vmatpush1.bf16.xpose.msra.mxu0 %v5910_v25  ;;  %v43_v25 = vld [vmem:[#allocation2 + $0x10] sm:$0xff]  ;;  %7689 = vst [vmem:[#allocation90_spill] sm:$0xff] %v5982_v39 }
 0x1d0   :  { %4254 = vmatprep.subr.bf16.mxu0 %v5913_v60  ;;  %v5950_v60 = vsub.f32 %v5664_v50, %v7678_v15  ;;  %v5956_v26 = vpack.c.bf16 %v7681_v10, %v7680_v0  ;;  %v7686_v50 = vand.u32 4294901760, %v5724_v52  ;;  %v7687_v0 = vand.u32 4294901760, %v5726_v13 }
 0x1d1   :  { %v5996_v29 = vand.u32 4294901760, %v43_v25 }
 0x1d2   :  { %7679 = vst [vmem:[#allocation67_spill] sm:$0xff] %v5950_v60  ;;  %7682 = vst [vmem:[#allocation72_spill] sm:$0xff] %v5956_v26  ;;  %v5973_v15 = vsub.f32 %v5724_v52, %v7686_v50  ;;  %v5978_v10 = vsub.f32 %v5726_v13, %v7687_v0  ;;  %v5993_v52 = vpack.c.bf16 %v7692_v32, %v7691_v45  ;;  %v6013_v50 = vld [vmem:[#allocation5 + $0x3b8] sm:$0xff]  ;;  %v7707_v45 = vand.u32 4294901760, %v5940_v37 }
 0x1d3   :  { %7694 = vst [vmem:[#allocation97_spill] sm:$0xff] %v5996_v29  ;;  %v5999_v13 = vpack.c.bf16 %v2822_v57, %v2818_v40  ;;  %v6001_v0 = vsub.f32 %v152_v28, %v2818_v40  ;;  %7699 = vst [vmem:[#allocation83_spill] sm:$0xff] %v6013_v50  ;;  %v7701_v57 = vand.u32 4294901760, %v5774_v47  ;;  %v6035_v35 = vsub.f32 %v43_v25, %v5996_v29 }
 0x1d4   :  { %7693 = vst [vmem:[#allocation87_spill] sm:$0xff] %v5993_v52  ;;  %v7708_v28 = vand.u32 4294901760, %v5958_v34  ;;  %v1161_v25 = vsub.f32 %v5945_v63, %v7715_v2  ;;  %v7720_v37 = vand.u32 4294901760, %v6006_v22  ;;  %v7721_v2 = vand.u32 4294901760, %v6008_v18 }
 0x1d5   :  { %3872 = vmatpush1.bf16.xpose.msra.mxu1 %v5938_v56  ;;  %7695 = vst [vmem:[#allocation40_spill] sm:$0xff] %v5999_v13  ;;  %7696 = vst [vmem:[#allocation84_spill] sm:$0xff] %v6001_v0  ;;  %v6015_v56 = vld [vmem:[#allocation5 + $0x3f8] sm:$0xff]  ;;  %v6022_v40 = vsub.f32 %v5774_v47, %v7701_v57  ;;  %v47_v47 = vld [vmem:[#allocation2 + $0x30] sm:$0xff]  ;;  %v7710_v57 = vand.u32 4294901760, %v5812_v19  ;;  %v7716_v0 = vand.u32 4294901760, %v5950_v60 }
 0x1d6   :  { %3874 = vmatprep.subr.bf16.mxu1 %v5956_v26  ;;  %7700 = vst [vmem:[#allocation13_spill] sm:$0xff] %v6015_v56  ;;  %v6027_v26 = vsub.f32 %v5821_v27, %v7702_v6  ;;  %7704 = vst [vmem:[#allocation92_spill] sm:$0xff] %v6035_v35  ;;  %v7705_v27 = vand.u32 4294901760, %v5823_v53  ;;  %v6049_v32 = vpack.c.bf16 %v7708_v28, %v7707_v45  ;;  %v6068_v45 = vld [vmem:[#allocation5 + $0x3b0] sm:$0xff]  ;;  %v6085_v34 = vand.u32 4294901760, %v47_v47 }
 0x1d7   :  { %4256 = vmatpush1.bf16.xpose.msra.mxu0 %v5993_v52  ;;  %v6053_v52 = vld [vmem:[#allocation5 + $0x390] sm:$0xff]  ;;  %v6058_v29 = vsub.f32 %v5812_v19, %v7710_v57  ;;  %v1173_v19 = vsub.f32 %v5950_v60, %v7716_v0  ;;  %v7717_v57 = vand.u32 4294901760, %v5701_v46  ;;  %v6091_v63 = vpack.c.bf16 %v7721_v2, %v7720_v37 }
 0x1d8   :  { %7703 = vst [vmem:[#allocation15_spill] sm:$0xff] %v6027_v26  ;;  %v6042_v6 = vsub.f32 %v5823_v53, %v7705_v27  ;;  %4258 = vmatprep.subr.bf16.mxu0 %v5999_v13  ;;  %7709 = vst [vmem:[#allocation16_spill] sm:$0xff] %v6049_v32  ;;  %v7712_v53 = vand.u32 4294901760, %v5980_v1  ;;  %v7713_v27 = vand.u32 4294901760, %v5982_v39  ;;  %v6070_v28 = vld [vmem:[#allocation5 + $0x3f0] sm:$0xff]  ;;  %v7724_v1 = vand.u32 4294901760, %v6015_v56 }
 0x1d9   :  { %7711 = vst [vmem:[#allocation17_spill] sm:$0xff] %v6058_v29  ;;  %v2885_v39 = vsub.f32 %v5701_v46, %v7717_v57  ;;  %7719 = vst [vmem:[#allocation19_spill] sm:$0xff] %v6085_v34  ;;  %v1162_v2 = vand.u32 4294901760, %v1161_v25  ;;  %v1174_v0 = vand.u32 4294901760, %v1173_v19  ;;  %v7726_v56 = vand.u32 4294901760, %v5963_v3 }
 0x1da   :  { %7706 = vst [vmem:[#allocation14_spill] sm:$0xff] %v6042_v6  ;;  %v6064_v13 = vpack.c.bf16 %v7713_v27, %v7712_v53  ;;  %v7718_v53 = vand.u32 4294901760, %v5703_v7  ;;  %7722 = vst [vmem:[#allocation20_spill] sm:$0xff] %v6091_v63  ;;  %v7728_v37 = vand.u32 4294901760, %v6035_v35  ;;  %v7729_v19 = vand.u32 4294901760, %v5968_v44 }
 0x1db   :  { %v7730_v60 = vand.u32 4294901760, %v5814_v49 }
 0x1dc   :  { %7714 = vst [vmem:[#allocation18_spill] sm:$0xff] %v6064_v13  ;;  %v2897_v27 = vsub.f32 %v5703_v7, %v7718_v53  ;;  %v7723_v53 = vand.u32 4294901760, %v6013_v50  ;;  %v7136_v7 = vand.u32 4294901760, %v6066_v14  ;;  %v1151_v25 = vsub.f32 %v6035_v35, %v7728_v37 }
 0x1dd   :  { %3876 = vmatpush1.bf16.xpose.msra.mxu1 %v6049_v32  ;;  %v2886_v32 = vand.u32 4294901760, %v2885_v39  ;;  %v1179_v18 = vsub.f32 %v5968_v44, %v7729_v19  ;;  %v7734_v39 = vand.u32 4294901760, %v5867_v41 }
 0x1de   :  { %v6101_v46 = vpack.c.bf16 %v7724_v1, %v7723_v53  ;;  %3878 = vmatprep.subr.bf16.mxu1 %v6064_v13  ;;  %v2898_v50 = vand.u32 4294901760, %v2897_v27  ;;  %v1167_v1 = vsub.f32 %v5963_v3, %v7726_v56  ;;  %v6113_v53 = vsub.f32 %v47_v47, %v6085_v34 }
 0x1df   :  { %4260 = vmatpush1.bf16.xpose.msra.mxu0 %v6091_v63  ;;  %v6127_v56 = vsub.f32 %v5814_v49, %v7730_v60  ;;  %v7732_v47 = vand.u32 4294901760, %v6053_v52  ;;  %v6141_v27 = vsub.f32 %v5867_v41, %v7734_v39  ;;  %v3881_v63 = vpack.c.bf16 %v1174_v0, %v1162_v2 }
 0x1e0   :  { %7725 = vst [vmem:[#allocation22_spill] sm:$0xff] %v6101_v46  ;;  %7727 = vst [vmem:[#allocation24_spill] sm:$0xff] %v6113_v53  ;;  %4262 = vmatprep.subr.bf16.mxu0 %v6101_v46  ;;  %v7735_v49 = vand.u32 4294901760, %v5731_v31  ;;  %v7736_v46 = vand.u32 4294901760, %v5734_v62  ;;  %v4265_v19 = vpack.c.bf16 %v2898_v50, %v2886_v32  ;;  %v1168_v35 = vand.u32 4294901760, %v1167_v1 }
 0x1e1   :  { %7731 = vst [vmem:[#allocation32_spill] sm:$0xff] %v6127_v56  ;;  %v6134_v37 = vpack.c.bf16 %v7136_v7, %v7732_v47  ;;  %v7737_v47 = vand.u32 4294901760, %v6068_v45  ;;  %v7738_v7 = vand.u32 4294901760, %v6070_v28  ;;  %v7147_v41 = vand.u32 4294901760, %v6113_v53 }
 0x1e2   :  { %v1185_v60 = vsub.f32 %v5731_v31, %v7735_v49  ;;  %v1197_v13 = vsub.f32 %v5734_v62, %v7736_v46  ;;  %v1152_v39 = vand.u32 4294901760, %v1151_v25  ;;  %v1180_v0 = vand.u32 4294901760, %v1179_v18 }
 0x1e3   :  { %7733 = vst [vmem:[#allocation34_spill] sm:$0xff] %v6134_v37  ;;  %v6153_v57 = vpack.c.bf16 %v7738_v7, %v7737_v47  ;;  %v7740_v2 = vand.u32 4294901760, %v5722_v36  ;;  %v7741_v34 = vand.u32 4294901760, %v5729_v9  ;;  %v7742_v31 = vand.u32 4294901760, %v5738_v61 }
 0x1e4   :  { %v7743_v50 = vand.u32 4294901760, %v5741_v8  ;;  %v7150_v18 = vand.u32 4294901760, %v5748_v59  ;;  %v1186_v25 = vand.u32 4294901760, %v1185_v60  ;;  %v1198_v47 = vand.u32 4294901760, %v1197_v13 }
 0x1e5   :  { %7739 = vst [vmem:[#allocation42_spill] sm:$0xff] %v6153_v57  ;;  %v2891_v49 = vsub.f32 %v5722_v36, %v7740_v2  ;;  %v2903_v46 = vsub.f32 %v5729_v9, %v7741_v34  ;;  %3880 = vmatpush1.bf16.xpose.msra.mxu1 %v6134_v37  ;;  %v2909_v7 = vsub.f32 %v5738_v61, %v7742_v31  ;;  %v7744_v31 = vand.u32 4294901760, %v5750_v48 }
 0x1e6   :  { %v2921_v32 = vsub.f32 %v5741_v8, %v7743_v50  ;;  %3882 = vmatprep.subr.bf16.mxu1 %v3881_v63  ;;  %v2875_v37 = vsub.f32 %v6113_v53, %v7147_v41  ;;  %v3883_v1 = vpack.c.bf16 %v1180_v0, %v1168_v35  ;;  %v1191_v41 = vsub.f32 %v5748_v59, %v7150_v18 }
 0x1e7   :  { %4264 = vmatpush1.bf16.xpose.msra.mxu0 %v6153_v57  ;;  %v2892_v63 = vand.u32 4294901760, %v2891_v49  ;;  %v2904_v60 = vand.u32 4294901760, %v2903_v46  ;;  %v2910_v2 = vand.u32 4294901760, %v2909_v7  ;;  %v1203_v61 = vsub.f32 %v5750_v48, %v7744_v31 }
 0x1e8   :  { %4266 = vmatprep.subr.bf16.mxu0 %v4265_v19  ;;  %v2922_v34 = vand.u32 4294901760, %v2921_v32  ;;  %v7745_v50 = vand.u32 4294901760, %v5869_v43  ;;  %v3885_v35 = vpack.c.bf16 %v1198_v47, %v1186_v25  ;;  %v7747_v0 = vand.u32 4294901760, %v5973_v15 }
 0x1e9   :  { %v7748_v49 = vand.u32 4294901760, %v5978_v10  ;;  %v2876_v7 = vand.u32 4294901760, %v2875_v37  ;;  %v7749_v32 = vand.u32 4294901760, %v5768_v24  ;;  %v7750_v31 = vand.u32 4294901760, %v5770_v23 }
 0x1ea   :  { %v6190_v57 = vsub.f32 %v5869_v43, %v7745_v50  ;;  %v1209_v19 = vsub.f32 %v5973_v15, %v7747_v0  ;;  %v7751_v43 = vand.u32 4294901760, %v5784_v17  ;;  %v4267_v47 = vpack.c.bf16 %v2904_v60, %v2892_v63 }
 0x1eb   :  { %v1221_v46 = vsub.f32 %v5978_v10, %v7748_v49  ;;  %v2915_v18 = vsub.f32 %v5768_v24, %v7749_v32  ;;  %v2927_v13 = vsub.f32 %v5770_v23, %v7750_v31  ;;  %v7752_v50 = vand.u32 4294901760, %v5786_v42 }
 0x1ec   :  { %7746 = vst [vmem:[#allocation46_spill] sm:$0xff] %v6190_v57  ;;  %v2933_v25 = vsub.f32 %v5784_v17, %v7751_v43  ;;  %1153 = vmatmul.mubr.f32.vlgmr.msra.gmra.mrb[0].mxu1 %v1152_v39  ;;  %v7753_v32 = vand.u32 4294901760, %v5854_v33  ;;  %v4269_v31 = vpack.c.bf16 %v2922_v34, %v2910_v2  ;;  %v1192_v24 = vand.u32 4294901760, %v1191_v41 }
 0x1ed   :  { %v2945_v0 = vsub.f32 %v5786_v42, %v7752_v50  ;;  %3884 = vmatpush1.bf16.xpose.msra.mxu1 %v3883_v1  ;;  %v1204_v23 = vand.u32 4294901760, %v1203_v61  ;;  %1383 = vmatprep.mubr.f32.mxu1 %v5660_v58  ;;  %v1210_v39 = vand.u32 4294901760, %v1209_v19  ;;  %v1222_v63 = vand.u32 4294901760, %v1221_v46 }
 0x1ee   :  { %v6215_v53 = vsub.f32 %v5854_v33, %v7753_v32  ;;  %3886 = vmatprep.subr.bf16.mxu1 %v3885_v35  ;;  %v7162_v60 = vand.u32 4294901760, %v5987_v30  ;;  %v7160_v43 = vand.u32 4294901760, %v6022_v40  ;;  %2877 = vmatmul.mubr.f32.vlgmr.msra.gmra.mrb[0].mxu0 %v2876_v7  ;;  %v2916_v50 = vand.u32 4294901760, %v2915_v18 }
 0x1ef   :  { %v2928_v49 = vand.u32 4294901760, %v2927_v13  ;;  %v2934_v37 = vand.u32 4294901760, %v2933_v25  ;;  %v7158_v33 = vand.u32 4294901760, %v5808_v11  ;;  %4268 = vmatpush1.bf16.xpose.msra.mxu0 %v4267_v47  ;;  %v2946_v1 = vand.u32 4294901760, %v2945_v0  ;;  %3107 = vmatprep.mubr.f32.mxu0 %v5666_v51 }
 0x1f0   :  { %7754 = vst [vmem:[#allocation47_spill] sm:$0xff] %v6215_v53  ;;  %v7755_v41 = vand.u32 4294901760, %v5790_v16  ;;  %v7756_v2 = vand.u32 4294901760, %v5792_v4  ;;  %v7157_v35 = vand.u32 4294901760, %v5810_v54  ;;  %v7757_v18 = vand.u32 4294901760, %v5856_v21  ;;  %4270 = vmatprep.subr.bf16.mxu0 %v4269_v31 }
 0x1f1   :  { %v3887_v19 = vpack.c.bf16 %v1204_v23, %v1192_v24  ;;  %v7159_v46 = vand.u32 4294901760, %v5828_v20  ;;  %v7161_v7 = vand.u32 4294901760, %v5830_v5  ;;  %v7759_v25 = vand.u32 4294901760, %v5898_v55 }
 0x1f2   :  { %v1215_v61 = vsub.f32 %v5790_v16, %v7755_v41  ;;  %v1227_v34 = vsub.f32 %v5792_v4, %v7756_v2  ;;  %v6232_v13 = vsub.f32 %v5856_v21, %v7757_v18  ;;  %v3889_v0 = vpack.c.bf16 %v1222_v63, %v1210_v39 }
 0x1f3   :  { %v6239_v47 = vsub.f32 %v5898_v55, %v7759_v25  ;;  %v1233_v32 = vsub.f32 %v5987_v30, %v7162_v60  ;;  %v1245_v21 = vsub.f32 %v6022_v40, %v7160_v43  ;;  %v7760_v24 = vand.u32 4294901760, %v5900_v38  ;;  %v7773_v43 = vld [vmem:[#allocation89_spill] sm:$0xff] }
 0x1f4   :  { %7758 = vst [vmem:[#allocation52_spill] sm:$0xff] %v6232_v13  ;;  %v7762_v31 = vand.u32 4294901760, %v5917_v12  ;;  %v4271_v55 = vpack.c.bf16 %v2928_v49, %v2916_v50  ;;  %v2939_v39 = vsub.f32 %v5808_v11, %v7158_v33  ;;  %v4273_v63 = vpack.c.bf16 %v2946_v1, %v2934_v37  ;;  %v7764_v49 = vld [vmem:[#allocation44_spill] sm:$0xff] }
 0x1f5   :  { %v6250_v23 = vsub.f32 %v5900_v38, %v7760_v24  ;;  %v1216_v2 = vand.u32 4294901760, %v1215_v61  ;;  %v1228_v18 = vand.u32 4294901760, %v1227_v34  ;;  %v2951_v25 = vsub.f32 %v5810_v54, %v7157_v35  ;;  %3888 = vmatpush1.bf16.xpose.msra.mxu1 %v3887_v19  ;;  %v7765_v24 = vld [vmem:[#allocation51_spill] sm:$0xff]  ;;  %v7766_v19 = vld [vmem:[#allocation77_spill] sm:$0xff] }
 0x1f6   :  { %v6255_v41 = vsub.f32 %v5917_v12, %v7762_v31  ;;  %v2957_v38 = vsub.f32 %v5828_v20, %v7159_v46  ;;  %v2969_v12 = vsub.f32 %v5830_v5, %v7161_v7  ;;  %3890 = vmatprep.subr.bf16.mxu1 %v3889_v0  ;;  %v1234_v37 = vand.u32 4294901760, %v1233_v32  ;;  %v7769_v0 = vld [vmem:[#allocation53_spill] sm:$0xff] }
 0x1f7   :  { %7761 = vst [vmem:[#allocation55_spill] sm:$0xff] %v6250_v23  ;;  %v1246_v1 = vand.u32 4294901760, %v1245_v21  ;;  %v7767_v35 = vand.u32 4294901760, %v7766_v19  ;;  %v2940_v46 = vand.u32 4294901760, %v2939_v39  ;;  %4272 = vmatpush1.bf16.xpose.msra.mxu0 %v4271_v55  ;;  %v3891_v60 = vpack.c.bf16 %v1228_v18, %v1216_v2  ;;  %v7770_v21 = vld [vmem:[#allocation56_spill] sm:$0xff] }
 0x1f8   :  { %7763 = vst [vmem:[#allocation59_spill] sm:$0xff] %v6255_v41  ;;  %v2952_v31 = vand.u32 4294901760, %v2951_v25  ;;  %4274 = vmatprep.subr.bf16.mxu0 %v4273_v63  ;;  %v2958_v61 = vand.u32 4294901760, %v2957_v38  ;;  %v2970_v34 = vand.u32 4294901760, %v2969_v12  ;;  %v7771_v51 = vand.u32 4294901760, %v7764_v49  ;;  %v7778_v12 = vld [vmem:[#allocation95_spill] sm:$0xff] }
 0x1f9   :  { %v6276_v33 = vsub.f32 %v7766_v19, %v7767_v35  ;;  %v7772_v39 = vand.u32 4294901760, %v7765_v24  ;;  %v7774_v7 = vand.u32 4294901760, %v7773_v43  ;;  %v3893_v2 = vpack.c.bf16 %v1246_v1, %v1234_v37  ;;  %v7783_v37 = vld [vmem:[#allocation69_spill] sm:$0xff] }
 0x1fa   :  { %v1239_v35 = vsub.f32 %v7764_v49, %v7771_v51  ;;  %v7776_v18 = vand.u32 4294901760, %v6058_v29  ;;  %v7777_v25 = vand.u32 4294901760, %v6127_v56  ;;  %v7779_v51 = vand.u32 4294901760, %v7778_v12 }
 0x1fb   :  { %7768 = vst [vmem:[#allocation58_spill] sm:$0xff] %v6276_v33  ;;  %v1251_v19 = vsub.f32 %v7765_v24, %v7772_v39  ;;  %v6291_v55 = vsub.f32 %v7773_v43, %v7774_v7  ;;  %v7781_v39 = vand.u32 4294901760, %v6027_v26  ;;  %v7782_v43 = vand.u32 4294901760, %v6042_v6 }
 0x1fc   :  { %v1257_v63 = vsub.f32 %v6058_v29, %v7776_v18  ;;  %v1269_v38 = vsub.f32 %v6127_v56, %v7777_v25  ;;  %v6302_v50 = vsub.f32 %v7778_v12, %v7779_v51  ;;  %v4275_v18 = vpack.c.bf16 %v2952_v31, %v2940_v46  ;;  %v7786_v51 = vld [vmem:[#allocation81_spill] sm:$0xff] }
 0x1fd   :  { %7775 = vst [vmem:[#allocation62_spill] sm:$0xff] %v6291_v55  ;;  %v2963_v32 = vsub.f32 %v6027_v26, %v7781_v39  ;;  %v2975_v7 = vsub.f32 %v6042_v6, %v7782_v43  ;;  %v7784_v58 = vand.u32 4294901760, %v7769_v0  ;;  %v7785_v49 = vand.u32 4294901760, %v7770_v21  ;;  %v7787_v56 = vld [vmem:[#allocation61_spill] sm:$0xff]  ;;  %3892 = vmatpush1.bf16.xpose.msra.mxu1 %v3891_v60 }
 0x1fe   :  { %7780 = vst [vmem:[#allocation65_spill] sm:$0xff] %v6302_v50  ;;  %v7788_v29 = vand.u32 4294901760, %v7787_v56  ;;  %v4277_v43 = vpack.c.bf16 %v2970_v34, %v2958_v61  ;;  %v1240_v6 = vand.u32 4294901760, %v1239_v35  ;;  %v1252_v1 = vand.u32 4294901760, %v1251_v19  ;;  %3894 = vmatprep.subr.bf16.mxu1 %v3893_v2  ;;  %v7791_v19 = vld [vmem:[#allocation73_spill] sm:$0xff] }
 0x1ff   :  { %v2981_v25 = vsub.f32 %v7769_v0, %v7784_v58  ;;  %v2993_v12 = vsub.f32 %v7770_v21, %v7785_v49  ;;  %v1258_v46 = vand.u32 4294901760, %v1257_v63  ;;  %v1270_v31 = vand.u32 4294901760, %v1269_v38  ;;  %4276 = vmatpush1.bf16.xpose.msra.mxu0 %v4275_v18  ;;  %v7793_v38 = vld [vmem:[#allocation78_spill] sm:$0xff] }
 0x200   :  { %v6321_v39 = vsub.f32 %v7787_v56, %v7788_v29  ;;  %v7179_v58 = vand.u32 4294901760, %v6215_v53  ;;  %v7180_v0 = vand.u32 4294901760, %v6232_v13  ;;  %v2964_v26 = vand.u32 4294901760, %v2963_v32  ;;  %4278 = vmatprep.subr.bf16.mxu0 %v4277_v43  ;;  %v7796_v43 = vld [vmem:[#allocation12_spill] sm:$0xff] }
 0x201   :  { %v2976_v49 = vand.u32 4294901760, %v2975_v7  ;;  %v7789_v24 = vand.u32 4294901760, %v7783_v37  ;;  %v2982_v56 = vand.u32 4294901760, %v2981_v25  ;;  %v2994_v60 = vand.u32 4294901760, %v2993_v12  ;;  %v7794_v7 = vld [vmem:[#allocation43_spill] sm:$0xff] }
 0x202   :  { %v7790_v61 = vand.u32 4294901760, %v7786_v51  ;;  %v7792_v2 = vand.u32 4294901760, %v7791_v19  ;;  %v3895_v63 = vpack.c.bf16 %v1252_v1, %v1240_v6  ;;  %v7795_v18 = vand.u32 4294901760, %v6006_v22 }
 0x203   :  { %v1263_v21 = vsub.f32 %v7783_v37, %v7789_v24  ;;  %v3897_v12 = vpack.c.bf16 %v1270_v31, %v1258_v46  ;;  %v7797_v6 = vand.u32 4294901760, %v7796_v43  ;;  %v7801_v46 = vand.u32 4294901760, %v6141_v27 }
 0x204   :  { %v1275_v34 = vsub.f32 %v7786_v51, %v7790_v61  ;;  %v6336_v32 = vsub.f32 %v7791_v19, %v7792_v2  ;;  %v6343_v25 = vsub.f32 %v6006_v22, %v7795_v18  ;;  %v1281_v61 = vsub.f32 %v6215_v53, %v7179_v58  ;;  %v7799_v2 = vld [vmem:[#allocation70_spill] sm:$0xff] }
 0x205   :  { %v1293_v19 = vsub.f32 %v6232_v13, %v7180_v0  ;;  %v6354_v1 = vsub.f32 %v7796_v43, %v7797_v6  ;;  %v7800_v29 = vand.u32 4294901760, %v7799_v2  ;;  %v4279_v22 = vpack.c.bf16 %v2976_v49, %v2964_v26  ;;  %3896 = vmatpush1.bf16.xpose.msra.mxu1 %v3895_v63 }
 0x206   :  { %v2987_v31 = vsub.f32 %v6141_v27, %v7801_v46  ;;  %v4281_v18 = vpack.c.bf16 %v2994_v60, %v2982_v56  ;;  %v1264_v58 = vand.u32 4294901760, %v1263_v21  ;;  %v1276_v35 = vand.u32 4294901760, %v1275_v34  ;;  %3898 = vmatprep.subr.bf16.mxu1 %v3897_v12  ;;  %v7805_v34 = vld [vmem:[#allocation90_spill] sm:$0xff]  ;;  %v7807_v12 = vld [vmem:[#allocation84_spill] sm:$0xff] }
 0x207   :  { %7798 = vst [vmem:[#allocation71_spill] sm:$0xff] %v6354_v1  ;;  %v6359_v24 = vsub.f32 %v7799_v2, %v7800_v29  ;;  %v7802_v0 = vand.u32 4294901760, %v6190_v57  ;;  %v7803_v43 = vand.u32 4294901760, %v7793_v38  ;;  %v7804_v29 = vand.u32 4294901760, %v7794_v7  ;;  %4280 = vmatpush1.bf16.xpose.msra.mxu0 %v4279_v22 }
 0x208   :  { %v1282_v21 = vand.u32 4294901760, %v1281_v61  ;;  %v1294_v56 = vand.u32 4294901760, %v1293_v19  ;;  %v7806_v63 = vand.u32 4294901760, %v7805_v34  ;;  %v3899_v49 = vpack.c.bf16 %v1276_v35, %v1264_v58  ;;  %v7808_v19 = vld [vmem:[#allocation11_spill] sm:$0xff]  ;;  %4282 = vmatprep.subr.bf16.mxu0 %v4281_v18 }
 0x209   :  { %v2999_v37 = vsub.f32 %v6190_v57, %v7802_v0  ;;  %v3005_v6 = vsub.f32 %v7793_v38, %v7803_v43  ;;  %v3017_v26 = vsub.f32 %v7794_v7, %v7804_v29  ;;  %v2988_v43 = vand.u32 4294901760, %v2987_v31  ;;  %v7811_v38 = vld [vmem:[#allocation83_spill] sm:$0xff] }
 0x20a   :  { %v6380_v46 = vsub.f32 %v7805_v34, %v7806_v63  ;;  %v7809_v51 = vand.u32 4294901760, %v6239_v47  ;;  %v7810_v31 = vand.u32 4294901760, %v6250_v23  ;;  %v7812_v29 = vand.u32 4294901760, %v7811_v38 }
 0x20b   :  { %v3000_v2 = vand.u32 4294901760, %v2999_v37  ;;  %v3006_v60 = vand.u32 4294901760, %v3005_v6  ;;  %v3018_v0 = vand.u32 4294901760, %v3017_v26  ;;  %v3901_v37 = vpack.c.bf16 %v1294_v56, %v1282_v21  ;;  %v7815_v26 = vld [vmem:[#allocation13_spill] sm:$0xff] }
 0x20c   :  { %v1287_v34 = vsub.f32 %v6239_v47, %v7809_v51  ;;  %v1299_v63 = vsub.f32 %v6250_v23, %v7810_v31  ;;  %v6395_v58 = vsub.f32 %v7811_v38, %v7812_v29  ;;  %v7813_v35 = vand.u32 4294901760, %v6291_v55 }
 0x20d   :  { %v7814_v18 = vand.u32 4294901760, %v6302_v50  ;;  %v7816_v51 = vand.u32 4294901760, %v7815_v26  ;;  %v7817_v31 = vand.u32 4294901760, %v6255_v41  ;;  %v7818_v38 = vand.u32 4294901760, %v6276_v33  ;;  %3900 = vmatpush1.bf16.xpose.msra.mxu1 %v3899_v49 }
 0x20e   :  { %v1305_v22 = vsub.f32 %v6291_v55, %v7813_v35  ;;  %v4283_v29 = vpack.c.bf16 %v3000_v2, %v2988_v43  ;;  %v7819_v35 = vand.u32 4294901760, %v7807_v12  ;;  %v7821_v55 = vand.u32 4294901760, %v6053_v52  ;;  %3902 = vmatprep.subr.bf16.mxu1 %v3901_v37 }
 0x20f   :  { %v1317_v6 = vsub.f32 %v6302_v50, %v7814_v18  ;;  %v6406_v7 = vsub.f32 %v7815_v26, %v7816_v51  ;;  %v3011_v61 = vsub.f32 %v6255_v41, %v7817_v31  ;;  %v3023_v21 = vsub.f32 %v6276_v33, %v7818_v38 }
 0x210   :  { %v3029_v18 = vsub.f32 %v7807_v12, %v7819_v35  ;;  %v7820_v50 = vand.u32 4294901760, %v7808_v19  ;;  %v6425_v31 = vsub.f32 %v6053_v52, %v7821_v55  ;;  %v4285_v38 = vpack.c.bf16 %v3018_v0, %v3006_v60  ;;  %4284 = vmatpush1.bf16.xpose.msra.mxu0 %v4283_v29 }
 0x211   :  { %v1288_v33 = vand.u32 4294901760, %v1287_v34  ;;  %v1300_v56 = vand.u32 4294901760, %v1299_v63  ;;  %v1306_v2 = vand.u32 4294901760, %v1305_v22  ;;  %v1318_v43 = vand.u32 4294901760, %v1317_v6 }
 0x212   :  { %v3041_v26 = vsub.f32 %v7808_v19, %v7820_v50  ;;  %v7204_v35 = vand.u32 4294901760, %v6359_v24  ;;  %v7203_v12 = vand.u32 4294901760, %v6380_v46  ;;  %v3012_v41 = vand.u32 4294901760, %v3011_v61  ;;  %4286 = vmatprep.subr.bf16.mxu0 %v4285_v38 }
 0x213   :  { %v3024_v50 = vand.u32 4294901760, %v3023_v21  ;;  %v7822_v51 = vand.u32 4294901760, %v6321_v39  ;;  %v7202_v52 = vand.u32 4294901760, %v6343_v25  ;;  %v3030_v55 = vand.u32 4294901760, %v3029_v18 }
 0x214   :  { %v3042_v49 = vand.u32 4294901760, %v3041_v26  ;;  %v7823_v60 = vand.u32 4294901760, %v6336_v32  ;;  %v7196_v34 = vand.u32 4294901760, %v6354_v1  ;;  %v7824_v63 = vand.u32 4294901760, %v6066_v14 }
 0x215   :  { %v1311_v19 = vsub.f32 %v6321_v39, %v7822_v51  ;;  %v3903_v37 = vpack.c.bf16 %v1300_v56, %v1288_v33  ;;  %v7195_v22 = vand.u32 4294901760, %v6395_v58  ;;  %v7197_v6 = vand.u32 4294901760, %v6406_v7 }
 0x216   :  { %v1323_v0 = vsub.f32 %v6336_v32, %v7823_v60  ;;  %v6440_v61 = vsub.f32 %v6066_v14, %v7824_v63  ;;  %v3905_v21 = vpack.c.bf16 %v1318_v43, %v1306_v2  ;;  %v1329_v29 = vsub.f32 %v6359_v24, %v7204_v35 }
 0x217   :  { %v1341_v18 = vsub.f32 %v6380_v46, %v7203_v12  ;;  %v7826_v26 = vand.u32 4294901760, %v6068_v45  ;;  %v7827_v33 = vand.u32 4294901760, %v6070_v28  ;;  %v4287_v51 = vpack.c.bf16 %v3024_v50, %v3012_v41  ;;  %3904 = vmatpush1.bf16.xpose.msra.mxu1 %v3903_v37 }
 0x218   :  { %7825 = vst [vmem:[#allocation68_spill] sm:$0xff] %v6440_v61  ;;  %v3035_v38 = vsub.f32 %v6343_v25, %v7202_v52  ;;  %v4289_v2 = vpack.c.bf16 %v3042_v49, %v3030_v55  ;;  %v1312_v43 = vand.u32 4294901760, %v1311_v19  ;;  %v1324_v60 = vand.u32 4294901760, %v1323_v0  ;;  %3906 = vmatprep.subr.bf16.mxu1 %v3905_v21  ;;  %v7856_v52 = vld [vmem:[#allocation44_spill] sm:$0xff] }
 0x219   :  { %v6453_v14 = vsub.f32 %v6068_v45, %v7826_v26  ;;  %v6458_v56 = vsub.f32 %v6070_v28, %v7827_v33  ;;  %v3047_v63 = vsub.f32 %v6354_v1, %v7196_v34  ;;  %v3053_v45 = vsub.f32 %v6395_v58, %v7195_v22  ;;  %4288 = vmatpush1.bf16.xpose.msra.mxu0 %v4287_v51 }
 0x21a   :  { %v3065_v28 = vsub.f32 %v6406_v7, %v7197_v6  ;;  %v7201_v41 = vand.u32 4294901760, %v6425_v31  ;;  %v7199_v50 = vand.u32 4294901760, %v6440_v61  ;;  %v1330_v19 = vand.u32 4294901760, %v1329_v29  ;;  %4290 = vmatprep.subr.bf16.mxu0 %v4289_v2 }
 0x21b   :  { %7828 = vst [vmem:[#allocation74_spill] sm:$0xff] %v6458_v56  ;;  %v1342_v55 = vand.u32 4294901760, %v1341_v18  ;;  %v3036_v49 = vand.u32 4294901760, %v3035_v38  ;;  %v3907_v0 = vpack.c.bf16 %v1324_v60, %v1312_v43  ;;  %v3048_v26 = vand.u32 4294901760, %v3047_v63 }
 0x21c   :  { %v7198_v37 = vand.u32 4294901760, %v6453_v14  ;;  %v7200_v33 = vand.u32 4294901760, %v6458_v56  ;;  %v3054_v22 = vand.u32 4294901760, %v3053_v45  ;;  %v3066_v34 = vand.u32 4294901760, %v3065_v28 }
 0x21d   :  { %v1335_v6 = vsub.f32 %v6425_v31, %v7201_v41  ;;  %v1347_v21 = vsub.f32 %v6440_v61, %v7199_v50  ;;  %v3909_v29 = vpack.c.bf16 %v1342_v55, %v1330_v19  ;;  %v4291_v18 = vpack.c.bf16 %v3048_v26, %v3036_v49  ;;  %v7829_v19 = vld [vmem:[#allocation64_spill] sm:$0xff]  ;;  %v7830_v55 = vld [vmem:[#allocation67_spill] sm:$0xff]  ;;  %v7832_v50 = vld [vmem:[#allocation30_spill] sm:$0xff] }
 0x21e   :  { %v3059_v51 = vsub.f32 %v6453_v14, %v7198_v37  ;;  %v3071_v38 = vsub.f32 %v6458_v56, %v7200_v33  ;;  %v4293_v2 = vpack.c.bf16 %v3066_v34, %v3054_v22  ;;  %v3913_v49 = vpack.c.bf16 %v7830_v55, %v7829_v19  ;;  %v7831_v37 = vld [vmem:[#allocation31_spill] sm:$0xff]  ;;  %v7834_v22 = vld [vmem:[#allocation97_spill] sm:$0xff] }
 0x21f   :  { %3908 = vmatpush1.bf16.xpose.msra.mxu1 %v3907_v0  ;;  %v1336_v43 = vand.u32 4294901760, %v1335_v6  ;;  %v1348_v60 = vand.u32 4294901760, %v1347_v21  ;;  %v7833_v33 = vpack.c.bf16 %v7831_v37, %v7832_v50  ;;  %v3915_v34 = vpack.c.bf16 %v5968_v44, %v5963_v3  ;;  %v7835_v6 = vld [vmem:[#allocation25_spill] sm:$0xff]  ;;  %v7836_v0 = vld [vmem:[#allocation66_spill] sm:$0xff]  ;;  %v7855_v41 = vld [vmem:[#allocation51_spill] sm:$0xff] }
 0x220   :  { %3910 = vmatprep.subr.bf16.mxu1 %v3909_v29  ;;  %v3060_v63 = vand.u32 4294901760, %v3059_v51  ;;  %v3072_v45 = vand.u32 4294901760, %v3071_v38  ;;  %v7837_v21 = vpack.c.bf16 %v5734_v62, %v7836_v0  ;;  %v7838_v29 = vld [vmem:[#allocation19_spill] sm:$0xff]  ;;  %v7840_v51 = vld [vmem:[#allocation26_spill] sm:$0xff]  ;;  %v7857_v12 = vpack.c.bf16 %v7855_v41, %v7856_v52 }
 0x221   :  { %4292 = vmatpush1.bf16.xpose.msra.mxu0 %v4291_v18  ;;  %v3911_v28 = vpack.c.bf16 %v1348_v60, %v1336_v43  ;;  %v7839_v18 = vpack.c.bf16 %v5729_v9, %v5722_v36  ;;  %v7843_v43 = vpack.c.bf16 %v5750_v48, %v5748_v59  ;;  %v7844_v60 = vld [vmem:[#allocation29_spill] sm:$0xff] }
 0x222   :  { %4294 = vmatprep.subr.bf16.mxu0 %v4293_v2  ;;  %v4295_v26 = vpack.c.bf16 %v3072_v45, %v3060_v63  ;;  %v3921_v2 = vpack.c.bf16 %v5978_v10, %v5973_v15  ;;  %v7845_v63 = vld [vmem:[#allocation82_spill] sm:$0xff] }
 0x223   :  { %v7846_v45 = vpack.c.bf16 %v7844_v60, %v7845_v63 }
 0x227   :  { %3912 = vmatpush1.bf16.xpose.msra.mxu1 %v3911_v28  ;;  %v7847_v28 = vpack.c.bf16 %v5786_v42, %v5784_v17 }
 0x228   :  { %3914 = vmatprep.subr.bf16.mxu1 %v3913_v49  ;;  %v3925_v49 = vpack.c.bf16 %v6022_v40, %v5987_v30 }
 0x229   :  { %4296 = vmatpush1.bf16.xpose.msra.mxu0 %v4295_v26  ;;  %v7848_v26 = vpack.c.bf16 %v5792_v4, %v5790_v16 }
 0x22a   :  { %4298 = vmatprep.subr.bf16.mxu0 %v7833_v33  ;;  %v7841_v33 = vld [vmem:[#allocation76_spill] sm:$0xff] }
 0x22b   :  { %v7842_v38 = vpack.c.bf16 %v5741_v8, %v7841_v33 }
 0x22e   :  { %1385 = vmatmul.mubr.f32.vlgmr.msra.gmra.mrb[0].mxu1 %v7834_v22  ;;  %v7862_v22 = vld [vmem:[#allocation69_spill] sm:$0xff] }
 0x22f   :  { %3916 = vmatpush1.bf16.xpose.msra.mxu1 %v3915_v34  ;;  %1520 = vmatprep.mubr.f32.mxu1 %v7835_v6  ;;  %v7849_v34 = vpack.c.bf16 %v5810_v54, %v5808_v11 }
 0x230   :  { %3918 = vmatprep.subr.bf16.mxu1 %v7837_v21  ;;  %3109 = vmatmul.mubr.f32.vlgmr.msra.gmra.mrb[0].mxu0 %v7838_v29  ;;  %v7850_v21 = vpack.c.bf16 %v5830_v5, %v5828_v20  ;;  %v7861_v29 = vld [vmem:[#allocation81_spill] sm:$0xff] }
 0x231   :  { %4300 = vmatpush1.bf16.xpose.msra.mxu0 %v7839_v18  ;;  %3244 = vmatprep.mubr.f32.mxu0 %v7840_v51  ;;  %v7851_v18 = vld [vmem:[#allocation17_spill] sm:$0xff] }
 0x232   :  { %4302 = vmatprep.subr.bf16.mxu0 %v7842_v38  ;;  %v7852_v38 = vld [vmem:[#allocation32_spill] sm:$0xff] }
 0x237   :  { %3920 = vmatpush1.bf16.xpose.msra.mxu1 %v7843_v43  ;;  %v7853_v43 = vld [vmem:[#allocation15_spill] sm:$0xff] }
 0x238   :  { %3922 = vmatprep.subr.bf16.mxu1 %v3921_v2  ;;  %v3929_v2 = vpack.c.bf16 %v7852_v38, %v7851_v18  ;;  %v7863_v38 = vpack.c.bf16 %v7861_v29, %v7862_v22 }
 0x239   :  { %4304 = vmatpush1.bf16.xpose.msra.mxu0 %v7846_v45  ;;  %v7854_v45 = vld [vmem:[#allocation14_spill] sm:$0xff] }
 0x23a   :  { %4306 = vmatprep.subr.bf16.mxu0 %v7847_v28  ;;  %v4311_v28 = vpack.c.bf16 %v7854_v45, %v7853_v43  ;;  %v7864_v45 = vld [vmem:[#allocation43_spill] sm:$0xff] }
 0x23f   :  { %3924 = vmatpush1.bf16.xpose.msra.mxu1 %v7848_v26  ;;  %v7859_v26 = vld [vmem:[#allocation53_spill] sm:$0xff] }
 0x240   :  { %3926 = vmatprep.subr.bf16.mxu1 %v3925_v49  ;;  %v7858_v49 = vld [vmem:[#allocation56_spill] sm:$0xff] }
 0x241   :  { %4308 = vmatpush1.bf16.xpose.msra.mxu0 %v7849_v34  ;;  %v7860_v35 = vpack.c.bf16 %v7858_v49, %v7859_v26  ;;  %v3933_v34 = vpack.c.bf16 %v6232_v13, %v6215_v53  ;;  %v7868_v49 = vld [vmem:[#allocation65_spill] sm:$0xff]  ;;  %v7869_v13 = vld [vmem:[#allocation59_spill] sm:$0xff]  ;;  %v7870_v53 = vld [vmem:[#allocation58_spill] sm:$0xff] }
 0x242   :  { %4310 = vmatprep.subr.bf16.mxu0 %v7850_v21  ;;  %v4315_v21 = vpack.c.bf16 %v6190_v57, %v6141_v27  ;;  %v4319_v43 = vpack.c.bf16 %v7870_v53, %v7869_v13  ;;  %v7871_v57 = vld [vmem:[#allocation11_spill] sm:$0xff]  ;;  %v4325_v53 = vpack.c.bf16 %v6406_v7, %v6395_v58 }
 0x247   :  { %3928 = vmatpush1.bf16.xpose.msra.mxu1 %v7857_v12  ;;  %v7865_v12 = vld [vmem:[#allocation78_spill] sm:$0xff] }
 0x248   :  { %3930 = vmatprep.subr.bf16.mxu1 %v3929_v2  ;;  %v7866_v2 = vpack.c.bf16 %v7864_v45, %v7865_v12 }
 0x249   :  { %4312 = vmatpush1.bf16.xpose.msra.mxu0 %v4311_v28  ;;  %v3935_v28 = vpack.c.bf16 %v6250_v23, %v6239_v47  ;;  %v4323_v23 = vpack.c.bf16 %v6354_v1, %v6343_v25  ;;  %v7876_v1 = vld [vmem:[#allocation92_spill] sm:$0xff] }
 0x24a   :  { %4314 = vmatprep.subr.bf16.mxu0 %v7860_v35  ;;  %v7867_v35 = vld [vmem:[#allocation62_spill] sm:$0xff] }
 0x24b   :  { %v3937_v26 = vpack.c.bf16 %v7868_v49, %v7867_v35 }
 0x24f   :  { %3932 = vmatpush1.bf16.xpose.msra.mxu1 %v7863_v38  ;;  %v7872_v38 = vld [vmem:[#allocation84_spill] sm:$0xff] }
 0x250   :  { %3934 = vmatprep.subr.bf16.mxu1 %v3933_v34  ;;  %v7873_v34 = vpack.c.bf16 %v7871_v57, %v7872_v38 }
 0x251   :  { %4316 = vmatpush1.bf16.xpose.msra.mxu0 %v4315_v21  ;;  %v3939_v21 = vpack.c.bf16 %v6336_v32, %v6321_v39 }
 0x252   :  { %4318 = vmatprep.subr.bf16.mxu0 %v7866_v2  ;;  %v3941_v2 = vpack.c.bf16 %v6380_v46, %v6359_v24 }
 0x257   :  { %3936 = vmatpush1.bf16.xpose.msra.mxu1 %v3935_v28  ;;  %v7874_v28 = vld [vmem:[#allocation27_spill] sm:$0xff] }
 0x258   :  { %3938 = vmatprep.subr.bf16.mxu1 %v3937_v26  ;;  %v4327_v26 = vpack.c.bf16 %v6458_v56, %v6453_v14  ;;  %v7886_v56 = vld [vmem:[#allocation36_spill] sm:$0xff] }
 0x259   :  { %4320 = vmatpush1.bf16.xpose.msra.mxu0 %v4319_v43  ;;  %v3943_v43 = vpack.c.bf16 %v6440_v61, %v6425_v31  ;;  %v7881_v61 = vld [vmem:[#allocation63_spill] sm:$0xff] }
 0x25a   :  { %4322 = vmatprep.subr.bf16.mxu0 %v7873_v34  ;;  %v7875_v34 = vld [vmem:[#allocation28_spill] sm:$0xff] }
 0x25f   :  { %3940 = vmatpush1.bf16.xpose.msra.mxu1 %v3939_v21  ;;  %v7877_v21 = vld [vmem:[#allocation33_spill] sm:$0xff] }
 0x260   :  { %3942 = vmatprep.subr.bf16.mxu1 %v3941_v2  ;;  %v7878_v2 = vand.u32 4294901760, %v7835_v6  ;;  %v7888_v6 = vld [vmem:[#allocation38_spill] sm:$0xff] }
 0x261   :  { %4324 = vmatpush1.bf16.xpose.msra.mxu0 %v4323_v23  ;;  %v7880_v23 = vld [vmem:[#allocation24_spill] sm:$0xff] }
 0x262   :  { %4326 = vmatprep.subr.bf16.mxu0 %v4325_v53  ;;  %v7879_v53 = vld [vmem:[#allocation60_spill] sm:$0xff] }
 0x267   :  { %3944 = vmatpush1.bf16.xpose.msra.mxu1 %v3943_v43  ;;  %v7882_v43 = vand.u32 4294901760, %v7840_v51  ;;  %v7892_v51 = vld [vmem:[#allocation50_spill] sm:$0xff] }
 0x268   :  { %3946 = vmatprep.subr.bf16.mxu1 %v7874_v28  ;;  %v7883_v28 = vld [vmem:[#allocation75_spill] sm:$0xff] }
 0x269   :  { %4328 = vmatpush1.bf16.xpose.msra.mxu0 %v4327_v26  ;;  %v7884_v26 = vld [vmem:[#allocation39_spill] sm:$0xff] }
 0x26a   :  { %4330 = vmatprep.subr.bf16.mxu0 %v7875_v34  ;;  %v7885_v34 = vld [vmem:[#allocation80_spill] sm:$0xff] }
 0x26e   :  { %1523 = vmatmul.mubr.f32.vlgmr.msra.gmra.mrb[0].mxu1 %v7876_v1 }
 0x26f   :  { %3948 = vmatpush1.bf16.xpose.msra.mxu1 %v7877_v21  ;;  %1627 = vmatprep.mubr.f32.mxu1 %v7878_v2  ;;  %v7887_v21 = vld [vmem:[#allocation35_spill] sm:$0xff]  ;;  %v7889_v2 = vld [vmem:[#allocation37_spill] sm:$0xff] }
 0x270   :  { %3950 = vmatprep.subr.bf16.mxu1 %v7879_v53  ;;  %3247 = vmatmul.mubr.f32.vlgmr.msra.gmra.mrb[0].mxu0 %v7880_v23  ;;  %v7890_v53 = vld [vmem:[#allocation41_spill] sm:$0xff] }
 0x271   :  { %4332 = vmatpush1.bf16.xpose.msra.mxu0 %v7881_v61  ;;  %3351 = vmatprep.mubr.f32.mxu0 %v7882_v43  ;;  %v7891_v61 = vld [vmem:[#allocation45_spill] sm:$0xff] }
 0x272   :  { %4334 = vmatprep.subr.bf16.mxu0 %v7883_v28  ;;  %v7893_v43 = vld [vmem:[#allocation49_spill] sm:$0xff]  ;;  %v7894_v28 = vld [vmem:[#allocation48_spill] sm:$0xff] }
 0x277   :  { %3952 = vmatpush1.bf16.xpose.msra.mxu1 %v7884_v26  ;;  %v7895_v26 = vld [vmem:[#allocation54_spill] sm:$0xff] }
 0x278   :  { %3954 = vmatprep.subr.bf16.mxu1 %v7885_v34  ;;  %v7896_v34 = vld [vmem:[#allocation86_spill] sm:$0xff] }
 0x279   :  { %4336 = vmatpush1.bf16.xpose.msra.mxu0 %v7886_v56  ;;  %v7897_v56 = vld [vmem:[#allocation96_spill] sm:$0xff] }
 0x27a   :  { %4338 = vmatprep.subr.bf16.mxu0 %v7887_v21  ;;  %v7898_v21 = vld [vmem:[#allocation93_spill] sm:$0xff] }
 0x27f   :  { %3956 = vmatpush1.bf16.xpose.msra.mxu1 %v7888_v6  ;;  %v7899_v6 = vld [vmem:[#allocation94_spill] sm:$0xff] }
 0x280   :  { %3958 = vmatprep.subr.bf16.mxu1 %v7889_v2  ;;  %v7900_v2 = vld [vmem:[#allocation57_spill] sm:$0xff] }
 0x281   :  { %4340 = vmatpush1.bf16.xpose.msra.mxu0 %v7890_v53  ;;  %v7901_v53 = vld [vmem:[#allocation72_spill] sm:$0xff] }
 0x282   :  { %4342 = vmatprep.subr.bf16.mxu0 %v7891_v61  ;;  %v7902_v61 = vld [vmem:[#allocation87_spill] sm:$0xff] }
 0x287   :  { %3960 = vmatpush1.bf16.xpose.msra.mxu1 %v7892_v51  ;;  %v7903_v51 = vld [vmem:[#allocation40_spill] sm:$0xff] }
 0x288   :  { %3962 = vmatprep.subr.bf16.mxu1 %v7893_v43  ;;  %v7904_v43 = vld [vmem:[#allocation16_spill] sm:$0xff] }
 0x289   :  { %4344 = vmatpush1.bf16.xpose.msra.mxu0 %v7894_v28  ;;  %v7905_v28 = vld [vmem:[#allocation18_spill] sm:$0xff] }
 0x28a   :  { %4346 = vmatprep.subr.bf16.mxu0 %v7895_v26  ;;  %v7906_v26 = vld [vmem:[#allocation20_spill] sm:$0xff] }
 0x28f   :  { %3964 = vmatpush1.bf16.xpose.msra.mxu1 %v7896_v34  ;;  %v7907_v34 = vld [vmem:[#allocation22_spill] sm:$0xff] }
 0x290   :  { %3966 = vmatprep.subr.bf16.mxu1 %v7897_v56 }
 0x291   :  { %4348 = vmatpush1.bf16.xpose.msra.mxu0 %v7898_v21  ;;  %v7908_v21 = vand.u32 4294901760, %v7829_v19  ;;  %v7916_v19 = vand.u32 4294901760, %v7836_v0 }
 0x292   :  { %4350 = vmatprep.subr.bf16.mxu0 %v7899_v6  ;;  %v7909_v6 = vand.u32 4294901760, %v7830_v55  ;;  %v7917_v55 = vand.u32 4294901760, %v5734_v62  ;;  %v7924_v62 = vand.u32 4294901760, %v7880_v23 }
 0x294   :  { %v3977_v56 = vpack.c.bf16 %v7909_v6, %v7908_v21  ;;  %v3981_v21 = vpack.c.bf16 %v7917_v55, %v7916_v19  ;;  %v7918_v6 = vand.u32 4294901760, %v7876_v1  ;;  %v7925_v1 = vld [vmem:[#allocation23_spill] sm:$0xff]  ;;  %v7933_v19 = vand.u32 4294901760, %v5786_v42 }
 0x295   :  { %v7940_v42 = vand.u32 4294901760, %v5828_v20 }
 0x297   :  { %3968 = vmatpush1.bf16.xpose.msra.mxu1 %v7900_v2  ;;  %v7910_v2 = vld [vmem:[#allocation34_spill] sm:$0xff] }
 0x298   :  { %3970 = vmatprep.subr.bf16.mxu1 %v7901_v53  ;;  %v7911_v53 = vand.u32 4294901760, %v7832_v50  ;;  %v7919_v50 = vand.u32 4294901760, %v5722_v36  ;;  %v7926_v36 = vand.u32 4294901760, %v5748_v59  ;;  %v7934_v59 = vand.u32 4294901760, %v5790_v16 }
 0x299   :  { %4352 = vmatpush1.bf16.xpose.msra.mxu0 %v7902_v61  ;;  %v7912_v61 = vand.u32 4294901760, %v7831_v37  ;;  %v7921_v37 = vand.u32 4294901760, %v7841_v33  ;;  %v7928_v33 = vand.u32 4294901760, %v5973_v15  ;;  %v7943_v16 = vand.u32 4294901760, %v7855_v41 }
 0x29a   :  { %4354 = vmatprep.subr.bf16.mxu0 %v7903_v51  ;;  %v7956_v41 = vand.u32 4294901760, %v7861_v29  ;;  %v7967_v29 = vld [vmem:[#allocation55_spill] sm:$0xff] }
 0x29b   :  { %v4361_v51 = vpack.c.bf16 %v7912_v61, %v7911_v53  ;;  %v7920_v61 = vand.u32 4294901760, %v5729_v9  ;;  %v7927_v9 = vand.u32 4294901760, %v5750_v48  ;;  %v7930_v53 = vand.u32 4294901760, %v7845_v63 }
 0x29c   :  { %v7935_v48 = vand.u32 4294901760, %v5792_v4  ;;  %v7937_v63 = vand.u32 4294901760, %v6022_v40  ;;  %v7942_v4 = vand.u32 4294901760, %v7856_v52  ;;  %v7944_v40 = vand.u32 4294901760, %v7851_v18 }
 0x29d   :  { %v3983_v0 = vpack.c.bf16 %v7927_v9, %v7926_v36  ;;  %v7953_v9 = vld [vmem:[#allocation56_spill] sm:$0xff]  ;;  %v7955_v52 = vand.u32 4294901760, %v7862_v22  ;;  %v7966_v22 = vand.u32 4294901760, %v6239_v47  ;;  %v7976_v47 = vand.u32 4294901760, %v6321_v39 }
 0x29e   :  { %v3987_v15 = vpack.c.bf16 %v7935_v48, %v7934_v59  ;;  %v7964_v48 = vand.u32 4294901760, %v7865_v12  ;;  %v7985_v39 = vand.u32 4294901760, %v6425_v31  ;;  %v7995_v31 = vld [vmem:[#allocation60_spill] sm:$0xff] }
 0x29f   :  { %3972 = vmatpush1.bf16.xpose.msra.mxu1 %v7904_v43  ;;  %v7913_v43 = vld [vmem:[#allocation42_spill] sm:$0xff]  ;;  %v3995_v18 = vpack.c.bf16 %v7956_v41, %v7955_v52  ;;  %v8001_v52 = vld [vmem:[#allocation36_spill] sm:$0xff]  ;;  %v8002_v41 = vld [vmem:[#allocation35_spill] sm:$0xff] }
 0x2a0   :  { %3974 = vmatprep.subr.bf16.mxu1 %v7905_v28 }
 0x2a1   :  { %4356 = vmatpush1.bf16.xpose.msra.mxu0 %v7906_v26  ;;  %v7914_v26 = vand.u32 4294901760, %v5963_v3  ;;  %v7922_v3 = vand.u32 4294901760, %v5741_v8  ;;  %v7929_v8 = vand.u32 4294901760, %v5978_v10  ;;  %v7936_v10 = vand.u32 4294901760, %v5987_v30 }
 0x2a2   :  { %4358 = vmatprep.subr.bf16.mxu0 %v7907_v34  ;;  %v7915_v34 = vand.u32 4294901760, %v5968_v44  ;;  %v3991_v30 = vpack.c.bf16 %v7943_v16, %v7942_v4  ;;  %v7978_v16 = vand.u32 4294901760, %v6359_v24 }
 0x2a3   :  { %v4365_v44 = vpack.c.bf16 %v7922_v3, %v7921_v37  ;;  %v7947_v37 = vld [vmem:[#allocation15_spill] sm:$0xff] }
 0x2a4   :  { %v3979_v28 = vpack.c.bf16 %v7915_v34, %v7914_v26  ;;  %v7923_v34 = vld [vmem:[#allocation21_spill] sm:$0xff]  ;;  %v7931_v26 = vand.u32 4294901760, %v7844_v60  ;;  %v3989_v60 = vpack.c.bf16 %v7937_v63, %v7936_v10  ;;  %v7948_v3 = vand.u32 4294901760, %v7947_v37 }
 0x2a5   :  { %v7968_v63 = vand.u32 4294901760, %v7967_v29  ;;  %v8019_v29 = vld [vmem:[#allocation16_spill] sm:$0xff] }
 0x2a6   :  { %v4367_v23 = vpack.c.bf16 %v7931_v26, %v7930_v53  ;;  %v7959_v53 = vld [vmem:[#allocation52_spill] sm:$0xff] }
 0x2a7   :  { %3976 = vmatpush1.bf16.xpose.msra.mxu1 %v7910_v2  ;;  %v7960_v26 = vand.u32 4294901760, %v7959_v53  ;;  %v8007_v53 = vld [vmem:[#allocation50_spill] sm:$0xff] }
 0x2a8   :  { %3978 = vmatprep.subr.bf16.mxu1 %v3977_v56  ;;  %v4363_v56 = vpack.c.bf16 %v7920_v61, %v7919_v50  ;;  %v7941_v50 = vand.u32 4294901760, %v5830_v5  ;;  %v7951_v5 = vld [vmem:[#allocation53_spill] sm:$0xff] }
 0x2a9   :  { %4360 = vmatpush1.bf16.xpose.msra.mxu0 %v7913_v43  ;;  %v7952_v36 = vand.u32 4294901760, %v7951_v5  ;;  %v7994_v5 = vld [vmem:[#allocation33_spill] sm:$0xff] }
 0x2aa   :  { %4362 = vmatprep.subr.bf16.mxu0 %v4361_v51  ;;  %v7932_v51 = vand.u32 4294901760, %v5784_v17  ;;  %v7939_v17 = vand.u32 4294901760, %v5810_v54  ;;  %v4373_v61 = vpack.c.bf16 %v7941_v50, %v7940_v42  ;;  %v7972_v42 = vld [vmem:[#allocation58_spill] sm:$0xff] }
 0x2ab   :  { %v7973_v12 = vand.u32 4294901760, %v7972_v42 }
 0x2ac   :  { %v4369_v55 = vpack.c.bf16 %v7933_v19, %v7932_v51  ;;  %v7961_v51 = vand.u32 4294901760, %v6141_v27  ;;  %v7962_v19 = vld [vmem:[#allocation46_spill] sm:$0xff]  ;;  %v7970_v27 = vand.u32 4294901760, %v7868_v49 }
 0x2ae   :  { %1631 = vmatmul.mubr.f32.vlgmr.msra.gmra.mrb[0].mxu1 %v7918_v6 }
 0x2af   :  { %3980 = vmatpush1.bf16.xpose.msra.mxu1 %v3979_v28  ;;  %1797 = vmatprep.mubr.f32.mxu1 %v7923_v34  ;;  %v3985_v28 = vpack.c.bf16 %v7929_v8, %v7928_v33  ;;  %v7957_v8 = vld [vmem:[#allocation47_spill] sm:$0xff] }
 0x2b0   :  { %3982 = vmatprep.subr.bf16.mxu1 %v3981_v21  ;;  %3355 = vmatmul.mubr.f32.vlgmr.msra.gmra.mrb[0].mxu0 %v7924_v62  ;;  %v7938_v21 = vand.u32 4294901760, %v5808_v11  ;;  %v7945_v11 = vld [vmem:[#allocation32_spill] sm:$0xff] }
 0x2b1   :  { %4364 = vmatpush1.bf16.xpose.msra.mxu0 %v4363_v56  ;;  %3521 = vmatprep.mubr.f32.mxu0 %v7925_v1  ;;  %v7946_v56 = vand.u32 4294901760, %v7945_v11  ;;  %v7981_v11 = vld [vmem:[#allocation71_spill] sm:$0xff] }
 0x2b2   :  { %4366 = vmatprep.subr.bf16.mxu0 %v4365_v44  ;;  %v4371_v6 = vpack.c.bf16 %v7939_v17, %v7938_v21  ;;  %v7949_v44 = vld [vmem:[#allocation14_spill] sm:$0xff]  ;;  %v7969_v21 = vand.u32 4294901760, %v7867_v35  ;;  %v7977_v35 = vand.u32 4294901760, %v6336_v32  ;;  %v7986_v32 = vld [vmem:[#allocation68_spill] sm:$0xff] }
 0x2b3   :  { %v3993_v54 = vpack.c.bf16 %v7946_v56, %v7944_v40  ;;  %v7950_v20 = vand.u32 4294901760, %v7949_v44  ;;  %v7980_v40 = vand.u32 4294901760, %v6343_v25  ;;  %v7987_v24 = vand.u32 4294901760, %v7986_v32  ;;  %v7989_v25 = vld [vmem:[#allocation74_spill] sm:$0xff] }
 0x2b4   :  { %v4001_v17 = vpack.c.bf16 %v7970_v27, %v7969_v21  ;;  %v4003_v49 = vpack.c.bf16 %v7977_v35, %v7976_v47  ;;  %v7990_v44 = vand.u32 4294901760, %v7989_v25  ;;  %v8022_v21 = vld [vmem:[#allocation22_spill] sm:$0xff] }
 0x2b5   :  { %v4375_v62 = vpack.c.bf16 %v7950_v20, %v7948_v3  ;;  %v7988_v3 = vand.u32 4294901760, %v6453_v14  ;;  %v7997_v14 = vld [vmem:[#allocation63_spill] sm:$0xff]  ;;  %v3655_v27 = vld [vmem:[%s6798_s2] ss:$0 sm:$0xff] }
 0x2b7   :  { %3984 = vmatpush1.bf16.xpose.msra.mxu1 %v3983_v0  ;;  %v7954_v0 = vand.u32 4294901760, %v7953_v9  ;;  %v4391_v20 = vpack.c.bf16 %v7990_v44, %v7988_v3  ;;  %v7998_v9 = vld [vmem:[#allocation75_spill] sm:$0xff] }
 0x2b8   :  { %3986 = vmatprep.subr.bf16.mxu1 %v3985_v28  ;;  %v7958_v28 = vand.u32 4294901760, %v7957_v8  ;;  %v8005_v8 = vld [vmem:[#allocation41_spill] sm:$0xff] }
 0x2b9   :  { %4368 = vmatpush1.bf16.xpose.msra.mxu0 %v4367_v23  ;;  %v4377_v33 = vpack.c.bf16 %v7954_v0, %v7952_v36  ;;  %v7996_v36 = vld [vmem:[#allocation19_spill] sm:$0xff] }
 0x2ba   :  { %4370 = vmatprep.subr.bf16.mxu0 %v4369_v55  ;;  %v3997_v23 = vpack.c.bf16 %v7960_v26, %v7958_v28  ;;  %v7963_v55 = vand.u32 4294901760, %v7962_v19  ;;  %v7999_v0 = vld [vmem:[#allocation39_spill] sm:$0xff]  ;;  %v8006_v28 = vld [vmem:[#allocation45_spill] sm:$0xff]  ;;  %v8009_v26 = vld [vmem:[#allocation48_spill] sm:$0xff] }
 0x2bb   :  { %v8012_v19 = vld [vmem:[#allocation96_spill] sm:$0xff] }
 0x2bc   :  { %v4379_v59 = vpack.c.bf16 %v7963_v55, %v7961_v51  ;;  %v8011_v51 = vld [vmem:[#allocation86_spill] sm:$0xff]  ;;  %v8013_v55 = vld [vmem:[#allocation93_spill] sm:$0xff] }
 0x2bf   :  { %3988 = vmatpush1.bf16.xpose.msra.mxu1 %v3987_v15  ;;  %v7965_v15 = vand.u32 4294901760, %v7864_v45  ;;  %v7974_v45 = vand.u32 4294901760, %v7872_v38  ;;  %v7982_v38 = vand.u32 4294901760, %v7981_v11 }
 0x2c0   :  { %3990 = vmatprep.subr.bf16.mxu1 %v3989_v60  ;;  %v3999_v60 = vpack.c.bf16 %v7968_v63, %v7966_v22  ;;  %v8018_v22 = vld [vmem:[#allocation40_spill] sm:$0xff]  ;;  %v8020_v63 = vld [vmem:[#allocation18_spill] sm:$0xff] }
 0x2c1   :  { %4372 = vmatpush1.bf16.xpose.msra.mxu0 %v4371_v6  ;;  %v4381_v10 = vpack.c.bf16 %v7965_v15, %v7964_v48  ;;  %v7971_v6 = vand.u32 4294901760, %v7869_v13  ;;  %v7979_v13 = vand.u32 4294901760, %v6380_v46  ;;  %v4387_v56 = vpack.c.bf16 %v7982_v38, %v7980_v40  ;;  %v8015_v48 = vld [vmem:[#allocation57_spill] sm:$0xff]  ;;  %v8016_v15 = vld [vmem:[#allocation72_spill] sm:$0xff] }
 0x2c2   :  { %4374 = vmatprep.subr.bf16.mxu0 %v4373_v61  ;;  %v7975_v61 = vand.u32 4294901760, %v7871_v57  ;;  %v7983_v57 = vand.u32 4294901760, %v6395_v58  ;;  %v4007_v46 = vpack.c.bf16 %v7987_v24, %v7985_v39  ;;  %v7992_v58 = vld [vmem:[#allocation28_spill] sm:$0xff] }
 0x2c3   :  { %v4383_v50 = vpack.c.bf16 %v7973_v12, %v7971_v6 }
 0x2c4   :  { %v4385_v4 = vpack.c.bf16 %v7975_v61, %v7974_v45 }
 0x2c7   :  { %3992 = vmatpush1.bf16.xpose.msra.mxu1 %v3991_v30  ;;  %v4005_v30 = vpack.c.bf16 %v7979_v13, %v7978_v16 }
 0x2c8   :  { %3994 = vmatprep.subr.bf16.mxu1 %v3993_v54  ;;  %v7984_v54 = vand.u32 4294901760, %v6406_v7  ;;  %v7993_v7 = vld [vmem:[#allocation97_spill] sm:$0xff] }
 0x2c9   :  { %4376 = vmatpush1.bf16.xpose.msra.mxu0 %v4375_v62  ;;  %v7991_v62 = vld [vmem:[#allocation27_spill] sm:$0xff] }
 0x2ca   :  { %4378 = vmatprep.subr.bf16.mxu0 %v4377_v33  ;;  %v4389_v37 = vpack.c.bf16 %v7984_v54, %v7983_v57  ;;  %v8000_v33 = vld [vmem:[#allocation80_spill] sm:$0xff] }
 0x2cf   :  { %3996 = vmatpush1.bf16.xpose.msra.mxu1 %v3995_v18  ;;  %v8003_v18 = vld [vmem:[#allocation38_spill] sm:$0xff] }
 0x2d0   :  { %3998 = vmatprep.subr.bf16.mxu1 %v3997_v23  ;;  %v8010_v23 = vld [vmem:[#allocation54_spill] sm:$0xff] }
 0x2d1   :  { %4380 = vmatpush1.bf16.xpose.msra.mxu0 %v4379_v59  ;;  %v8014_v59 = vld [vmem:[#allocation94_spill] sm:$0xff] }
 0x2d2   :  { %4382 = vmatprep.subr.bf16.mxu0 %v4381_v10  ;;  %v8017_v10 = vld [vmem:[#allocation87_spill] sm:$0xff] }
 0x2d7   :  { %4000 = vmatpush1.bf16.xpose.msra.mxu1 %v3999_v60  ;;  %v8021_v60 = vld [vmem:[#allocation20_spill] sm:$0xff] }
 0x2d8   :  { %4002 = vmatprep.subr.bf16.mxu1 %v4001_v17 }
 0x2d9   :  { %4384 = vmatpush1.bf16.xpose.msra.mxu0 %v4383_v50 }
 0x2da   :  { %4386 = vmatprep.subr.bf16.mxu0 %v4385_v4 }
 0x2df   :  { %4004 = vmatpush1.bf16.xpose.msra.mxu1 %v4003_v49 }
 0x2e0   :  { %4006 = vmatprep.subr.bf16.mxu1 %v4005_v30 }
 0x2e1   :  { %4388 = vmatpush1.bf16.xpose.msra.mxu0 %v4387_v56 }
 0x2e2   :  { %4390 = vmatprep.subr.bf16.mxu0 %v4389_v37 }
 0x2e7   :  { %4008 = vmatpush1.bf16.xpose.msra.mxu1 %v4007_v46 }
 0x2e8   :  { %4010 = vmatprep.subr.bf16.mxu1 %v7991_v62 }
 0x2e9   :  { %4392 = vmatpush1.bf16.xpose.msra.mxu0 %v4391_v20 }
 0x2ea   :  { %4394 = vmatprep.subr.bf16.mxu0 %v7992_v58 }
 0x2ee   :  { %1799 = vmatmul.mubr.f32.vlgmr.msra.gmra.mrb[0].mxu1 %v7993_v7 }
 0x2ef   :  { %4012 = vmatpush1.bf16.xpose.msra.mxu1 %v7994_v5  ;;  %1901 = vmatprep.mubr.f32.mxu1 %v7923_v34  ;;  %v8004_v34 = vld [vmem:[#allocation37_spill] sm:$0xff] }
 0x2f0   :  { %4014 = vmatprep.subr.bf16.mxu1 %v7995_v31  ;;  %3523 = vmatmul.mubr.f32.vlgmr.msra.gmra.mrb[0].mxu0 %v7996_v36 }
 0x2f1   :  { %4396 = vmatpush1.bf16.xpose.msra.mxu0 %v7997_v14  ;;  %3625 = vmatprep.mubr.f32.mxu0 %v7925_v1  ;;  %v8008_v1 = vld [vmem:[#allocation49_spill] sm:$0xff] }
 0x2f2   :  { %4398 = vmatprep.subr.bf16.mxu0 %v7998_v9 }
 0x2f7   :  { %4016 = vmatpush1.bf16.xpose.msra.mxu1 %v7999_v0 }
 0x2f8   :  { %4018 = vmatprep.subr.bf16.mxu1 %v8000_v33 }
 0x2f9   :  { %4400 = vmatpush1.bf16.xpose.msra.mxu0 %v8001_v52 }
 0x2fa   :  { %4402 = vmatprep.subr.bf16.mxu0 %v8002_v41 }
 0x2ff   :  { %4020 = vmatpush1.bf16.xpose.msra.mxu1 %v8003_v18 }
 0x300   :  { %4022 = vmatprep.subr.bf16.mxu1 %v8004_v34 }
 0x301   :  { %4404 = vmatpush1.bf16.xpose.msra.mxu0 %v8005_v8 }
 0x302   :  { %4406 = vmatprep.subr.bf16.mxu0 %v8006_v28 }
 0x307   :  { %4024 = vmatpush1.bf16.xpose.msra.mxu1 %v8007_v53 }
 0x308   :  { %4026 = vmatprep.subr.bf16.mxu1 %v8008_v1 }
 0x309   :  { %4408 = vmatpush1.bf16.xpose.msra.mxu0 %v8009_v26 }
 0x30a   :  { %4410 = vmatprep.subr.bf16.mxu0 %v8010_v23 }
 0x30f   :  { %4028 = vmatpush1.bf16.xpose.msra.mxu1 %v8011_v51 }
 0x310   :  { %4030 = vmatprep.subr.bf16.mxu1 %v8012_v19 }
 0x311   :  { %4412 = vmatpush1.bf16.xpose.msra.mxu0 %v8013_v55 }
 0x312   :  { %4414 = vmatprep.subr.bf16.mxu0 %v8014_v59 }
 0x317   :  { %4032 = vmatpush1.bf16.xpose.msra.mxu1 %v8015_v48 }
 0x318   :  { %4034 = vmatprep.subr.bf16.mxu1 %v8016_v15 }
 0x319   :  { %4416 = vmatpush1.bf16.xpose.msra.mxu0 %v8017_v10 }
 0x31a   :  { %4418 = vmatprep.subr.bf16.mxu0 %v8018_v22 }
 0x31f   :  { %4036 = vmatpush1.bf16.xpose.msra.mxu1 %v8019_v29 }
 0x320   :  { %4038 = vmatprep.subr.bf16.mxu1 %v8020_v63 }
 0x321   :  { %4420 = vmatpush1.bf16.xpose.msra.mxu0 %v8021_v60 }
 0x322   :  { %4422 = vmatprep.subr.bf16.mxu0 %v8022_v21 }
 0x327   :  { %4040 = vmatpush1.bf16.xpose.msra.mxu1 %v7910_v2 }
 0x329   :  { %4424 = vmatpush1.bf16.xpose.msra.mxu0 %v7913_v43 }
 0x32e   :  { %1903 = vmatmul.mubr.f32.vlgmr.msra.gmra.mrb[0].mxu1 %v7993_v7 }
 0x330   :  { %3627 = vmatmul.mubr.f32.vlgmr.msra.gmra.mrb[0].mxu0 %v7996_v36 }
 0x401   :  { %v1904_v17 = vpop.f32.mrb[0].mxu1 }
 0x402   :  { %v4425_v6 = vadd.f32 %v3655_v27, %v1904_v17  ;;  %v1906_v42 = vpop.f32.mrb[1].mxu1 }
 0x403   :  { %v3628_v12 = vpop.f32.mrb[0].mxu0 }
 0x404   :  { %v4426_v50 = vadd.f32 %v4425_v6, %v3628_v12  ;;  %v3630_v45 = vpop.f32.mrb[1].mxu0 }
 0x406   :  { %v3656_v61 = vmul.f32 -1.442695, %v4426_v50 }
 0x408   :  { %4476 = vpow2.f32 %v3656_v61 }
 0x412   :  { %v4477_v4 = vpop.eup %4476 }
 0x413   :  { %v3635_v2 = vadd.f32 1.0, %v4477_v4 }
 0x415   :  { %4478 = vrcp.f32 %v3635_v2 }
 0x41f   :  { %v4479_v43 = vpop.eup %4478 }
 0x420   :  { %3638 = vst [vmem:[#allocation7] sm:$0xff] %v4479_v43 }
 0x421   :  { %4535 = shalt.err (!%p4532_p6)
}
 0x422   :  { %s4536_s15 = scalar_lea.hbm %s6799_s3, 128 }
 0x423   :  { %p4537_p7 = scmp.ne.s32.totalorder %s6799_s3, %s4536_s15  ;;  %p4540_p8 = scmp.lt.u32.totalorder %s4536_s15, %s6799_s3 }
 0x425   :  { %p4542_p9 = pnand %p4540_p8, %p4537_p7 }
 0x427   :  { %4545 = shalt.err (!%p4542_p9)
}
 0x428   :  { %3648 = dma.vmem_to_hbm [thread:$0]  %s3646_s12, 128, %s6799_s3, [#allocation4]  }
 0x429   :  { %4550 = dma.done.wait [#allocation4], 128  }
 0x42a   :  { %4551 = vsyncadd [#allocation4], 4294967168 }
 0x42b   :  { %3652 = vsyncpa [#allocation3], 1 }
 0x42c   :  { %3653 = vsyncpa [#allocation6], 1 }
 0x42d   :  { %3654 = vsyncpa [#allocation4], 1 }

</bundles_post_ra>
